<compile_context>
chip_gen: v7x
topology: tpu7x:2x2x1
jax: 0.10.0
libtpu: 0.0.40
codegen_flags: <defaults>
</compile_context>

<pallas_src>
import functools

import jax
import jax.numpy as jnp
from jax import lax
from jax.experimental import pallas as pl
from jax.experimental.pallas import tpu as pltpu


VMEM_LIMIT = 32 * 1024 * 1024   # modest scoped-VMEM budget (safe on v5e/v6e/v7x)


def _ru(x, m):
    return (x + m - 1) // m * m


def _cparams(ndims):
    return pltpu.CompilerParams(
        dimension_semantics=("parallel",) * ndims,
        vmem_limit_bytes=VMEM_LIMIT,
    )


# ---------------------------------------------------------------------------
# Kernels
# ---------------------------------------------------------------------------

def _matmul_bias_relu_kernel(x_ref, w_ref, b_ref, o_ref):
    """Stem: im2col'd 7x7/s2 conv as a single K=49*Cin MXU dot + folded-BN + ReLU."""
    y = jnp.dot(x_ref[0], w_ref[...], preferred_element_type=jnp.float32)
    y = jnp.maximum(y + b_ref[...], 0.0)
    o_ref[...] = y[None].astype(o_ref.dtype)


def _maxpool_kernel(x_ref, o_ref):
    """Max over the 9 pre-shifted 3x3/s2 views stacked on axis 0."""
    r = x_ref[0]
    for t in range(1, x_ref.shape[0]):
        r = jnp.maximum(r, x_ref[t])
    o_ref[...] = r


def _block_kernel(*refs, Ho, Wo, Wq, cin, has_ds, avg):
    """Fused BasicBlock: conv1+BN+ReLU -> VMEM -> conv2+BN + residual + ReLU [+avgpool].

    refs = (xc_ref, w1_ref, b1_ref, w2_ref, b2_ref, [wd_ref, bd_ref,] o_ref, mid_ref)
      xc_ref : (1, Ho*Wq, 9*cin)  bf16  wide-row im2col of the block input
      w1_ref : (9*cin, P) bf16    conv1 (taps folded into K), BN scale folded
      w2_ref : (9, P, P)  bf16    conv2 per-tap, BN scale folded
      wd_ref : (cin, P)   bf16    1x1 stride-s downsample (optional)
      o_ref  : (1, Ho*Wq, P) bf16  -- or (1, 1, P) f32 when avg=True
      mid_ref: VMEM scratch staging the conv1 output with zero margins for conv2.
    """
    if has_ds:
        xc_ref, w1_ref, b1_ref, w2_ref, b2_ref, wd_ref, bd_ref, o_ref, mid_ref = refs
    else:
        xc_ref, w1_ref, b1_ref, w2_ref, b2_ref, o_ref, mid_ref = refs
        wd_ref = bd_ref = None

    M = Ho * Wq
    base = Wq + 8                       # top margin (Wq) + left margin (8); mult of 8

    xc = xc_ref[0]                                               # (M, K1) bf16

    # conv1 (3x3, stride folded into the im2col) + BN + ReLU: one K=9*cin dot
    h = jnp.dot(xc, w1_ref[...], preferred_element_type=jnp.float32)
    h = jnp.maximum(h + b1_ref[...], 0.0)

    # zero the junk wide columns (col >= Wo) so they act as conv2's zero padding
    col = lax.broadcasted_iota(jnp.int32, (M, 1), 0) % Wq
    valid = col < Wo
    h = jnp.where(valid, h, 0.0)

    # stage the intermediate in VMEM (zero margins all around); aligned dense store
    mid_ref[...] = jnp.zeros_like(mid_ref)
    mid_ref[base:base + M, :] = h.astype(mid_ref.dtype)

    # conv2 (3x3 stride 1): 9 tap dots against the VMEM-resident intermediate;
    # h(i, j) lives at mid[base + i*Wq + j], so tap (di, dj) reads offset di*Wq+dj+7.
    acc = None
    for di in range(3):
        for dj in range(3):
            off = di * Wq + dj + 7
            slab = mid_ref[off:off + M, :]
            d = jnp.dot(slab, w2_ref[di * 3 + dj],
                        preferred_element_type=jnp.float32)
            acc = d if acc is None else acc + d
    y = acc + b2_ref[...]

    # residual: identity / 1x1 stride-s downsample == centre-tap im2col columns
    ctr = xc[:, 4 * cin:5 * cin]
    if has_ds:
        ident = jnp.dot(ctr, wd_ref[...], preferred_element_type=jnp.float32)
        ident = ident + bd_ref[...]
    else:
        ident = ctr.astype(jnp.float32)
    y = jnp.maximum(y + ident, 0.0)

    if avg:   # fused global average pool + flatten (only valid positions)
        y = jnp.where(valid, y, 0.0)
        pooled = jnp.sum(y, axis=0, keepdims=True) * (1.0 / (Ho * Wo))
        o_ref[...] = pooled[None].astype(o_ref.dtype)
    else:
        o_ref[...] = y[None].astype(o_ref.dtype)


# ---------------------------------------------------------------------------
# JAX-level layout helpers (tiny activations -> cheap glue)
# ---------------------------------------------------------------------------

def _im2col(x, k, s, p):
    """(N,H,W,C) -> (N, Ho, Wo, k*k*C) patch tensor (tap-major, channel-minor)."""
    N, H, W, C = x.shape
    Ho = (H + 2 * p - k) // s + 1
    Wo = (W + 2 * p - k) // s + 1
    xp = jnp.pad(x, ((0, 0), (p, p), (p, p), (0, 0)))
    cols = [xp[:, di:di + s * (Ho - 1) + 1:s, dj:dj + s * (Wo - 1) + 1:s, :]
            for di in range(k) for dj in range(k)]
    return jnp.concatenate(cols, axis=-1), Ho, Wo


def _pad_last(x, target):
    if x.shape[-1] == target:
        return x
    return jnp.pad(x, [(0, 0)] * (x.ndim - 1) + [(0, target - x.shape[-1])])


# ---------------------------------------------------------------------------
# Layer wrappers
# ---------------------------------------------------------------------------

def stem_conv(x, w, b):
    """Conv2d(in, base, k=7, s=2, p=3, bias=False) + BN + ReLU as one matmul kernel."""
    N = x.shape[0]
    xc, Ho, Wo = _im2col(x, 7, 2, 3)
    M = Ho * Wo
    xc = _pad_last(xc.reshape(N, M, -1), w.shape[0])
    K, cout = w.shape
    out = pl.pallas_call(
        _matmul_bias_relu_kernel,
        grid=(N,),
        in_specs=[pl.BlockSpec((1, M, K), lambda n: (n, 0, 0)),
                  pl.BlockSpec((K, cout), lambda n: (0, 0)),
                  pl.BlockSpec((1, cout), lambda n: (0, 0))],
        out_specs=pl.BlockSpec((1, M, cout), lambda n: (n, 0, 0)),
        out_shape=jax.ShapeDtypeStruct((N, M, cout), jnp.bfloat16),
        compiler_params=_cparams(1),
    )(xc, w, b)
    return out.reshape(N, Ho, Wo, cout)


def maxpool_3x3_s2_p1(x):
    """nn.MaxPool2d(3, 2, 1).  Zero padding == -inf padding since x >= 0 post-ReLU."""
    N, H, W, C = x.shape
    Ho = (H - 1) // 2 + 1
    Wo = (W - 1) // 2 + 1
    xp = jnp.pad(x, ((0, 0), (1, 1), (1, 1), (0, 0)))
    views = [xp[:, di:di + 2 * (Ho - 1) + 1:2, dj:dj + 2 * (Wo - 1) + 1:2, :]
             .reshape(N, Ho * Wo, C)
             for di in range(3) for dj in range(3)]
    stack = jnp.stack(views, axis=0)                     # (9, N, Ho*Wo, C)
    out = pl.pallas_call(
        _maxpool_kernel,
        grid=(N,),
        in_specs=[pl.BlockSpec((9, 1, Ho * Wo, C), lambda n: (0, n, 0, 0))],
        out_specs=pl.BlockSpec((1, Ho * Wo, C), lambda n: (n, 0, 0)),
        out_shape=jax.ShapeDtypeStruct((N, Ho * Wo, C), x.dtype),
        compiler_params=_cparams(1),
    )(stack)
    return out.reshape(N, Ho, Wo, C)


def basic_block(x, bp, avg=False):
    """Whole BasicBlock (and optional fused global avg-pool) in a single pallas_call."""
    N, H, W, Cin = x.shape
    st = bp["stride"]
    P = bp["w1"].shape[-1]
    has_ds = "wd" in bp

    xc, Ho, Wo = _im2col(x, 3, st, 1)                    # (N, Ho, Wo, 9*Cin)
    Wq = _ru(Wo + 1, 8)                                  # wide row width (>=1 junk col)
    M = Ho * Wq
    xc = jnp.pad(xc, ((0, 0), (0, 0), (0, Wq - Wo), (0, 0))).reshape(N, M, -1)
    xc = _pad_last(xc, bp["w1"].shape[0])
    K = xc.shape[-1]

    in_specs = [
        pl.BlockSpec((1, M, K), lambda n: (n, 0, 0)),
        pl.BlockSpec((K, P), lambda n: (0, 0)),
        pl.BlockSpec((1, P), lambda n: (0, 0)),
        pl.BlockSpec((9, P, P), lambda n: (0, 0, 0)),
        pl.BlockSpec((1, P), lambda n: (0, 0)),
    ]
    args = [xc, bp["w1"], bp["b1"], bp["w2"], bp["b2"]]
    if has_ds:
        in_specs += [pl.BlockSpec(bp["wd"].shape, lambda n: (0, 0)),
                     pl.BlockSpec((1, P), lambda n: (0, 0))]
        args += [bp["wd"], bp["bd"]]

    mid_rows = _ru((Ho + 2) * Wq + 9, 8)                 # covers all tap slab reads
    M_out = 1 if avg else M
    out_dtype = jnp.float32 if avg else jnp.bfloat16

    out = pl.pallas_call(
        functools.partial(_block_kernel, Ho=Ho, Wo=Wo, Wq=Wq, cin=Cin,
                          has_ds=has_ds, avg=avg),
        grid=(N,),
        in_specs=in_specs,
        out_specs=pl.BlockSpec((1, M_out, P), lambda n: (n, 0, 0)),
        out_shape=jax.ShapeDtypeStruct((N, M_out, P), out_dtype),
        scratch_shapes=[pltpu.VMEM((mid_rows, P), jnp.bfloat16)],
        compiler_params=_cparams(1),
    )(*args)

    if avg:
        return out.reshape(N, P)                         # pooled + flattened features
    return out.reshape(N, Ho, Wq, P)[:, :, :Wo, :]       # drop wide junk columns


# ---------------------------------------------------------------------------
# Deterministic parameter construction (synthetic weights, shapes per __init__)
# ---------------------------------------------------------------------------

def _bn_fold(key, c, eps=1e-5):
    k1, k2, k3, k4 = jax.random.split(key, 4)
    gamma = 1.0 + 0.1 * jax.random.normal(k1, (c,), jnp.float32)
    beta = 0.1 * jax.random.normal(k2, (c,), jnp.float32)
    mean = 0.1 * jax.random.normal(k3, (c,), jnp.float32)
    var = jnp.abs(jax.random.normal(k4, (c,), jnp.float32)) + 0.5
    scale = gamma / jnp.sqrt(var + eps)
    bias = beta - mean * scale
    return scale, bias


def _conv_bn_params(kw, kb, k, cin, cout, fold_taps, pad_k=True):
    """Conv2d(bias=False) weight with eval-mode BN scale folded into the output
    columns; bias (1, cout) f32.  fold_taps -> (k*k*cin [pad8], cout) bf16,
    otherwise tap-major (k*k, cin, cout) bf16."""
    scale, bias = _bn_fold(kb, cout)
    w = jax.random.normal(kw, (k * k, cin, cout), jnp.float32)
    w = w * (1.0 / (k * k * cin)) ** 0.5
    w = w * scale[None, None, :]
    b = bias.reshape(1, cout).astype(jnp.float32)
    if fold_taps:
        w = w.reshape(k * k * cin, cout)
        if pad_k:
            w = jnp.pad(w, ((0, _ru(k * k * cin, 8) - k * k * cin), (0, 0)))
    return w.astype(jnp.bfloat16), b


def init_resnet_params(key, layer_sizes, in_planes, base_planes):
    keys = iter(jax.random.split(key, 64))
    params = {"in_planes": in_planes}
    # stem: Conv2d(in_planes, base_planes, k=7, s=2, p=3, bias=False) + BN + ReLU
    params["conv1"] = _conv_bn_params(next(keys), next(keys), 7, in_planes,
                                      base_planes, fold_taps=True)
    cur = base_planes
    planes_list = [base_planes, base_planes * 2, base_planes * 4, base_planes * 8]
    strides = [1, 2, 2, 2]
    layers = []
    for count, planes, stride in zip(layer_sizes, planes_list, strides):
        blocks = []
        for bidx in range(count):
            st = stride if bidx == 0 else 1
            bp = {"stride": st}
            # BasicBlock (expansion=1): conv3x3(st)+BN+ReLU, conv3x3+BN, add, ReLU
            bp["w1"], bp["b1"] = _conv_bn_params(next(keys), next(keys), 3, cur,
                                                 planes, fold_taps=True)
            bp["w2"], bp["b2"] = _conv_bn_params(next(keys), next(keys), 3, planes,
                                                 planes, fold_taps=False)
            if st != 1 or cur != planes:
                bp["wd"], bp["bd"] = _conv_bn_params(next(keys), next(keys), 1, cur,
                                                     planes, fold_taps=True,
                                                     pad_k=False)
            cur = planes
            blocks.append(bp)
        layers.append(blocks)
    params["layers"] = layers
    params["out_planes"] = cur
    return params


# ---------------------------------------------------------------------------
# Forward pass (mirrors ResNet.forward)
# ---------------------------------------------------------------------------

def resnet_forward(params, x_nchw):
    x = jnp.transpose(x_nchw, (0, 2, 3, 1)).astype(jnp.bfloat16)   # NCHW -> NHWC
    x = stem_conv(x, *params["conv1"])                             # conv1+norm1+relu
    x = maxpool_3x3_s2_p1(x)                                       # maxpool
    nblocks = sum(len(b) for b in params["layers"])
    i = 0
    for blocks in params["layers"]:                                # res_layer1..4
        for bp in blocks:
            i += 1
            # global avg-pool + flatten(1) fused into the last block's epilogue
            x = basic_block(x, bp, avg=(i == nblocks))
    return x.astype(jnp.float32)                                   # (N, out_planes)


if __name__ == "__main__":
    key = jax.random.PRNGKey(0)
    pkey, xkey = jax.random.split(key)

    layer_sizes = [1, 1, 1, 1]
    in_planes = 4          # e.g. RGBD input
    base_planes = 8

    params = init_resnet_params(pkey, layer_sizes, in_planes, base_planes)

    # PyTorch-style NCHW input
    x = jax.random.normal(xkey, (2, in_planes, 16, 16), jnp.float32)

    fwd = jax.jit(lambda inp: resnet_forward(params, inp))
    out = jax.block_until_ready(fwd(x))

    expected_out_planes = base_planes * 8      # BasicBlock expansion = 1
    assert out.shape == (2, expected_out_planes), out.shape
    assert out.dtype == jnp.float32
    print("KERNEL_OK")
</pallas_src>

<mosaic_0001>
module attributes {stable_mosaic.version = 11 : i64} {
  func.func @_matmul_bias_relu_kernel(%arg0: i32, %arg1: memref<1x64x200xbf16, #tpu.memory_space<vmem>>, %arg2: memref<200x8xbf16, #tpu.memory_space<vmem>>, %arg3: memref<1x8xf32, #tpu.memory_space<vmem>>, %arg4: memref<1x64x8xbf16, #tpu.memory_space<vmem>>) attributes {dimension_semantics = [#tpu.dimension_semantics<parallel>], iteration_bounds = array<i64: 2>, scalar_prefetch = 0 : i64, scratch_operands = 0 : i64, tpu.core_type = #tpu.core_type<tc>, window_params = [{transform_indices = @transform_0, window_bounds = array<i64: 1, 64, 200>}, {pipeline_mode = #tpu.pipeline_mode<synchronous>, transform_indices = @transform_1, window_bounds = array<i64: 200, 8>}, {pipeline_mode = #tpu.pipeline_mode<synchronous>, transform_indices = @transform_2, window_bounds = array<i64: 1, 8>}, {transform_indices = @transform_3, window_bounds = array<i64: 1, 64, 8>}]} {
    %c0 = arith.constant 0 : index
    %c0_0 = arith.constant 0 : index
    %c0_1 = arith.constant 0 : index
    %0 = vector.load %arg1[%c0, %c0_0, %c0_1] : memref<1x64x200xbf16, #tpu.memory_space<vmem>>, vector<1x64x200xbf16>
    %1 = vector.shape_cast %0 : vector<1x64x200xbf16> to vector<64x200xbf16>
    %c0_2 = arith.constant 0 : index
    %c0_3 = arith.constant 0 : index
    %2 = vector.load %arg2[%c0_2, %c0_3] : memref<200x8xbf16, #tpu.memory_space<vmem>>, vector<200x8xbf16>
    %cst = arith.constant dense<0.000000e+00> : vector<64x8xf32>
    %3 = tpu.matmul %1, %2, %cst {dimension_numbers = #tpu.dot_dimension_numbers<[1], [0], [0], [1], [0, 0, 1, 1], [], []>} : vector<64x200xbf16>, vector<200x8xbf16>, vector<64x8xf32> -> vector<64x8xf32>
    %c0_4 = arith.constant 0 : index
    %c0_5 = arith.constant 0 : index
    %4 = vector.load %arg3[%c0_4, %c0_5] : memref<1x8xf32, #tpu.memory_space<vmem>>, vector<1x8xf32>
    %5 = vector.broadcast %4 : vector<1x8xf32> to vector<64x8xf32>
    %6 = arith.addf %3, %5 : vector<64x8xf32>
    %cst_6 = arith.constant 0.000000e+00 : f32
    %7 = vector.broadcast %cst_6 : f32 to vector<64x8xf32>
    %8 = arith.maximumf %6, %7 : vector<64x8xf32>
    %9 = vector.shape_cast %8 : vector<64x8xf32> to vector<1x64x8xf32>
    %10 = arith.truncf %9 : vector<1x64x8xf32> to vector<1x64x8xbf16>
    %c0_7 = arith.constant 0 : index
    %c0_8 = arith.constant 0 : index
    %c0_9 = arith.constant 0 : index
    %11 = vector.load %arg4[%c0_7, %c0_8, %c0_9] : memref<1x64x8xbf16, #tpu.memory_space<vmem>>, vector<1x64x8xbf16>
    tpu.vector_store %arg4[%c0_7, %c0_8, %c0_9], %10 {strides = array<i32>} : memref<1x64x8xbf16, #tpu.memory_space<vmem>>, vector<1x64x8xbf16>,
    return
  }
  func.func @transform_0(%arg0: i32) -> (i32, i32, i32) {
    %c0_i32 = arith.constant 0 : i32
    %c0_i32_0 = arith.constant 0 : i32
    %c0_i32_1 = arith.constant 0 : i32
    return %arg0, %c0_i32, %c0_i32_0 : i32, i32, i32
  }
  func.func @transform_1(%arg0: i32) -> (i32, i32) {
    %c0_i32 = arith.constant 0 : i32
    %c0_i32_0 = arith.constant 0 : i32
    %c0_i32_1 = arith.constant 0 : i32
    return %c0_i32, %c0_i32_0 : i32, i32
  }
  func.func @transform_2(%arg0: i32) -> (i32, i32) {
    %c0_i32 = arith.constant 0 : i32
    %c0_i32_0 = arith.constant 0 : i32
    %c0_i32_1 = arith.constant 0 : i32
    return %c0_i32, %c0_i32_0 : i32, i32
  }
  func.func @transform_3(%arg0: i32) -> (i32, i32, i32) {
    %c0_i32 = arith.constant 0 : i32
    %c0_i32_0 = arith.constant 0 : i32
    %c0_i32_1 = arith.constant 0 : i32
    return %arg0, %c0_i32, %c0_i32_0 : i32, i32, i32
  }
}

module attributes {stable_mosaic.version = 11 : i64} {
  func.func @_maxpool_kernel(%arg0: i32, %arg1: memref<9x1x16x8xbf16, #tpu.memory_space<vmem>>, %arg2: memref<1x16x8xbf16, #tpu.memory_space<vmem>>) attributes {dimension_semantics = [#tpu.dimension_semantics<parallel>], iteration_bounds = array<i64: 2>, scalar_prefetch = 0 : i64, scratch_operands = 0 : i64, tpu.core_type = #tpu.core_type<tc>, window_params = [{transform_indices = @transform_0, window_bounds = array<i64: 9, 1, 16, 8>}, {transform_indices = @transform_1, window_bounds = array<i64: 1, 16, 8>}]} {
    %c0 = arith.constant 0 : index
    %c0_0 = arith.constant 0 : index
    %c0_1 = arith.constant 0 : index
    %c0_2 = arith.constant 0 : index
    %0 = vector.load %arg1[%c0, %c0_0, %c0_1, %c0_2] : memref<9x1x16x8xbf16, #tpu.memory_space<vmem>>, vector<1x1x16x8xbf16>
    %1 = vector.shape_cast %0 : vector<1x1x16x8xbf16> to vector<1x16x8xbf16>
    %c1 = arith.constant 1 : index
    %c0_3 = arith.constant 0 : index
    %c0_4 = arith.constant 0 : index
    %c0_5 = arith.constant 0 : index
    %2 = vector.load %arg1[%c1, %c0_3, %c0_4, %c0_5] : memref<9x1x16x8xbf16, #tpu.memory_space<vmem>>, vector<1x1x16x8xbf16>
    %3 = vector.shape_cast %2 : vector<1x1x16x8xbf16> to vector<1x16x8xbf16>
    %4 = arith.maximumf %1, %3 : vector<1x16x8xbf16>
    %c2 = arith.constant 2 : index
    %c0_6 = arith.constant 0 : index
    %c0_7 = arith.constant 0 : index
    %c0_8 = arith.constant 0 : index
    %5 = vector.load %arg1[%c2, %c0_6, %c0_7, %c0_8] : memref<9x1x16x8xbf16, #tpu.memory_space<vmem>>, vector<1x1x16x8xbf16>
    %6 = vector.shape_cast %5 : vector<1x1x16x8xbf16> to vector<1x16x8xbf16>
    %7 = arith.maximumf %4, %6 : vector<1x16x8xbf16>
    %c3 = arith.constant 3 : index
    %c0_9 = arith.constant 0 : index
    %c0_10 = arith.constant 0 : index
    %c0_11 = arith.constant 0 : index
    %8 = vector.load %arg1[%c3, %c0_9, %c0_10, %c0_11] : memref<9x1x16x8xbf16, #tpu.memory_space<vmem>>, vector<1x1x16x8xbf16>
    %9 = vector.shape_cast %8 : vector<1x1x16x8xbf16> to vector<1x16x8xbf16>
    %10 = arith.maximumf %7, %9 : vector<1x16x8xbf16>
    %c4 = arith.constant 4 : index
    %c0_12 = arith.constant 0 : index
    %c0_13 = arith.constant 0 : index
    %c0_14 = arith.constant 0 : index
    %11 = vector.load %arg1[%c4, %c0_12, %c0_13, %c0_14] : memref<9x1x16x8xbf16, #tpu.memory_space<vmem>>, vector<1x1x16x8xbf16>
    %12 = vector.shape_cast %11 : vector<1x1x16x8xbf16> to vector<1x16x8xbf16>
    %13 = arith.maximumf %10, %12 : vector<1x16x8xbf16>
    %c5 = arith.constant 5 : index
    %c0_15 = arith.constant 0 : index
    %c0_16 = arith.constant 0 : index
    %c0_17 = arith.constant 0 : index
    %14 = vector.load %arg1[%c5, %c0_15, %c0_16, %c0_17] : memref<9x1x16x8xbf16, #tpu.memory_space<vmem>>, vector<1x1x16x8xbf16>
    %15 = vector.shape_cast %14 : vector<1x1x16x8xbf16> to vector<1x16x8xbf16>
    %16 = arith.maximumf %13, %15 : vector<1x16x8xbf16>
    %c6 = arith.constant 6 : index
    %c0_18 = arith.constant 0 : index
    %c0_19 = arith.constant 0 : index
    %c0_20 = arith.constant 0 : index
    %17 = vector.load %arg1[%c6, %c0_18, %c0_19, %c0_20] : memref<9x1x16x8xbf16, #tpu.memory_space<vmem>>, vector<1x1x16x8xbf16>
    %18 = vector.shape_cast %17 : vector<1x1x16x8xbf16> to vector<1x16x8xbf16>
    %19 = arith.maximumf %16, %18 : vector<1x16x8xbf16>
    %c7 = arith.constant 7 : index
    %c0_21 = arith.constant 0 : index
    %c0_22 = arith.constant 0 : index
    %c0_23 = arith.constant 0 : index
    %20 = vector.load %arg1[%c7, %c0_21, %c0_22, %c0_23] : memref<9x1x16x8xbf16, #tpu.memory_space<vmem>>, vector<1x1x16x8xbf16>
    %21 = vector.shape_cast %20 : vector<1x1x16x8xbf16> to vector<1x16x8xbf16>
    %22 = arith.maximumf %19, %21 : vector<1x16x8xbf16>
    %c8 = arith.constant 8 : index
    %c0_24 = arith.constant 0 : index
    %c0_25 = arith.constant 0 : index
    %c0_26 = arith.constant 0 : index
    %23 = vector.load %arg1[%c8, %c0_24, %c0_25, %c0_26] : memref<9x1x16x8xbf16, #tpu.memory_space<vmem>>, vector<1x1x16x8xbf16>
    %24 = vector.shape_cast %23 : vector<1x1x16x8xbf16> to vector<1x16x8xbf16>
    %25 = arith.maximumf %22, %24 : vector<1x16x8xbf16>
    %c0_27 = arith.constant 0 : index
    %c0_28 = arith.constant 0 : index
    %c0_29 = arith.constant 0 : index
    %26 = vector.load %arg2[%c0_27, %c0_28, %c0_29] : memref<1x16x8xbf16, #tpu.memory_space<vmem>>, vector<1x16x8xbf16>
    tpu.vector_store %arg2[%c0_27, %c0_28, %c0_29], %25 {strides = array<i32>} : memref<1x16x8xbf16, #tpu.memory_space<vmem>>, vector<1x16x8xbf16>,
    return
  }
  func.func @transform_0(%arg0: i32) -> (i32, i32, i32, i32) {
    %c0_i32 = arith.constant 0 : i32
    %c0_i32_0 = arith.constant 0 : i32
    %c0_i32_1 = arith.constant 0 : i32
    %c0_i32_2 = arith.constant 0 : i32
    return %c0_i32, %arg0, %c0_i32_0, %c0_i32_1 : i32, i32, i32, i32
  }
  func.func @transform_1(%arg0: i32) -> (i32, i32, i32) {
    %c0_i32 = arith.constant 0 : i32
    %c0_i32_0 = arith.constant 0 : i32
    %c0_i32_1 = arith.constant 0 : i32
    return %arg0, %c0_i32, %c0_i32_0 : i32, i32, i32
  }
}

module attributes {stable_mosaic.version = 11 : i64} {
  func.func @_block_kernel(%arg0: i32, %arg1: memref<1x32x72xbf16, #tpu.memory_space<vmem>>, %arg2: memref<72x8xbf16, #tpu.memory_space<vmem>>, %arg3: memref<1x8xf32, #tpu.memory_space<vmem>>, %arg4: memref<9x8x8xbf16, #tpu.memory_space<vmem>>, %arg5: memref<1x8xf32, #tpu.memory_space<vmem>>, %arg6: memref<1x32x8xbf16, #tpu.memory_space<vmem>>, %arg7: memref<64x8xbf16, #tpu.memory_space<vmem>>) attributes {dimension_semantics = [#tpu.dimension_semantics<parallel>], iteration_bounds = array<i64: 2>, scalar_prefetch = 0 : i64, scratch_operands = 1 : i64, tpu.core_type = #tpu.core_type<tc>, window_params = [{transform_indices = @transform_0, window_bounds = array<i64: 1, 32, 72>}, {pipeline_mode = #tpu.pipeline_mode<synchronous>, transform_indices = @transform_1, window_bounds = array<i64: 72, 8>}, {pipeline_mode = #tpu.pipeline_mode<synchronous>, transform_indices = @transform_2, window_bounds = array<i64: 1, 8>}, {pipeline_mode = #tpu.pipeline_mode<synchronous>, transform_indices = @transform_3, window_bounds = array<i64: 9, 8, 8>}, {pipeline_mode = #tpu.pipeline_mode<synchronous>, transform_indices = @transform_4, window_bounds = array<i64: 1, 8>}, {transform_indices = @transform_5, window_bounds = array<i64: 1, 32, 8>}]} {
    %c0 = arith.constant 0 : index
    %c0_0 = arith.constant 0 : index
    %c0_1 = arith.constant 0 : index
    %0 = vector.load %arg1[%c0, %c0_0, %c0_1] : memref<1x32x72xbf16, #tpu.memory_space<vmem>>, vector<1x32x72xbf16>
    %1 = vector.shape_cast %0 : vector<1x32x72xbf16> to vector<32x72xbf16>
    %c0_2 = arith.constant 0 : index
    %c0_3 = arith.constant 0 : index
    %2 = vector.load %arg2[%c0_2, %c0_3] : memref<72x8xbf16, #tpu.memory_space<vmem>>, vector<72x8xbf16>
    %cst = arith.constant dense<0.000000e+00> : vector<32x8xf32>
    %3 = tpu.matmul %1, %2, %cst {dimension_numbers = #tpu.dot_dimension_numbers<[1], [0], [0], [1], [0, 0, 1, 1], [], []>} : vector<32x72xbf16>, vector<72x8xbf16>, vector<32x8xf32> -> vector<32x8xf32>
    %c0_4 = arith.constant 0 : index
    %c0_5 = arith.constant 0 : index
    %4 = vector.load %arg3[%c0_4, %c0_5] : memref<1x8xf32, #tpu.memory_space<vmem>>, vector<1x8xf32>
    %5 = vector.broadcast %4 : vector<1x8xf32> to vector<32x8xf32>
    %6 = arith.addf %3, %5 : vector<32x8xf32>
    %cst_6 = arith.constant 0.000000e+00 : f32
    %7 = vector.broadcast %cst_6 : f32 to vector<32x8xf32>
    %8 = arith.maximumf %6, %7 : vector<32x8xf32>
    %9 = tpu.iota {dimensions = array<i32: 0>} : vector<32x1xi32>
    %c8_i32 = arith.constant 8 : i32
    %c0_i32 = arith.constant 0 : i32
    %10 = arith.cmpi eq, %c8_i32, %c0_i32 : i32
    %c1_i32 = arith.constant 1 : i32
    %11 = arith.select %10, %c1_i32, %c8_i32 : i32
    %12 = vector.broadcast %11 : i32 to vector<32x1xi32>
    %13 = arith.remsi %9, %12 : vector<32x1xi32>
    %c0_i32_7 = arith.constant 0 : i32
    %14 = vector.broadcast %c0_i32_7 : i32 to vector<32x1xi32>
    %15 = arith.cmpi ne, %13, %14 : vector<32x1xi32>
    %c0_i32_8 = arith.constant 0 : i32
    %16 = vector.broadcast %c0_i32_8 : i32 to vector<32x1xi32>
    %17 = arith.cmpi slt, %13, %16 : vector<32x1xi32>
    %c0_i32_9 = arith.constant 0 : i32
    %18 = arith.cmpi slt, %11, %c0_i32_9 : i32
    %19 = vector.broadcast %18 : i1 to vector<32x1xi1>
    %20 = vector.broadcast %19 : vector<32x1xi1> to vector<32x1xi1>
    %21 = arith.xori %17, %20 : vector<32x1xi1>
    %22 = arith.andi %21, %15 : vector<32x1xi1>
    %23 = vector.broadcast %11 : i32 to vector<32x1xi32>
    %24 = arith.addi %13, %23 : vector<32x1xi32>
    %25 = arith.select %22, %24, %13 : vector<32x1xi1>, vector<32x1xi32>
    %c4_i32 = arith.constant 4 : i32
    %26 = vector.broadcast %c4_i32 : i32 to vector<32x1xi32>
    %27 = arith.cmpi slt, %25, %26 : vector<32x1xi32>
    %cst_10 = arith.constant 0.000000e+00 : f32
    %28 = vector.shape_cast %27 : vector<32x1xi1> to vector<32x1xi1>
    %29 = vector.broadcast %28 : vector<32x1xi1> to vector<32x8xi1>
    %30 = vector.broadcast %cst_10 : f32 to vector<32x8xf32>
    %31 = arith.select %29, %8, %30 : vector<32x8xi1>, vector<32x8xf32>
    %cst_11 = arith.constant 0.000000e+00 : bf16
    %32 = vector.broadcast %cst_11 : bf16 to vector<64x8xbf16>
    %c0_12 = arith.constant 0 : index
    %c0_13 = arith.constant 0 : index
    %33 = vector.load %arg7[%c0_12, %c0_13] : memref<64x8xbf16, #tpu.memory_space<vmem>>, vector<64x8xbf16>
    tpu.vector_store %arg7[%c0_12, %c0_13], %32 {strides = array<i32>} : memref<64x8xbf16, #tpu.memory_space<vmem>>, vector<64x8xbf16>,
    %34 = arith.truncf %31 : vector<32x8xf32> to vector<32x8xbf16>
    %c16 = arith.constant 16 : index
    %c0_14 = arith.constant 0 : index
    %35 = vector.load %arg7[%c16, %c0_14] : memref<64x8xbf16, #tpu.memory_space<vmem>>, vector<32x8xbf16>
    tpu.vector_store %arg7[%c16, %c0_14], %34 {strides = array<i32>} : memref<64x8xbf16, #tpu.memory_space<vmem>>, vector<32x8xbf16>,
    %c7 = arith.constant 7 : index
    %c0_15 = arith.constant 0 : index
    %36 = vector.load %arg7[%c7, %c0_15] : memref<64x8xbf16, #tpu.memory_space<vmem>>, vector<32x8xbf16>
    %c0_16 = arith.constant 0 : index
    %c0_17 = arith.constant 0 : index
    %c0_18 = arith.constant 0 : index
    %37 = vector.load %arg4[%c0_16, %c0_17, %c0_18] : memref<9x8x8xbf16, #tpu.memory_space<vmem>>, vector<1x8x8xbf16>
    %38 = vector.shape_cast %37 : vector<1x8x8xbf16> to vector<8x8xbf16>
    %cst_19 = arith.constant dense<0.000000e+00> : vector<32x8xf32>
    %39 = tpu.matmul %36, %38, %cst_19 {dimension_numbers = #tpu.dot_dimension_numbers<[1], [0], [0], [1], [0, 0, 1, 1], [], []>} : vector<32x8xbf16>, vector<8x8xbf16>, vector<32x8xf32> -> vector<32x8xf32>
    %c8 = arith.constant 8 : index
    %c0_20 = arith.constant 0 : index
    %40 = vector.load %arg7[%c8, %c0_20] : memref<64x8xbf16, #tpu.memory_space<vmem>>, vector<32x8xbf16>
    %c1 = arith.constant 1 : index
    %c0_21 = arith.constant 0 : index
    %c0_22 = arith.constant 0 : index
    %41 = vector.load %arg4[%c1, %c0_21, %c0_22] : memref<9x8x8xbf16, #tpu.memory_space<vmem>>, vector<1x8x8xbf16>
    %42 = vector.shape_cast %41 : vector<1x8x8xbf16> to vector<8x8xbf16>
    %cst_23 = arith.constant dense<0.000000e+00> : vector<32x8xf32>
    %43 = tpu.matmul %40, %42, %cst_23 {dimension_numbers = #tpu.dot_dimension_numbers<[1], [0], [0], [1], [0, 0, 1, 1], [], []>} : vector<32x8xbf16>, vector<8x8xbf16>, vector<32x8xf32> -> vector<32x8xf32>
    %44 = arith.addf %39, %43 : vector<32x8xf32>
    %c9 = arith.constant 9 : index
    %c0_24 = arith.constant 0 : index
    %45 = vector.load %arg7[%c9, %c0_24] : memref<64x8xbf16, #tpu.memory_space<vmem>>, vector<32x8xbf16>
    %c2 = arith.constant 2 : index
    %c0_25 = arith.constant 0 : index
    %c0_26 = arith.constant 0 : index
    %46 = vector.load %arg4[%c2, %c0_25, %c0_26] : memref<9x8x8xbf16, #tpu.memory_space<vmem>>, vector<1x8x8xbf16>
    %47 = vector.shape_cast %46 : vector<1x8x8xbf16> to vector<8x8xbf16>
    %cst_27 = arith.constant dense<0.000000e+00> : vector<32x8xf32>
    %48 = tpu.matmul %45, %47, %cst_27 {dimension_numbers = #tpu.dot_dimension_numbers<[1], [0], [0], [1], [0, 0, 1, 1], [], []>} : vector<32x8xbf16>, vector<8x8xbf16>, vector<32x8xf32> -> vector<32x8xf32>
    %49 = arith.addf %44, %48 : vector<32x8xf32>
    %c15 = arith.constant 15 : index
    %c0_28 = arith.constant 0 : index
    %50 = vector.load %arg7[%c15, %c0_28] : memref<64x8xbf16, #tpu.memory_space<vmem>>, vector<32x8xbf16>
    %c3 = arith.constant 3 : index
    %c0_29 = arith.constant 0 : index
    %c0_30 = arith.constant 0 : index
    %51 = vector.load %arg4[%c3, %c0_29, %c0_30] : memref<9x8x8xbf16, #tpu.memory_space<vmem>>, vector<1x8x8xbf16>
    %52 = vector.shape_cast %51 : vector<1x8x8xbf16> to vector<8x8xbf16>
    %cst_31 = arith.constant dense<0.000000e+00> : vector<32x8xf32>
    %53 = tpu.matmul %50, %52, %cst_31 {dimension_numbers = #tpu.dot_dimension_numbers<[1], [0], [0], [1], [0, 0, 1, 1], [], []>} : vector<32x8xbf16>, vector<8x8xbf16>, vector<32x8xf32> -> vector<32x8xf32>
    %54 = arith.addf %49, %53 : vector<32x8xf32>
    %c16_32 = arith.constant 16 : index
    %c0_33 = arith.constant 0 : index
    %55 = vector.load %arg7[%c16_32, %c0_33] : memref<64x8xbf16, #tpu.memory_space<vmem>>, vector<32x8xbf16>
    %c4 = arith.constant 4 : index
    %c0_34 = arith.constant 0 : index
    %c0_35 = arith.constant 0 : index
    %56 = vector.load %arg4[%c4, %c0_34, %c0_35] : memref<9x8x8xbf16, #tpu.memory_space<vmem>>, vector<1x8x8xbf16>
    %57 = vector.shape_cast %56 : vector<1x8x8xbf16> to vector<8x8xbf16>
    %cst_36 = arith.constant dense<0.000000e+00> : vector<32x8xf32>
    %58 = tpu.matmul %55, %57, %cst_36 {dimension_numbers = #tpu.dot_dimension_numbers<[1], [0], [0], [1], [0, 0, 1, 1], [], []>} : vector<32x8xbf16>, vector<8x8xbf16>, vector<32x8xf32> -> vector<32x8xf32>
    %59 = arith.addf %54, %58 : vector<32x8xf32>
    %c17 = arith.constant 17 : index
    %c0_37 = arith.constant 0 : index
    %60 = vector.load %arg7[%c17, %c0_37] : memref<64x8xbf16, #tpu.memory_space<vmem>>, vector<32x8xbf16>
    %c5 = arith.constant 5 : index
    %c0_38 = arith.constant 0 : index
    %c0_39 = arith.constant 0 : index
    %61 = vector.load %arg4[%c5, %c0_38, %c0_39] : memref<9x8x8xbf16, #tpu.memory_space<vmem>>, vector<1x8x8xbf16>
    %62 = vector.shape_cast %61 : vector<1x8x8xbf16> to vector<8x8xbf16>
    %cst_40 = arith.constant dense<0.000000e+00> : vector<32x8xf32>
    %63 = tpu.matmul %60, %62, %cst_40 {dimension_numbers = #tpu.dot_dimension_numbers<[1], [0], [0], [1], [0, 0, 1, 1], [], []>} : vector<32x8xbf16>, vector<8x8xbf16>, vector<32x8xf32> -> vector<32x8xf32>
    %64 = arith.addf %59, %63 : vector<32x8xf32>
    %c23 = arith.constant 23 : index
    %c0_41 = arith.constant 0 : index
    %65 = vector.load %arg7[%c23, %c0_41] : memref<64x8xbf16, #tpu.memory_space<vmem>>, vector<32x8xbf16>
    %c6 = arith.constant 6 : index
    %c0_42 = arith.constant 0 : index
    %c0_43 = arith.constant 0 : index
    %66 = vector.load %arg4[%c6, %c0_42, %c0_43] : memref<9x8x8xbf16, #tpu.memory_space<vmem>>, vector<1x8x8xbf16>
    %67 = vector.shape_cast %66 : vector<1x8x8xbf16> to vector<8x8xbf16>
    %cst_44 = arith.constant dense<0.000000e+00> : vector<32x8xf32>
    %68 = tpu.matmul %65, %67, %cst_44 {dimension_numbers = #tpu.dot_dimension_numbers<[1], [0], [0], [1], [0, 0, 1, 1], [], []>} : vector<32x8xbf16>, vector<8x8xbf16>, vector<32x8xf32> -> vector<32x8xf32>
    %69 = arith.addf %64, %68 : vector<32x8xf32>
    %c24 = arith.constant 24 : index
    %c0_45 = arith.constant 0 : index
    %70 = vector.load %arg7[%c24, %c0_45] : memref<64x8xbf16, #tpu.memory_space<vmem>>, vector<32x8xbf16>
    %c7_46 = arith.constant 7 : index
    %c0_47 = arith.constant 0 : index
    %c0_48 = arith.constant 0 : index
    %71 = vector.load %arg4[%c7_46, %c0_47, %c0_48] : memref<9x8x8xbf16, #tpu.memory_space<vmem>>, vector<1x8x8xbf16>
    %72 = vector.shape_cast %71 : vector<1x8x8xbf16> to vector<8x8xbf16>
    %cst_49 = arith.constant dense<0.000000e+00> : vector<32x8xf32>
    %73 = tpu.matmul %70, %72, %cst_49 {dimension_numbers = #tpu.dot_dimension_numbers<[1], [0], [0], [1], [0, 0, 1, 1], [], []>} : vector<32x8xbf16>, vector<8x8xbf16>, vector<32x8xf32> -> vector<32x8xf32>
    %74 = arith.addf %69, %73 : vector<32x8xf32>
    %c25 = arith.constant 25 : index
    %c0_50 = arith.constant 0 : index
    %75 = vector.load %arg7[%c25, %c0_50] : memref<64x8xbf16, #tpu.memory_space<vmem>>, vector<32x8xbf16>
    %c8_51 = arith.constant 8 : index
    %c0_52 = arith.constant 0 : index
    %c0_53 = arith.constant 0 : index
    %76 = vector.load %arg4[%c8_51, %c0_52, %c0_53] : memref<9x8x8xbf16, #tpu.memory_space<vmem>>, vector<1x8x8xbf16>
    %77 = vector.shape_cast %76 : vector<1x8x8xbf16> to vector<8x8xbf16>
    %cst_54 = arith.constant dense<0.000000e+00> : vector<32x8xf32>
    %78 = tpu.matmul %75, %77, %cst_54 {dimension_numbers = #tpu.dot_dimension_numbers<[1], [0], [0], [1], [0, 0, 1, 1], [], []>} : vector<32x8xbf16>, vector<8x8xbf16>, vector<32x8xf32> -> vector<32x8xf32>
    %79 = arith.addf %74, %78 : vector<32x8xf32>
    %c0_55 = arith.constant 0 : index
    %c0_56 = arith.constant 0 : index
    %80 = vector.load %arg5[%c0_55, %c0_56] : memref<1x8xf32, #tpu.memory_space<vmem>>, vector<1x8xf32>
    %81 = vector.broadcast %80 : vector<1x8xf32> to vector<32x8xf32>
    %82 = arith.addf %79, %81 : vector<32x8xf32>
    %83 = vector.extract_strided_slice %1 {offsets = [0, 32], sizes = [32, 8], strides = [1, 1]} : vector<32x72xbf16> to vector<32x8xbf16>
    %84 = arith.extf %83 : vector<32x8xbf16> to vector<32x8xf32>
    %85 = arith.addf %82, %84 : vector<32x8xf32>
    %cst_57 = arith.constant 0.000000e+00 : f32
    %86 = vector.broadcast %cst_57 : f32 to vector<32x8xf32>
    %87 = arith.maximumf %85, %86 : vector<32x8xf32>
    %88 = vector.shape_cast %87 : vector<32x8xf32> to vector<1x32x8xf32>
    %89 = arith.truncf %88 : vector<1x32x8xf32> to vector<1x32x8xbf16>
    %c0_58 = arith.constant 0 : index
    %c0_59 = arith.constant 0 : index
    %c0_60 = arith.constant 0 : index
    %90 = vector.load %arg6[%c0_58, %c0_59, %c0_60] : memref<1x32x8xbf16, #tpu.memory_space<vmem>>, vector<1x32x8xbf16>
    tpu.vector_store %arg6[%c0_58, %c0_59, %c0_60], %89 {strides = array<i32>} : memref<1x32x8xbf16, #tpu.memory_space<vmem>>, vector<1x32x8xbf16>,
    return
  }
  func.func @transform_0(%arg0: i32) -> (i32, i32, i32) {
    %c0_i32 = arith.constant 0 : i32
    %c0_i32_0 = arith.constant 0 : i32
    %c0_i32_1 = arith.constant 0 : i32
    return %arg0, %c0_i32, %c0_i32_0 : i32, i32, i32
  }
  func.func @transform_1(%arg0: i32) -> (i32, i32) {
    %c0_i32 = arith.constant 0 : i32
    %c0_i32_0 = arith.constant 0 : i32
    %c0_i32_1 = arith.constant 0 : i32
    return %c0_i32, %c0_i32_0 : i32, i32
  }
  func.func @transform_2(%arg0: i32) -> (i32, i32) {
    %c0_i32 = arith.constant 0 : i32
    %c0_i32_0 = arith.constant 0 : i32
    %c0_i32_1 = arith.constant 0 : i32
    return %c0_i32, %c0_i32_0 : i32, i32
  }
  func.func @transform_3(%arg0: i32) -> (i32, i32, i32) {
    %c0_i32 = arith.constant 0 : i32
    %c0_i32_0 = arith.constant 0 : i32
    %c0_i32_1 = arith.constant 0 : i32
    %c0_i32_2 = arith.constant 0 : i32
    return %c0_i32, %c0_i32_0, %c0_i32_1 : i32, i32, i32
  }
  func.func @transform_4(%arg0: i32) -> (i32, i32) {
    %c0_i32 = arith.constant 0 : i32
    %c0_i32_0 = arith.constant 0 : i32
    %c0_i32_1 = arith.constant 0 : i32
    return %c0_i32, %c0_i32_0 : i32, i32
  }
  func.func @transform_5(%arg0: i32) -> (i32, i32, i32) {
    %c0_i32 = arith.constant 0 : i32
    %c0_i32_0 = arith.constant 0 : i32
    %c0_i32_1 = arith.constant 0 : i32
    return %arg0, %c0_i32, %c0_i32_0 : i32, i32, i32
  }
}

module attributes {stable_mosaic.version = 11 : i64} {
  func.func @_block_kernel(%arg0: i32, %arg1: memref<1x16x72xbf16, #tpu.memory_space<vmem>>, %arg2: memref<72x16xbf16, #tpu.memory_space<vmem>>, %arg3: memref<1x16xf32, #tpu.memory_space<vmem>>, %arg4: memref<9x16x16xbf16, #tpu.memory_space<vmem>>, %arg5: memref<1x16xf32, #tpu.memory_space<vmem>>, %arg6: memref<8x16xbf16, #tpu.memory_space<vmem>>, %arg7: memref<1x16xf32, #tpu.memory_space<vmem>>, %arg8: memref<1x16x16xbf16, #tpu.memory_space<vmem>>, %arg9: memref<48x16xbf16, #tpu.memory_space<vmem>>) attributes {dimension_semantics = [#tpu.dimension_semantics<parallel>], iteration_bounds = array<i64: 2>, scalar_prefetch = 0 : i64, scratch_operands = 1 : i64, tpu.core_type = #tpu.core_type<tc>, window_params = [{transform_indices = @transform_0, window_bounds = array<i64: 1, 16, 72>}, {pipeline_mode = #tpu.pipeline_mode<synchronous>, transform_indices = @transform_1, window_bounds = array<i64: 72, 16>}, {pipeline_mode = #tpu.pipeline_mode<synchronous>, transform_indices = @transform_2, window_bounds = array<i64: 1, 16>}, {pipeline_mode = #tpu.pipeline_mode<synchronous>, transform_indices = @transform_3, window_bounds = array<i64: 9, 16, 16>}, {pipeline_mode = #tpu.pipeline_mode<synchronous>, transform_indices = @transform_4, window_bounds = array<i64: 1, 16>}, {pipeline_mode = #tpu.pipeline_mode<synchronous>, transform_indices = @transform_5, window_bounds = array<i64: 8, 16>}, {pipeline_mode = #tpu.pipeline_mode<synchronous>, transform_indices = @transform_6, window_bounds = array<i64: 1, 16>}, {transform_indices = @transform_7, window_bounds = array<i64: 1, 16, 16>}]} {
    %c0 = arith.constant 0 : index
    %c0_0 = arith.constant 0 : index
    %c0_1 = arith.constant 0 : index
    %0 = vector.load %arg1[%c0, %c0_0, %c0_1] : memref<1x16x72xbf16, #tpu.memory_space<vmem>>, vector<1x16x72xbf16>
    %1 = vector.shape_cast %0 : vector<1x16x72xbf16> to vector<16x72xbf16>
    %c0_2 = arith.constant 0 : index
    %c0_3 = arith.constant 0 : index
    %2 = vector.load %arg2[%c0_2, %c0_3] : memref<72x16xbf16, #tpu.memory_space<vmem>>, vector<72x16xbf16>
    %cst = arith.constant dense<0.000000e+00> : vector<16x16xf32>
    %3 = tpu.matmul %1, %2, %cst {dimension_numbers = #tpu.dot_dimension_numbers<[1], [0], [0], [1], [0, 0, 1, 1], [], []>} : vector<16x72xbf16>, vector<72x16xbf16>, vector<16x16xf32> -> vector<16x16xf32>
    %c0_4 = arith.constant 0 : index
    %c0_5 = arith.constant 0 : index
    %4 = vector.load %arg3[%c0_4, %c0_5] : memref<1x16xf32, #tpu.memory_space<vmem>>, vector<1x16xf32>
    %5 = vector.broadcast %4 : vector<1x16xf32> to vector<16x16xf32>
    %6 = arith.addf %3, %5 : vector<16x16xf32>
    %cst_6 = arith.constant 0.000000e+00 : f32
    %7 = vector.broadcast %cst_6 : f32 to vector<16x16xf32>
    %8 = arith.maximumf %6, %7 : vector<16x16xf32>
    %9 = tpu.iota {dimensions = array<i32: 0>} : vector<16x1xi32>
    %c8_i32 = arith.constant 8 : i32
    %c0_i32 = arith.constant 0 : i32
    %10 = arith.cmpi eq, %c8_i32, %c0_i32 : i32
    %c1_i32 = arith.constant 1 : i32
    %11 = arith.select %10, %c1_i32, %c8_i32 : i32
    %12 = vector.broadcast %11 : i32 to vector<16x1xi32>
    %13 = arith.remsi %9, %12 : vector<16x1xi32>
    %c0_i32_7 = arith.constant 0 : i32
    %14 = vector.broadcast %c0_i32_7 : i32 to vector<16x1xi32>
    %15 = arith.cmpi ne, %13, %14 : vector<16x1xi32>
    %c0_i32_8 = arith.constant 0 : i32
    %16 = vector.broadcast %c0_i32_8 : i32 to vector<16x1xi32>
    %17 = arith.cmpi slt, %13, %16 : vector<16x1xi32>
    %c0_i32_9 = arith.constant 0 : i32
    %18 = arith.cmpi slt, %11, %c0_i32_9 : i32
    %19 = vector.broadcast %18 : i1 to vector<16x1xi1>
    %20 = vector.broadcast %19 : vector<16x1xi1> to vector<16x1xi1>
    %21 = arith.xori %17, %20 : vector<16x1xi1>
    %22 = arith.andi %21, %15 : vector<16x1xi1>
    %23 = vector.broadcast %11 : i32 to vector<16x1xi32>
    %24 = arith.addi %13, %23 : vector<16x1xi32>
    %25 = arith.select %22, %24, %13 : vector<16x1xi1>, vector<16x1xi32>
    %c2_i32 = arith.constant 2 : i32
    %26 = vector.broadcast %c2_i32 : i32 to vector<16x1xi32>
    %27 = arith.cmpi slt, %25, %26 : vector<16x1xi32>
    %cst_10 = arith.constant 0.000000e+00 : f32
    %28 = vector.shape_cast %27 : vector<16x1xi1> to vector<16x1xi1>
    %29 = vector.broadcast %28 : vector<16x1xi1> to vector<16x16xi1>
    %30 = vector.broadcast %cst_10 : f32 to vector<16x16xf32>
    %31 = arith.select %29, %8, %30 : vector<16x16xi1>, vector<16x16xf32>
    %cst_11 = arith.constant 0.000000e+00 : bf16
    %32 = vector.broadcast %cst_11 : bf16 to vector<48x16xbf16>
    %c0_12 = arith.constant 0 : index
    %c0_13 = arith.constant 0 : index
    %33 = vector.load %arg9[%c0_12, %c0_13] : memref<48x16xbf16, #tpu.memory_space<vmem>>, vector<48x16xbf16>
    tpu.vector_store %arg9[%c0_12, %c0_13], %32 {strides = array<i32>} : memref<48x16xbf16, #tpu.memory_space<vmem>>, vector<48x16xbf16>,
    %34 = arith.truncf %31 : vector<16x16xf32> to vector<16x16xbf16>
    %c16 = arith.constant 16 : index
    %c0_14 = arith.constant 0 : index
    %35 = vector.load %arg9[%c16, %c0_14] : memref<48x16xbf16, #tpu.memory_space<vmem>>, vector<16x16xbf16>
    tpu.vector_store %arg9[%c16, %c0_14], %34 {strides = array<i32>} : memref<48x16xbf16, #tpu.memory_space<vmem>>, vector<16x16xbf16>,
    %c7 = arith.constant 7 : index
    %c0_15 = arith.constant 0 : index
    %36 = vector.load %arg9[%c7, %c0_15] : memref<48x16xbf16, #tpu.memory_space<vmem>>, vector<16x16xbf16>
    %c0_16 = arith.constant 0 : index
    %c0_17 = arith.constant 0 : index
    %c0_18 = arith.constant 0 : index
    %37 = vector.load %arg4[%c0_16, %c0_17, %c0_18] : memref<9x16x16xbf16, #tpu.memory_space<vmem>>, vector<1x16x16xbf16>
    %38 = vector.shape_cast %37 : vector<1x16x16xbf16> to vector<16x16xbf16>
    %cst_19 = arith.constant dense<0.000000e+00> : vector<16x16xf32>
    %39 = tpu.matmul %36, %38, %cst_19 {dimension_numbers = #tpu.dot_dimension_numbers<[1], [0], [0], [1], [0, 0, 1, 1], [], []>} : vector<16x16xbf16>, vector<16x16xbf16>, vector<16x16xf32> -> vector<16x16xf32>
    %c8 = arith.constant 8 : index
    %c0_20 = arith.constant 0 : index
    %40 = vector.load %arg9[%c8, %c0_20] : memref<48x16xbf16, #tpu.memory_space<vmem>>, vector<16x16xbf16>
    %c1 = arith.constant 1 : index
    %c0_21 = arith.constant 0 : index
    %c0_22 = arith.constant 0 : index
    %41 = vector.load %arg4[%c1, %c0_21, %c0_22] : memref<9x16x16xbf16, #tpu.memory_space<vmem>>, vector<1x16x16xbf16>
    %42 = vector.shape_cast %41 : vector<1x16x16xbf16> to vector<16x16xbf16>
    %cst_23 = arith.constant dense<0.000000e+00> : vector<16x16xf32>
    %43 = tpu.matmul %40, %42, %cst_23 {dimension_numbers = #tpu.dot_dimension_numbers<[1], [0], [0], [1], [0, 0, 1, 1], [], []>} : vector<16x16xbf16>, vector<16x16xbf16>, vector<16x16xf32> -> vector<16x16xf32>
    %44 = arith.addf %39, %43 : vector<16x16xf32>
    %c9 = arith.constant 9 : index
    %c0_24 = arith.constant 0 : index
    %45 = vector.load %arg9[%c9, %c0_24] : memref<48x16xbf16, #tpu.memory_space<vmem>>, vector<16x16xbf16>
    %c2 = arith.constant 2 : index
    %c0_25 = arith.constant 0 : index
    %c0_26 = arith.constant 0 : index
    %46 = vector.load %arg4[%c2, %c0_25, %c0_26] : memref<9x16x16xbf16, #tpu.memory_space<vmem>>, vector<1x16x16xbf16>
    %47 = vector.shape_cast %46 : vector<1x16x16xbf16> to vector<16x16xbf16>
    %cst_27 = arith.constant dense<0.000000e+00> : vector<16x16xf32>
    %48 = tpu.matmul %45, %47, %cst_27 {dimension_numbers = #tpu.dot_dimension_numbers<[1], [0], [0], [1], [0, 0, 1, 1], [], []>} : vector<16x16xbf16>, vector<16x16xbf16>, vector<16x16xf32> -> vector<16x16xf32>
    %49 = arith.addf %44, %48 : vector<16x16xf32>
    %c15 = arith.constant 15 : index
    %c0_28 = arith.constant 0 : index
    %50 = vector.load %arg9[%c15, %c0_28] : memref<48x16xbf16, #tpu.memory_space<vmem>>, vector<16x16xbf16>
    %c3 = arith.constant 3 : index
    %c0_29 = arith.constant 0 : index
    %c0_30 = arith.constant 0 : index
    %51 = vector.load %arg4[%c3, %c0_29, %c0_30] : memref<9x16x16xbf16, #tpu.memory_space<vmem>>, vector<1x16x16xbf16>
    %52 = vector.shape_cast %51 : vector<1x16x16xbf16> to vector<16x16xbf16>
    %cst_31 = arith.constant dense<0.000000e+00> : vector<16x16xf32>
    %53 = tpu.matmul %50, %52, %cst_31 {dimension_numbers = #tpu.dot_dimension_numbers<[1], [0], [0], [1], [0, 0, 1, 1], [], []>} : vector<16x16xbf16>, vector<16x16xbf16>, vector<16x16xf32> -> vector<16x16xf32>
    %54 = arith.addf %49, %53 : vector<16x16xf32>
    %c16_32 = arith.constant 16 : index
    %c0_33 = arith.constant 0 : index
    %55 = vector.load %arg9[%c16_32, %c0_33] : memref<48x16xbf16, #tpu.memory_space<vmem>>, vector<16x16xbf16>
    %c4 = arith.constant 4 : index
    %c0_34 = arith.constant 0 : index
    %c0_35 = arith.constant 0 : index
    %56 = vector.load %arg4[%c4, %c0_34, %c0_35] : memref<9x16x16xbf16, #tpu.memory_space<vmem>>, vector<1x16x16xbf16>
    %57 = vector.shape_cast %56 : vector<1x16x16xbf16> to vector<16x16xbf16>
    %cst_36 = arith.constant dense<0.000000e+00> : vector<16x16xf32>
    %58 = tpu.matmul %55, %57, %cst_36 {dimension_numbers = #tpu.dot_dimension_numbers<[1], [0], [0], [1], [0, 0, 1, 1], [], []>} : vector<16x16xbf16>, vector<16x16xbf16>, vector<16x16xf32> -> vector<16x16xf32>
    %59 = arith.addf %54, %58 : vector<16x16xf32>
    %c17 = arith.constant 17 : index
    %c0_37 = arith.constant 0 : index
    %60 = vector.load %arg9[%c17, %c0_37] : memref<48x16xbf16, #tpu.memory_space<vmem>>, vector<16x16xbf16>
    %c5 = arith.constant 5 : index
    %c0_38 = arith.constant 0 : index
    %c0_39 = arith.constant 0 : index
    %61 = vector.load %arg4[%c5, %c0_38, %c0_39] : memref<9x16x16xbf16, #tpu.memory_space<vmem>>, vector<1x16x16xbf16>
    %62 = vector.shape_cast %61 : vector<1x16x16xbf16> to vector<16x16xbf16>
    %cst_40 = arith.constant dense<0.000000e+00> : vector<16x16xf32>
    %63 = tpu.matmul %60, %62, %cst_40 {dimension_numbers = #tpu.dot_dimension_numbers<[1], [0], [0], [1], [0, 0, 1, 1], [], []>} : vector<16x16xbf16>, vector<16x16xbf16>, vector<16x16xf32> -> vector<16x16xf32>
    %64 = arith.addf %59, %63 : vector<16x16xf32>
    %c23 = arith.constant 23 : index
    %c0_41 = arith.constant 0 : index
    %65 = vector.load %arg9[%c23, %c0_41] : memref<48x16xbf16, #tpu.memory_space<vmem>>, vector<16x16xbf16>
    %c6 = arith.constant 6 : index
    %c0_42 = arith.constant 0 : index
    %c0_43 = arith.constant 0 : index
    %66 = vector.load %arg4[%c6, %c0_42, %c0_43] : memref<9x16x16xbf16, #tpu.memory_space<vmem>>, vector<1x16x16xbf16>
    %67 = vector.shape_cast %66 : vector<1x16x16xbf16> to vector<16x16xbf16>
    %cst_44 = arith.constant dense<0.000000e+00> : vector<16x16xf32>
    %68 = tpu.matmul %65, %67, %cst_44 {dimension_numbers = #tpu.dot_dimension_numbers<[1], [0], [0], [1], [0, 0, 1, 1], [], []>} : vector<16x16xbf16>, vector<16x16xbf16>, vector<16x16xf32> -> vector<16x16xf32>
    %69 = arith.addf %64, %68 : vector<16x16xf32>
    %c24 = arith.constant 24 : index
    %c0_45 = arith.constant 0 : index
    %70 = vector.load %arg9[%c24, %c0_45] : memref<48x16xbf16, #tpu.memory_space<vmem>>, vector<16x16xbf16>
    %c7_46 = arith.constant 7 : index
    %c0_47 = arith.constant 0 : index
    %c0_48 = arith.constant 0 : index
    %71 = vector.load %arg4[%c7_46, %c0_47, %c0_48] : memref<9x16x16xbf16, #tpu.memory_space<vmem>>, vector<1x16x16xbf16>
    %72 = vector.shape_cast %71 : vector<1x16x16xbf16> to vector<16x16xbf16>
    %cst_49 = arith.constant dense<0.000000e+00> : vector<16x16xf32>
    %73 = tpu.matmul %70, %72, %cst_49 {dimension_numbers = #tpu.dot_dimension_numbers<[1], [0], [0], [1], [0, 0, 1, 1], [], []>} : vector<16x16xbf16>, vector<16x16xbf16>, vector<16x16xf32> -> vector<16x16xf32>
    %74 = arith.addf %69, %73 : vector<16x16xf32>
    %c25 = arith.constant 25 : index
    %c0_50 = arith.constant 0 : index
    %75 = vector.load %arg9[%c25, %c0_50] : memref<48x16xbf16, #tpu.memory_space<vmem>>, vector<16x16xbf16>
    %c8_51 = arith.constant 8 : index
    %c0_52 = arith.constant 0 : index
    %c0_53 = arith.constant 0 : index
    %76 = vector.load %arg4[%c8_51, %c0_52, %c0_53] : memref<9x16x16xbf16, #tpu.memory_space<vmem>>, vector<1x16x16xbf16>
    %77 = vector.shape_cast %76 : vector<1x16x16xbf16> to vector<16x16xbf16>
    %cst_54 = arith.constant dense<0.000000e+00> : vector<16x16xf32>
    %78 = tpu.matmul %75, %77, %cst_54 {dimension_numbers = #tpu.dot_dimension_numbers<[1], [0], [0], [1], [0, 0, 1, 1], [], []>} : vector<16x16xbf16>, vector<16x16xbf16>, vector<16x16xf32> -> vector<16x16xf32>
    %79 = arith.addf %74, %78 : vector<16x16xf32>
    %c0_55 = arith.constant 0 : index
    %c0_56 = arith.constant 0 : index
    %80 = vector.load %arg5[%c0_55, %c0_56] : memref<1x16xf32, #tpu.memory_space<vmem>>, vector<1x16xf32>
    %81 = vector.broadcast %80 : vector<1x16xf32> to vector<16x16xf32>
    %82 = arith.addf %79, %81 : vector<16x16xf32>
    %83 = vector.extract_strided_slice %1 {offsets = [0, 32], sizes = [16, 8], strides = [1, 1]} : vector<16x72xbf16> to vector<16x8xbf16>
    %c0_57 = arith.constant 0 : index
    %c0_58 = arith.constant 0 : index
    %84 = vector.load %arg6[%c0_57, %c0_58] : memref<8x16xbf16, #tpu.memory_space<vmem>>, vector<8x16xbf16>
    %cst_59 = arith.constant dense<0.000000e+00> : vector<16x16xf32>
    %85 = tpu.matmul %83, %84, %cst_59 {dimension_numbers = #tpu.dot_dimension_numbers<[1], [0], [0], [1], [0, 0, 1, 1], [], []>} : vector<16x8xbf16>, vector<8x16xbf16>, vector<16x16xf32> -> vector<16x16xf32>
    %c0_60 = arith.constant 0 : index
    %c0_61 = arith.constant 0 : index
    %86 = vector.load %arg7[%c0_60, %c0_61] : memref<1x16xf32, #tpu.memory_space<vmem>>, vector<1x16xf32>
    %87 = vector.broadcast %86 : vector<1x16xf32> to vector<16x16xf32>
    %88 = arith.addf %85, %87 : vector<16x16xf32>
    %89 = arith.addf %82, %88 : vector<16x16xf32>
    %cst_62 = arith.constant 0.000000e+00 : f32
    %90 = vector.broadcast %cst_62 : f32 to vector<16x16xf32>
    %91 = arith.maximumf %89, %90 : vector<16x16xf32>
    %92 = vector.shape_cast %91 : vector<16x16xf32> to vector<1x16x16xf32>
    %93 = arith.truncf %92 : vector<1x16x16xf32> to vector<1x16x16xbf16>
    %c0_63 = arith.constant 0 : index
    %c0_64 = arith.constant 0 : index
    %c0_65 = arith.constant 0 : index
    %94 = vector.load %arg8[%c0_63, %c0_64, %c0_65] : memref<1x16x16xbf16, #tpu.memory_space<vmem>>, vector<1x16x16xbf16>
    tpu.vector_store %arg8[%c0_63, %c0_64, %c0_65], %93 {strides = array<i32>} : memref<1x16x16xbf16, #tpu.memory_space<vmem>>, vector<1x16x16xbf16>,
    return
  }
  func.func @transform_0(%arg0: i32) -> (i32, i32, i32) {
    %c0_i32 = arith.constant 0 : i32
    %c0_i32_0 = arith.constant 0 : i32
    %c0_i32_1 = arith.constant 0 : i32
    return %arg0, %c0_i32, %c0_i32_0 : i32, i32, i32
  }
  func.func @transform_1(%arg0: i32) -> (i32, i32) {
    %c0_i32 = arith.constant 0 : i32
    %c0_i32_0 = arith.constant 0 : i32
    %c0_i32_1 = arith.constant 0 : i32
    return %c0_i32, %c0_i32_0 : i32, i32
  }
  func.func @transform_2(%arg0: i32) -> (i32, i32) {
    %c0_i32 = arith.constant 0 : i32
    %c0_i32_0 = arith.constant 0 : i32
    %c0_i32_1 = arith.constant 0 : i32
    return %c0_i32, %c0_i32_0 : i32, i32
  }
  func.func @transform_3(%arg0: i32) -> (i32, i32, i32) {
    %c0_i32 = arith.constant 0 : i32
    %c0_i32_0 = arith.constant 0 : i32
    %c0_i32_1 = arith.constant 0 : i32
    %c0_i32_2 = arith.constant 0 : i32
    return %c0_i32, %c0_i32_0, %c0_i32_1 : i32, i32, i32
  }
  func.func @transform_4(%arg0: i32) -> (i32, i32) {
    %c0_i32 = arith.constant 0 : i32
    %c0_i32_0 = arith.constant 0 : i32
    %c0_i32_1 = arith.constant 0 : i32
    return %c0_i32, %c0_i32_0 : i32, i32
  }
  func.func @transform_5(%arg0: i32) -> (i32, i32) {
    %c0_i32 = arith.constant 0 : i32
    %c0_i32_0 = arith.constant 0 : i32
    %c0_i32_1 = arith.constant 0 : i32
    return %c0_i32, %c0_i32_0 : i32, i32
  }
  func.func @transform_6(%arg0: i32) -> (i32, i32) {
    %c0_i32 = arith.constant 0 : i32
    %c0_i32_0 = arith.constant 0 : i32
    %c0_i32_1 = arith.constant 0 : i32
    return %c0_i32, %c0_i32_0 : i32, i32
  }
  func.func @transform_7(%arg0: i32) -> (i32, i32, i32) {
    %c0_i32 = arith.constant 0 : i32
    %c0_i32_0 = arith.constant 0 : i32
    %c0_i32_1 = arith.constant 0 : i32
    return %arg0, %c0_i32, %c0_i32_0 : i32, i32, i32
  }
}

module attributes {stable_mosaic.version = 11 : i64} {
  func.func @_block_kernel(%arg0: i32, %arg1: memref<1x8x144xbf16, #tpu.memory_space<vmem>>, %arg2: memref<144x32xbf16, #tpu.memory_space<vmem>>, %arg3: memref<1x32xf32, #tpu.memory_space<vmem>>, %arg4: memref<9x32x32xbf16, #tpu.memory_space<vmem>>, %arg5: memref<1x32xf32, #tpu.memory_space<vmem>>, %arg6: memref<16x32xbf16, #tpu.memory_space<vmem>>, %arg7: memref<1x32xf32, #tpu.memory_space<vmem>>, %arg8: memref<1x8x32xbf16, #tpu.memory_space<vmem>>, %arg9: memref<40x32xbf16, #tpu.memory_space<vmem>>) attributes {dimension_semantics = [#tpu.dimension_semantics<parallel>], iteration_bounds = array<i64: 2>, scalar_prefetch = 0 : i64, scratch_operands = 1 : i64, tpu.core_type = #tpu.core_type<tc>, window_params = [{transform_indices = @transform_0, window_bounds = array<i64: 1, 8, 144>}, {pipeline_mode = #tpu.pipeline_mode<synchronous>, transform_indices = @transform_1, window_bounds = array<i64: 144, 32>}, {pipeline_mode = #tpu.pipeline_mode<synchronous>, transform_indices = @transform_2, window_bounds = array<i64: 1, 32>}, {pipeline_mode = #tpu.pipeline_mode<synchronous>, transform_indices = @transform_3, window_bounds = array<i64: 9, 32, 32>}, {pipeline_mode = #tpu.pipeline_mode<synchronous>, transform_indices = @transform_4, window_bounds = array<i64: 1, 32>}, {pipeline_mode = #tpu.pipeline_mode<synchronous>, transform_indices = @transform_5, window_bounds = array<i64: 16, 32>}, {pipeline_mode = #tpu.pipeline_mode<synchronous>, transform_indices = @transform_6, window_bounds = array<i64: 1, 32>}, {transform_indices = @transform_7, window_bounds = array<i64: 1, 8, 32>}]} {
    %c0 = arith.constant 0 : index
    %c0_0 = arith.constant 0 : index
    %c0_1 = arith.constant 0 : index
    %0 = vector.load %arg1[%c0, %c0_0, %c0_1] : memref<1x8x144xbf16, #tpu.memory_space<vmem>>, vector<1x8x144xbf16>
    %1 = vector.shape_cast %0 : vector<1x8x144xbf16> to vector<8x144xbf16>
    %c0_2 = arith.constant 0 : index
    %c0_3 = arith.constant 0 : index
    %2 = vector.load %arg2[%c0_2, %c0_3] : memref<144x32xbf16, #tpu.memory_space<vmem>>, vector<144x32xbf16>
    %cst = arith.constant dense<0.000000e+00> : vector<8x32xf32>
    %3 = tpu.matmul %1, %2, %cst {dimension_numbers = #tpu.dot_dimension_numbers<[1], [0], [0], [1], [0, 0, 1, 1], [], []>} : vector<8x144xbf16>, vector<144x32xbf16>, vector<8x32xf32> -> vector<8x32xf32>
    %c0_4 = arith.constant 0 : index
    %c0_5 = arith.constant 0 : index
    %4 = vector.load %arg3[%c0_4, %c0_5] : memref<1x32xf32, #tpu.memory_space<vmem>>, vector<1x32xf32>
    %5 = vector.broadcast %4 : vector<1x32xf32> to vector<8x32xf32>
    %6 = arith.addf %3, %5 : vector<8x32xf32>
    %cst_6 = arith.constant 0.000000e+00 : f32
    %7 = vector.broadcast %cst_6 : f32 to vector<8x32xf32>
    %8 = arith.maximumf %6, %7 : vector<8x32xf32>
    %9 = tpu.iota {dimensions = array<i32: 0>} : vector<8x1xi32>
    %c8_i32 = arith.constant 8 : i32
    %c0_i32 = arith.constant 0 : i32
    %10 = arith.cmpi eq, %c8_i32, %c0_i32 : i32
    %c1_i32 = arith.constant 1 : i32
    %11 = arith.select %10, %c1_i32, %c8_i32 : i32
    %12 = vector.broadcast %11 : i32 to vector<8x1xi32>
    %13 = arith.remsi %9, %12 : vector<8x1xi32>
    %c0_i32_7 = arith.constant 0 : i32
    %14 = vector.broadcast %c0_i32_7 : i32 to vector<8x1xi32>
    %15 = arith.cmpi ne, %13, %14 : vector<8x1xi32>
    %c0_i32_8 = arith.constant 0 : i32
    %16 = vector.broadcast %c0_i32_8 : i32 to vector<8x1xi32>
    %17 = arith.cmpi slt, %13, %16 : vector<8x1xi32>
    %c0_i32_9 = arith.constant 0 : i32
    %18 = arith.cmpi slt, %11, %c0_i32_9 : i32
    %19 = vector.broadcast %18 : i1 to vector<8x1xi1>
    %20 = vector.broadcast %19 : vector<8x1xi1> to vector<8x1xi1>
    %21 = arith.xori %17, %20 : vector<8x1xi1>
    %22 = arith.andi %21, %15 : vector<8x1xi1>
    %23 = vector.broadcast %11 : i32 to vector<8x1xi32>
    %24 = arith.addi %13, %23 : vector<8x1xi32>
    %25 = arith.select %22, %24, %13 : vector<8x1xi1>, vector<8x1xi32>
    %c1_i32_10 = arith.constant 1 : i32
    %26 = vector.broadcast %c1_i32_10 : i32 to vector<8x1xi32>
    %27 = arith.cmpi slt, %25, %26 : vector<8x1xi32>
    %cst_11 = arith.constant 0.000000e+00 : f32
    %28 = vector.shape_cast %27 : vector<8x1xi1> to vector<8x1xi1>
    %29 = vector.broadcast %28 : vector<8x1xi1> to vector<8x32xi1>
    %30 = vector.broadcast %cst_11 : f32 to vector<8x32xf32>
    %31 = arith.select %29, %8, %30 : vector<8x32xi1>, vector<8x32xf32>
    %cst_12 = arith.constant 0.000000e+00 : bf16
    %32 = vector.broadcast %cst_12 : bf16 to vector<40x32xbf16>
    %c0_13 = arith.constant 0 : index
    %c0_14 = arith.constant 0 : index
    %33 = vector.load %arg9[%c0_13, %c0_14] : memref<40x32xbf16, #tpu.memory_space<vmem>>, vector<40x32xbf16>
    tpu.vector_store %arg9[%c0_13, %c0_14], %32 {strides = array<i32>} : memref<40x32xbf16, #tpu.memory_space<vmem>>, vector<40x32xbf16>,
    %34 = arith.truncf %31 : vector<8x32xf32> to vector<8x32xbf16>
    %c16 = arith.constant 16 : index
    %c0_15 = arith.constant 0 : index
    %35 = vector.load %arg9[%c16, %c0_15] : memref<40x32xbf16, #tpu.memory_space<vmem>>, vector<8x32xbf16>
    tpu.vector_store %arg9[%c16, %c0_15], %34 {strides = array<i32>} : memref<40x32xbf16, #tpu.memory_space<vmem>>, vector<8x32xbf16>,
    %c7 = arith.constant 7 : index
    %c0_16 = arith.constant 0 : index
    %36 = vector.load %arg9[%c7, %c0_16] : memref<40x32xbf16, #tpu.memory_space<vmem>>, vector<8x32xbf16>
    %c0_17 = arith.constant 0 : index
    %c0_18 = arith.constant 0 : index
    %c0_19 = arith.constant 0 : index
    %37 = vector.load %arg4[%c0_17, %c0_18, %c0_19] : memref<9x32x32xbf16, #tpu.memory_space<vmem>>, vector<1x32x32xbf16>
    %38 = vector.shape_cast %37 : vector<1x32x32xbf16> to vector<32x32xbf16>
    %cst_20 = arith.constant dense<0.000000e+00> : vector<8x32xf32>
    %39 = tpu.matmul %36, %38, %cst_20 {dimension_numbers = #tpu.dot_dimension_numbers<[1], [0], [0], [1], [0, 0, 1, 1], [], []>} : vector<8x32xbf16>, vector<32x32xbf16>, vector<8x32xf32> -> vector<8x32xf32>
    %c8 = arith.constant 8 : index
    %c0_21 = arith.constant 0 : index
    %40 = vector.load %arg9[%c8, %c0_21] : memref<40x32xbf16, #tpu.memory_space<vmem>>, vector<8x32xbf16>
    %c1 = arith.constant 1 : index
    %c0_22 = arith.constant 0 : index
    %c0_23 = arith.constant 0 : index
    %41 = vector.load %arg4[%c1, %c0_22, %c0_23] : memref<9x32x32xbf16, #tpu.memory_space<vmem>>, vector<1x32x32xbf16>
    %42 = vector.shape_cast %41 : vector<1x32x32xbf16> to vector<32x32xbf16>
    %cst_24 = arith.constant dense<0.000000e+00> : vector<8x32xf32>
    %43 = tpu.matmul %40, %42, %cst_24 {dimension_numbers = #tpu.dot_dimension_numbers<[1], [0], [0], [1], [0, 0, 1, 1], [], []>} : vector<8x32xbf16>, vector<32x32xbf16>, vector<8x32xf32> -> vector<8x32xf32>
    %44 = arith.addf %39, %43 : vector<8x32xf32>
    %c9 = arith.constant 9 : index
    %c0_25 = arith.constant 0 : index
    %45 = vector.load %arg9[%c9, %c0_25] : memref<40x32xbf16, #tpu.memory_space<vmem>>, vector<8x32xbf16>
    %c2 = arith.constant 2 : index
    %c0_26 = arith.constant 0 : index
    %c0_27 = arith.constant 0 : index
    %46 = vector.load %arg4[%c2, %c0_26, %c0_27] : memref<9x32x32xbf16, #tpu.memory_space<vmem>>, vector<1x32x32xbf16>
    %47 = vector.shape_cast %46 : vector<1x32x32xbf16> to vector<32x32xbf16>
    %cst_28 = arith.constant dense<0.000000e+00> : vector<8x32xf32>
    %48 = tpu.matmul %45, %47, %cst_28 {dimension_numbers = #tpu.dot_dimension_numbers<[1], [0], [0], [1], [0, 0, 1, 1], [], []>} : vector<8x32xbf16>, vector<32x32xbf16>, vector<8x32xf32> -> vector<8x32xf32>
    %49 = arith.addf %44, %48 : vector<8x32xf32>
    %c15 = arith.constant 15 : index
    %c0_29 = arith.constant 0 : index
    %50 = vector.load %arg9[%c15, %c0_29] : memref<40x32xbf16, #tpu.memory_space<vmem>>, vector<8x32xbf16>
    %c3 = arith.constant 3 : index
    %c0_30 = arith.constant 0 : index
    %c0_31 = arith.constant 0 : index
    %51 = vector.load %arg4[%c3, %c0_30, %c0_31] : memref<9x32x32xbf16, #tpu.memory_space<vmem>>, vector<1x32x32xbf16>
    %52 = vector.shape_cast %51 : vector<1x32x32xbf16> to vector<32x32xbf16>
    %cst_32 = arith.constant dense<0.000000e+00> : vector<8x32xf32>
    %53 = tpu.matmul %50, %52, %cst_32 {dimension_numbers = #tpu.dot_dimension_numbers<[1], [0], [0], [1], [0, 0, 1, 1], [], []>} : vector<8x32xbf16>, vector<32x32xbf16>, vector<8x32xf32> -> vector<8x32xf32>
    %54 = arith.addf %49, %53 : vector<8x32xf32>
    %c16_33 = arith.constant 16 : index
    %c0_34 = arith.constant 0 : index
    %55 = vector.load %arg9[%c16_33, %c0_34] : memref<40x32xbf16, #tpu.memory_space<vmem>>, vector<8x32xbf16>
    %c4 = arith.constant 4 : index
    %c0_35 = arith.constant 0 : index
    %c0_36 = arith.constant 0 : index
    %56 = vector.load %arg4[%c4, %c0_35, %c0_36] : memref<9x32x32xbf16, #tpu.memory_space<vmem>>, vector<1x32x32xbf16>
    %57 = vector.shape_cast %56 : vector<1x32x32xbf16> to vector<32x32xbf16>
    %cst_37 = arith.constant dense<0.000000e+00> : vector<8x32xf32>
    %58 = tpu.matmul %55, %57, %cst_37 {dimension_numbers = #tpu.dot_dimension_numbers<[1], [0], [0], [1], [0, 0, 1, 1], [], []>} : vector<8x32xbf16>, vector<32x32xbf16>, vector<8x32xf32> -> vector<8x32xf32>
    %59 = arith.addf %54, %58 : vector<8x32xf32>
    %c17 = arith.constant 17 : index
    %c0_38 = arith.constant 0 : index
    %60 = vector.load %arg9[%c17, %c0_38] : memref<40x32xbf16, #tpu.memory_space<vmem>>, vector<8x32xbf16>
    %c5 = arith.constant 5 : index
    %c0_39 = arith.constant 0 : index
    %c0_40 = arith.constant 0 : index
    %61 = vector.load %arg4[%c5, %c0_39, %c0_40] : memref<9x32x32xbf16, #tpu.memory_space<vmem>>, vector<1x32x32xbf16>
    %62 = vector.shape_cast %61 : vector<1x32x32xbf16> to vector<32x32xbf16>
    %cst_41 = arith.constant dense<0.000000e+00> : vector<8x32xf32>
    %63 = tpu.matmul %60, %62, %cst_41 {dimension_numbers = #tpu.dot_dimension_numbers<[1], [0], [0], [1], [0, 0, 1, 1], [], []>} : vector<8x32xbf16>, vector<32x32xbf16>, vector<8x32xf32> -> vector<8x32xf32>
    %64 = arith.addf %59, %63 : vector<8x32xf32>
    %c23 = arith.constant 23 : index
    %c0_42 = arith.constant 0 : index
    %65 = vector.load %arg9[%c23, %c0_42] : memref<40x32xbf16, #tpu.memory_space<vmem>>, vector<8x32xbf16>
    %c6 = arith.constant 6 : index
    %c0_43 = arith.constant 0 : index
    %c0_44 = arith.constant 0 : index
    %66 = vector.load %arg4[%c6, %c0_43, %c0_44] : memref<9x32x32xbf16, #tpu.memory_space<vmem>>, vector<1x32x32xbf16>
    %67 = vector.shape_cast %66 : vector<1x32x32xbf16> to vector<32x32xbf16>
    %cst_45 = arith.constant dense<0.000000e+00> : vector<8x32xf32>
    %68 = tpu.matmul %65, %67, %cst_45 {dimension_numbers = #tpu.dot_dimension_numbers<[1], [0], [0], [1], [0, 0, 1, 1], [], []>} : vector<8x32xbf16>, vector<32x32xbf16>, vector<8x32xf32> -> vector<8x32xf32>
    %69 = arith.addf %64, %68 : vector<8x32xf32>
    %c24 = arith.constant 24 : index
    %c0_46 = arith.constant 0 : index
    %70 = vector.load %arg9[%c24, %c0_46] : memref<40x32xbf16, #tpu.memory_space<vmem>>, vector<8x32xbf16>
    %c7_47 = arith.constant 7 : index
    %c0_48 = arith.constant 0 : index
    %c0_49 = arith.constant 0 : index
    %71 = vector.load %arg4[%c7_47, %c0_48, %c0_49] : memref<9x32x32xbf16, #tpu.memory_space<vmem>>, vector<1x32x32xbf16>
    %72 = vector.shape_cast %71 : vector<1x32x32xbf16> to vector<32x32xbf16>
    %cst_50 = arith.constant dense<0.000000e+00> : vector<8x32xf32>
    %73 = tpu.matmul %70, %72, %cst_50 {dimension_numbers = #tpu.dot_dimension_numbers<[1], [0], [0], [1], [0, 0, 1, 1], [], []>} : vector<8x32xbf16>, vector<32x32xbf16>, vector<8x32xf32> -> vector<8x32xf32>
    %74 = arith.addf %69, %73 : vector<8x32xf32>
    %c25 = arith.constant 25 : index
    %c0_51 = arith.constant 0 : index
    %75 = vector.load %arg9[%c25, %c0_51] : memref<40x32xbf16, #tpu.memory_space<vmem>>, vector<8x32xbf16>
    %c8_52 = arith.constant 8 : index
    %c0_53 = arith.constant 0 : index
    %c0_54 = arith.constant 0 : index
    %76 = vector.load %arg4[%c8_52, %c0_53, %c0_54] : memref<9x32x32xbf16, #tpu.memory_space<vmem>>, vector<1x32x32xbf16>
    %77 = vector.shape_cast %76 : vector<1x32x32xbf16> to vector<32x32xbf16>
    %cst_55 = arith.constant dense<0.000000e+00> : vector<8x32xf32>
    %78 = tpu.matmul %75, %77, %cst_55 {dimension_numbers = #tpu.dot_dimension_numbers<[1], [0], [0], [1], [0, 0, 1, 1], [], []>} : vector<8x32xbf16>, vector<32x32xbf16>, vector<8x32xf32> -> vector<8x32xf32>
    %79 = arith.addf %74, %78 : vector<8x32xf32>
    %c0_56 = arith.constant 0 : index
    %c0_57 = arith.constant 0 : index
    %80 = vector.load %arg5[%c0_56, %c0_57] : memref<1x32xf32, #tpu.memory_space<vmem>>, vector<1x32xf32>
    %81 = vector.broadcast %80 : vector<1x32xf32> to vector<8x32xf32>
    %82 = arith.addf %79, %81 : vector<8x32xf32>
    %83 = vector.extract_strided_slice %1 {offsets = [0, 64], sizes = [8, 16], strides = [1, 1]} : vector<8x144xbf16> to vector<8x16xbf16>
    %c0_58 = arith.constant 0 : index
    %c0_59 = arith.constant 0 : index
    %84 = vector.load %arg6[%c0_58, %c0_59] : memref<16x32xbf16, #tpu.memory_space<vmem>>, vector<16x32xbf16>
    %cst_60 = arith.constant dense<0.000000e+00> : vector<8x32xf32>
    %85 = tpu.matmul %83, %84, %cst_60 {dimension_numbers = #tpu.dot_dimension_numbers<[1], [0], [0], [1], [0, 0, 1, 1], [], []>} : vector<8x16xbf16>, vector<16x32xbf16>, vector<8x32xf32> -> vector<8x32xf32>
    %c0_61 = arith.constant 0 : index
    %c0_62 = arith.constant 0 : index
    %86 = vector.load %arg7[%c0_61, %c0_62] : memref<1x32xf32, #tpu.memory_space<vmem>>, vector<1x32xf32>
    %87 = vector.broadcast %86 : vector<1x32xf32> to vector<8x32xf32>
    %88 = arith.addf %85, %87 : vector<8x32xf32>
    %89 = arith.addf %82, %88 : vector<8x32xf32>
    %cst_63 = arith.constant 0.000000e+00 : f32
    %90 = vector.broadcast %cst_63 : f32 to vector<8x32xf32>
    %91 = arith.maximumf %89, %90 : vector<8x32xf32>
    %92 = vector.shape_cast %91 : vector<8x32xf32> to vector<1x8x32xf32>
    %93 = arith.truncf %92 : vector<1x8x32xf32> to vector<1x8x32xbf16>
    %c0_64 = arith.constant 0 : index
    %c0_65 = arith.constant 0 : index
    %c0_66 = arith.constant 0 : index
    %94 = vector.load %arg8[%c0_64, %c0_65, %c0_66] : memref<1x8x32xbf16, #tpu.memory_space<vmem>>, vector<1x8x32xbf16>
    tpu.vector_store %arg8[%c0_64, %c0_65, %c0_66], %93 {strides = array<i32>} : memref<1x8x32xbf16, #tpu.memory_space<vmem>>, vector<1x8x32xbf16>,
    return
  }
  func.func @transform_0(%arg0: i32) -> (i32, i32, i32) {
    %c0_i32 = arith.constant 0 : i32
    %c0_i32_0 = arith.constant 0 : i32
    %c0_i32_1 = arith.constant 0 : i32
    return %arg0, %c0_i32, %c0_i32_0 : i32, i32, i32
  }
  func.func @transform_1(%arg0: i32) -> (i32, i32) {
    %c0_i32 = arith.constant 0 : i32
    %c0_i32_0 = arith.constant 0 : i32
    %c0_i32_1 = arith.constant 0 : i32
    return %c0_i32, %c0_i32_0 : i32, i32
  }
  func.func @transform_2(%arg0: i32) -> (i32, i32) {
    %c0_i32 = arith.constant 0 : i32
    %c0_i32_0 = arith.constant 0 : i32
    %c0_i32_1 = arith.constant 0 : i32
    return %c0_i32, %c0_i32_0 : i32, i32
  }
  func.func @transform_3(%arg0: i32) -> (i32, i32, i32) {
    %c0_i32 = arith.constant 0 : i32
    %c0_i32_0 = arith.constant 0 : i32
    %c0_i32_1 = arith.constant 0 : i32
    %c0_i32_2 = arith.constant 0 : i32
    return %c0_i32, %c0_i32_0, %c0_i32_1 : i32, i32, i32
  }
  func.func @transform_4(%arg0: i32) -> (i32, i32) {
    %c0_i32 = arith.constant 0 : i32
    %c0_i32_0 = arith.constant 0 : i32
    %c0_i32_1 = arith.constant 0 : i32
    return %c0_i32, %c0_i32_0 : i32, i32
  }
  func.func @transform_5(%arg0: i32) -> (i32, i32) {
    %c0_i32 = arith.constant 0 : i32
    %c0_i32_0 = arith.constant 0 : i32
    %c0_i32_1 = arith.constant 0 : i32
    return %c0_i32, %c0_i32_0 : i32, i32
  }
  func.func @transform_6(%arg0: i32) -> (i32, i32) {
    %c0_i32 = arith.constant 0 : i32
    %c0_i32_0 = arith.constant 0 : i32
    %c0_i32_1 = arith.constant 0 : i32
    return %c0_i32, %c0_i32_0 : i32, i32
  }
  func.func @transform_7(%arg0: i32) -> (i32, i32, i32) {
    %c0_i32 = arith.constant 0 : i32
    %c0_i32_0 = arith.constant 0 : i32
    %c0_i32_1 = arith.constant 0 : i32
    return %arg0, %c0_i32, %c0_i32_0 : i32, i32, i32
  }
}

module attributes {stable_mosaic.version = 11 : i64} {
  func.func @_block_kernel(%arg0: i32, %arg1: memref<1x8x288xbf16, #tpu.memory_space<vmem>>, %arg2: memref<288x64xbf16, #tpu.memory_space<vmem>>, %arg3: memref<1x64xf32, #tpu.memory_space<vmem>>, %arg4: memref<9x64x64xbf16, #tpu.memory_space<vmem>>, %arg5: memref<1x64xf32, #tpu.memory_space<vmem>>, %arg6: memref<32x64xbf16, #tpu.memory_space<vmem>>, %arg7: memref<1x64xf32, #tpu.memory_space<vmem>>, %arg8: memref<1x1x64xf32, #tpu.memory_space<vmem>>, %arg9: memref<40x64xbf16, #tpu.memory_space<vmem>>) attributes {dimension_semantics = [#tpu.dimension_semantics<parallel>], iteration_bounds = array<i64: 2>, scalar_prefetch = 0 : i64, scratch_operands = 1 : i64, tpu.core_type = #tpu.core_type<tc>, window_params = [{transform_indices = @transform_0, window_bounds = array<i64: 1, 8, 288>}, {pipeline_mode = #tpu.pipeline_mode<synchronous>, transform_indices = @transform_1, window_bounds = array<i64: 288, 64>}, {pipeline_mode = #tpu.pipeline_mode<synchronous>, transform_indices = @transform_2, window_bounds = array<i64: 1, 64>}, {pipeline_mode = #tpu.pipeline_mode<synchronous>, transform_indices = @transform_3, window_bounds = array<i64: 9, 64, 64>}, {pipeline_mode = #tpu.pipeline_mode<synchronous>, transform_indices = @transform_4, window_bounds = array<i64: 1, 64>}, {pipeline_mode = #tpu.pipeline_mode<synchronous>, transform_indices = @transform_5, window_bounds = array<i64: 32, 64>}, {pipeline_mode = #tpu.pipeline_mode<synchronous>, transform_indices = @transform_6, window_bounds = array<i64: 1, 64>}, {transform_indices = @transform_7, window_bounds = array<i64: 1, 1, 64>}]} {
    %c0 = arith.constant 0 : index
    %c0_0 = arith.constant 0 : index
    %c0_1 = arith.constant 0 : index
    %0 = vector.load %arg1[%c0, %c0_0, %c0_1] : memref<1x8x288xbf16, #tpu.memory_space<vmem>>, vector<1x8x288xbf16>
    %1 = vector.shape_cast %0 : vector<1x8x288xbf16> to vector<8x288xbf16>
    %c0_2 = arith.constant 0 : index
    %c0_3 = arith.constant 0 : index
    %2 = vector.load %arg2[%c0_2, %c0_3] : memref<288x64xbf16, #tpu.memory_space<vmem>>, vector<288x64xbf16>
    %cst = arith.constant dense<0.000000e+00> : vector<8x64xf32>
    %3 = tpu.matmul %1, %2, %cst {dimension_numbers = #tpu.dot_dimension_numbers<[1], [0], [0], [1], [0, 0, 1, 1], [], []>} : vector<8x288xbf16>, vector<288x64xbf16>, vector<8x64xf32> -> vector<8x64xf32>
    %c0_4 = arith.constant 0 : index
    %c0_5 = arith.constant 0 : index
    %4 = vector.load %arg3[%c0_4, %c0_5] : memref<1x64xf32, #tpu.memory_space<vmem>>, vector<1x64xf32>
    %5 = vector.broadcast %4 : vector<1x64xf32> to vector<8x64xf32>
    %6 = arith.addf %3, %5 : vector<8x64xf32>
    %cst_6 = arith.constant 0.000000e+00 : f32
    %7 = vector.broadcast %cst_6 : f32 to vector<8x64xf32>
    %8 = arith.maximumf %6, %7 : vector<8x64xf32>
    %9 = tpu.iota {dimensions = array<i32: 0>} : vector<8x1xi32>
    %c8_i32 = arith.constant 8 : i32
    %c0_i32 = arith.constant 0 : i32
    %10 = arith.cmpi eq, %c8_i32, %c0_i32 : i32
    %c1_i32 = arith.constant 1 : i32
    %11 = arith.select %10, %c1_i32, %c8_i32 : i32
    %12 = vector.broadcast %11 : i32 to vector<8x1xi32>
    %13 = arith.remsi %9, %12 : vector<8x1xi32>
    %c0_i32_7 = arith.constant 0 : i32
    %14 = vector.broadcast %c0_i32_7 : i32 to vector<8x1xi32>
    %15 = arith.cmpi ne, %13, %14 : vector<8x1xi32>
    %c0_i32_8 = arith.constant 0 : i32
    %16 = vector.broadcast %c0_i32_8 : i32 to vector<8x1xi32>
    %17 = arith.cmpi slt, %13, %16 : vector<8x1xi32>
    %c0_i32_9 = arith.constant 0 : i32
    %18 = arith.cmpi slt, %11, %c0_i32_9 : i32
    %19 = vector.broadcast %18 : i1 to vector<8x1xi1>
    %20 = vector.broadcast %19 : vector<8x1xi1> to vector<8x1xi1>
    %21 = arith.xori %17, %20 : vector<8x1xi1>
    %22 = arith.andi %21, %15 : vector<8x1xi1>
    %23 = vector.broadcast %11 : i32 to vector<8x1xi32>
    %24 = arith.addi %13, %23 : vector<8x1xi32>
    %25 = arith.select %22, %24, %13 : vector<8x1xi1>, vector<8x1xi32>
    %c1_i32_10 = arith.constant 1 : i32
    %26 = vector.broadcast %c1_i32_10 : i32 to vector<8x1xi32>
    %27 = arith.cmpi slt, %25, %26 : vector<8x1xi32>
    %cst_11 = arith.constant 0.000000e+00 : f32
    %28 = vector.shape_cast %27 : vector<8x1xi1> to vector<8x1xi1>
    %29 = vector.broadcast %28 : vector<8x1xi1> to vector<8x64xi1>
    %30 = vector.broadcast %cst_11 : f32 to vector<8x64xf32>
    %31 = arith.select %29, %8, %30 : vector<8x64xi1>, vector<8x64xf32>
    %cst_12 = arith.constant 0.000000e+00 : bf16
    %32 = vector.broadcast %cst_12 : bf16 to vector<40x64xbf16>
    %c0_13 = arith.constant 0 : index
    %c0_14 = arith.constant 0 : index
    %33 = vector.load %arg9[%c0_13, %c0_14] : memref<40x64xbf16, #tpu.memory_space<vmem>>, vector<40x64xbf16>
    tpu.vector_store %arg9[%c0_13, %c0_14], %32 {strides = array<i32>} : memref<40x64xbf16, #tpu.memory_space<vmem>>, vector<40x64xbf16>,
    %34 = arith.truncf %31 : vector<8x64xf32> to vector<8x64xbf16>
    %c16 = arith.constant 16 : index
    %c0_15 = arith.constant 0 : index
    %35 = vector.load %arg9[%c16, %c0_15] : memref<40x64xbf16, #tpu.memory_space<vmem>>, vector<8x64xbf16>
    tpu.vector_store %arg9[%c16, %c0_15], %34 {strides = array<i32>} : memref<40x64xbf16, #tpu.memory_space<vmem>>, vector<8x64xbf16>,
    %c7 = arith.constant 7 : index
    %c0_16 = arith.constant 0 : index
    %36 = vector.load %arg9[%c7, %c0_16] : memref<40x64xbf16, #tpu.memory_space<vmem>>, vector<8x64xbf16>
    %c0_17 = arith.constant 0 : index
    %c0_18 = arith.constant 0 : index
    %c0_19 = arith.constant 0 : index
    %37 = vector.load %arg4[%c0_17, %c0_18, %c0_19] : memref<9x64x64xbf16, #tpu.memory_space<vmem>>, vector<1x64x64xbf16>
    %38 = vector.shape_cast %37 : vector<1x64x64xbf16> to vector<64x64xbf16>
    %cst_20 = arith.constant dense<0.000000e+00> : vector<8x64xf32>
    %39 = tpu.matmul %36, %38, %cst_20 {dimension_numbers = #tpu.dot_dimension_numbers<[1], [0], [0], [1], [0, 0, 1, 1], [], []>} : vector<8x64xbf16>, vector<64x64xbf16>, vector<8x64xf32> -> vector<8x64xf32>
    %c8 = arith.constant 8 : index
    %c0_21 = arith.constant 0 : index
    %40 = vector.load %arg9[%c8, %c0_21] : memref<40x64xbf16, #tpu.memory_space<vmem>>, vector<8x64xbf16>
    %c1 = arith.constant 1 : index
    %c0_22 = arith.constant 0 : index
    %c0_23 = arith.constant 0 : index
    %41 = vector.load %arg4[%c1, %c0_22, %c0_23] : memref<9x64x64xbf16, #tpu.memory_space<vmem>>, vector<1x64x64xbf16>
    %42 = vector.shape_cast %41 : vector<1x64x64xbf16> to vector<64x64xbf16>
    %cst_24 = arith.constant dense<0.000000e+00> : vector<8x64xf32>
    %43 = tpu.matmul %40, %42, %cst_24 {dimension_numbers = #tpu.dot_dimension_numbers<[1], [0], [0], [1], [0, 0, 1, 1], [], []>} : vector<8x64xbf16>, vector<64x64xbf16>, vector<8x64xf32> -> vector<8x64xf32>
    %44 = arith.addf %39, %43 : vector<8x64xf32>
    %c9 = arith.constant 9 : index
    %c0_25 = arith.constant 0 : index
    %45 = vector.load %arg9[%c9, %c0_25] : memref<40x64xbf16, #tpu.memory_space<vmem>>, vector<8x64xbf16>
    %c2 = arith.constant 2 : index
    %c0_26 = arith.constant 0 : index
    %c0_27 = arith.constant 0 : index
    %46 = vector.load %arg4[%c2, %c0_26, %c0_27] : memref<9x64x64xbf16, #tpu.memory_space<vmem>>, vector<1x64x64xbf16>
    %47 = vector.shape_cast %46 : vector<1x64x64xbf16> to vector<64x64xbf16>
    %cst_28 = arith.constant dense<0.000000e+00> : vector<8x64xf32>
    %48 = tpu.matmul %45, %47, %cst_28 {dimension_numbers = #tpu.dot_dimension_numbers<[1], [0], [0], [1], [0, 0, 1, 1], [], []>} : vector<8x64xbf16>, vector<64x64xbf16>, vector<8x64xf32> -> vector<8x64xf32>
    %49 = arith.addf %44, %48 : vector<8x64xf32>
    %c15 = arith.constant 15 : index
    %c0_29 = arith.constant 0 : index
    %50 = vector.load %arg9[%c15, %c0_29] : memref<40x64xbf16, #tpu.memory_space<vmem>>, vector<8x64xbf16>
    %c3 = arith.constant 3 : index
    %c0_30 = arith.constant 0 : index
    %c0_31 = arith.constant 0 : index
    %51 = vector.load %arg4[%c3, %c0_30, %c0_31] : memref<9x64x64xbf16, #tpu.memory_space<vmem>>, vector<1x64x64xbf16>
    %52 = vector.shape_cast %51 : vector<1x64x64xbf16> to vector<64x64xbf16>
    %cst_32 = arith.constant dense<0.000000e+00> : vector<8x64xf32>
    %53 = tpu.matmul %50, %52, %cst_32 {dimension_numbers = #tpu.dot_dimension_numbers<[1], [0], [0], [1], [0, 0, 1, 1], [], []>} : vector<8x64xbf16>, vector<64x64xbf16>, vector<8x64xf32> -> vector<8x64xf32>
    %54 = arith.addf %49, %53 : vector<8x64xf32>
    %c16_33 = arith.constant 16 : index
    %c0_34 = arith.constant 0 : index
    %55 = vector.load %arg9[%c16_33, %c0_34] : memref<40x64xbf16, #tpu.memory_space<vmem>>, vector<8x64xbf16>
    %c4 = arith.constant 4 : index
    %c0_35 = arith.constant 0 : index
    %c0_36 = arith.constant 0 : index
    %56 = vector.load %arg4[%c4, %c0_35, %c0_36] : memref<9x64x64xbf16, #tpu.memory_space<vmem>>, vector<1x64x64xbf16>
    %57 = vector.shape_cast %56 : vector<1x64x64xbf16> to vector<64x64xbf16>
    %cst_37 = arith.constant dense<0.000000e+00> : vector<8x64xf32>
    %58 = tpu.matmul %55, %57, %cst_37 {dimension_numbers = #tpu.dot_dimension_numbers<[1], [0], [0], [1], [0, 0, 1, 1], [], []>} : vector<8x64xbf16>, vector<64x64xbf16>, vector<8x64xf32> -> vector<8x64xf32>
    %59 = arith.addf %54, %58 : vector<8x64xf32>
    %c17 = arith.constant 17 : index
    %c0_38 = arith.constant 0 : index
    %60 = vector.load %arg9[%c17, %c0_38] : memref<40x64xbf16, #tpu.memory_space<vmem>>, vector<8x64xbf16>
    %c5 = arith.constant 5 : index
    %c0_39 = arith.constant 0 : index
    %c0_40 = arith.constant 0 : index
    %61 = vector.load %arg4[%c5, %c0_39, %c0_40] : memref<9x64x64xbf16, #tpu.memory_space<vmem>>, vector<1x64x64xbf16>
    %62 = vector.shape_cast %61 : vector<1x64x64xbf16> to vector<64x64xbf16>
    %cst_41 = arith.constant dense<0.000000e+00> : vector<8x64xf32>
    %63 = tpu.matmul %60, %62, %cst_41 {dimension_numbers = #tpu.dot_dimension_numbers<[1], [0], [0], [1], [0, 0, 1, 1], [], []>} : vector<8x64xbf16>, vector<64x64xbf16>, vector<8x64xf32> -> vector<8x64xf32>
    %64 = arith.addf %59, %63 : vector<8x64xf32>
    %c23 = arith.constant 23 : index
    %c0_42 = arith.constant 0 : index
    %65 = vector.load %arg9[%c23, %c0_42] : memref<40x64xbf16, #tpu.memory_space<vmem>>, vector<8x64xbf16>
    %c6 = arith.constant 6 : index
    %c0_43 = arith.constant 0 : index
    %c0_44 = arith.constant 0 : index
    %66 = vector.load %arg4[%c6, %c0_43, %c0_44] : memref<9x64x64xbf16, #tpu.memory_space<vmem>>, vector<1x64x64xbf16>
    %67 = vector.shape_cast %66 : vector<1x64x64xbf16> to vector<64x64xbf16>
    %cst_45 = arith.constant dense<0.000000e+00> : vector<8x64xf32>
    %68 = tpu.matmul %65, %67, %cst_45 {dimension_numbers = #tpu.dot_dimension_numbers<[1], [0], [0], [1], [0, 0, 1, 1], [], []>} : vector<8x64xbf16>, vector<64x64xbf16>, vector<8x64xf32> -> vector<8x64xf32>
    %69 = arith.addf %64, %68 : vector<8x64xf32>
    %c24 = arith.constant 24 : index
    %c0_46 = arith.constant 0 : index
    %70 = vector.load %arg9[%c24, %c0_46] : memref<40x64xbf16, #tpu.memory_space<vmem>>, vector<8x64xbf16>
    %c7_47 = arith.constant 7 : index
    %c0_48 = arith.constant 0 : index
    %c0_49 = arith.constant 0 : index
    %71 = vector.load %arg4[%c7_47, %c0_48, %c0_49] : memref<9x64x64xbf16, #tpu.memory_space<vmem>>, vector<1x64x64xbf16>
    %72 = vector.shape_cast %71 : vector<1x64x64xbf16> to vector<64x64xbf16>
    %cst_50 = arith.constant dense<0.000000e+00> : vector<8x64xf32>
    %73 = tpu.matmul %70, %72, %cst_50 {dimension_numbers = #tpu.dot_dimension_numbers<[1], [0], [0], [1], [0, 0, 1, 1], [], []>} : vector<8x64xbf16>, vector<64x64xbf16>, vector<8x64xf32> -> vector<8x64xf32>
    %74 = arith.addf %69, %73 : vector<8x64xf32>
    %c25 = arith.constant 25 : index
    %c0_51 = arith.constant 0 : index
    %75 = vector.load %arg9[%c25, %c0_51] : memref<40x64xbf16, #tpu.memory_space<vmem>>, vector<8x64xbf16>
    %c8_52 = arith.constant 8 : index
    %c0_53 = arith.constant 0 : index
    %c0_54 = arith.constant 0 : index
    %76 = vector.load %arg4[%c8_52, %c0_53, %c0_54] : memref<9x64x64xbf16, #tpu.memory_space<vmem>>, vector<1x64x64xbf16>
    %77 = vector.shape_cast %76 : vector<1x64x64xbf16> to vector<64x64xbf16>
    %cst_55 = arith.constant dense<0.000000e+00> : vector<8x64xf32>
    %78 = tpu.matmul %75, %77, %cst_55 {dimension_numbers = #tpu.dot_dimension_numbers<[1], [0], [0], [1], [0, 0, 1, 1], [], []>} : vector<8x64xbf16>, vector<64x64xbf16>, vector<8x64xf32> -> vector<8x64xf32>
    %79 = arith.addf %74, %78 : vector<8x64xf32>
    %c0_56 = arith.constant 0 : index
    %c0_57 = arith.constant 0 : index
    %80 = vector.load %arg5[%c0_56, %c0_57] : memref<1x64xf32, #tpu.memory_space<vmem>>, vector<1x64xf32>
    %81 = vector.broadcast %80 : vector<1x64xf32> to vector<8x64xf32>
    %82 = arith.addf %79, %81 : vector<8x64xf32>
    %83 = vector.extract_strided_slice %1 {offsets = [0, 128], sizes = [8, 32], strides = [1, 1]} : vector<8x288xbf16> to vector<8x32xbf16>
    %c0_58 = arith.constant 0 : index
    %c0_59 = arith.constant 0 : index
    %84 = vector.load %arg6[%c0_58, %c0_59] : memref<32x64xbf16, #tpu.memory_space<vmem>>, vector<32x64xbf16>
    %cst_60 = arith.constant dense<0.000000e+00> : vector<8x64xf32>
    %85 = tpu.matmul %83, %84, %cst_60 {dimension_numbers = #tpu.dot_dimension_numbers<[1], [0], [0], [1], [0, 0, 1, 1], [], []>} : vector<8x32xbf16>, vector<32x64xbf16>, vector<8x64xf32> -> vector<8x64xf32>
    %c0_61 = arith.constant 0 : index
    %c0_62 = arith.constant 0 : index
    %86 = vector.load %arg7[%c0_61, %c0_62] : memref<1x64xf32, #tpu.memory_space<vmem>>, vector<1x64xf32>
    %87 = vector.broadcast %86 : vector<1x64xf32> to vector<8x64xf32>
    %88 = arith.addf %85, %87 : vector<8x64xf32>
    %89 = arith.addf %82, %88 : vector<8x64xf32>
    %cst_63 = arith.constant 0.000000e+00 : f32
    %90 = vector.broadcast %cst_63 : f32 to vector<8x64xf32>
    %91 = arith.maximumf %89, %90 : vector<8x64xf32>
    %cst_64 = arith.constant 0.000000e+00 : f32
    %92 = vector.shape_cast %27 : vector<8x1xi1> to vector<8x1xi1>
    %93 = vector.broadcast %92 : vector<8x1xi1> to vector<8x64xi1>
    %94 = vector.broadcast %cst_64 : f32 to vector<8x64xf32>
    %95 = arith.select %93, %91, %94 : vector<8x64xi1>, vector<8x64xf32>
    %cst_65 = arith.constant dense<0.000000e+00> : vector<64xf32>
    %96 = vector.multi_reduction <add>, %95, %cst_65 [0] : vector<8x64xf32> to vector<64xf32>
    %97 = vector.shape_cast %96 : vector<64xf32> to vector<1x64xf32>
    %cst_66 = arith.constant 1.000000e+00 : f32
    %98 = vector.broadcast %cst_66 : f32 to vector<1x64xf32>
    %99 = arith.mulf %97, %98 : vector<1x64xf32>
    %100 = vector.shape_cast %99 : vector<1x64xf32> to vector<1x1x64xf32>
    %c0_67 = arith.constant 0 : index
    %c0_68 = arith.constant 0 : index
    %c0_69 = arith.constant 0 : index
    %101 = vector.load %arg8[%c0_67, %c0_68, %c0_69] : memref<1x1x64xf32, #tpu.memory_space<vmem>>, vector<1x1x64xf32>
    tpu.vector_store %arg8[%c0_67, %c0_68, %c0_69], %100 {strides = array<i32>} : memref<1x1x64xf32, #tpu.memory_space<vmem>>, vector<1x1x64xf32>,
    return
  }
  func.func @transform_0(%arg0: i32) -> (i32, i32, i32) {
    %c0_i32 = arith.constant 0 : i32
    %c0_i32_0 = arith.constant 0 : i32
    %c0_i32_1 = arith.constant 0 : i32
    return %arg0, %c0_i32, %c0_i32_0 : i32, i32, i32
  }
  func.func @transform_1(%arg0: i32) -> (i32, i32) {
    %c0_i32 = arith.constant 0 : i32
    %c0_i32_0 = arith.constant 0 : i32
    %c0_i32_1 = arith.constant 0 : i32
    return %c0_i32, %c0_i32_0 : i32, i32
  }
  func.func @transform_2(%arg0: i32) -> (i32, i32) {
    %c0_i32 = arith.constant 0 : i32
    %c0_i32_0 = arith.constant 0 : i32
    %c0_i32_1 = arith.constant 0 : i32
    return %c0_i32, %c0_i32_0 : i32, i32
  }
  func.func @transform_3(%arg0: i32) -> (i32, i32, i32) {
    %c0_i32 = arith.constant 0 : i32
    %c0_i32_0 = arith.constant 0 : i32
    %c0_i32_1 = arith.constant 0 : i32
    %c0_i32_2 = arith.constant 0 : i32
    return %c0_i32, %c0_i32_0, %c0_i32_1 : i32, i32, i32
  }
  func.func @transform_4(%arg0: i32) -> (i32, i32) {
    %c0_i32 = arith.constant 0 : i32
    %c0_i32_0 = arith.constant 0 : i32
    %c0_i32_1 = arith.constant 0 : i32
    return %c0_i32, %c0_i32_0 : i32, i32
  }
  func.func @transform_5(%arg0: i32) -> (i32, i32) {
    %c0_i32 = arith.constant 0 : i32
    %c0_i32_0 = arith.constant 0 : i32
    %c0_i32_1 = arith.constant 0 : i32
    return %c0_i32, %c0_i32_0 : i32, i32
  }
  func.func @transform_6(%arg0: i32) -> (i32, i32) {
    %c0_i32 = arith.constant 0 : i32
    %c0_i32_0 = arith.constant 0 : i32
    %c0_i32_1 = arith.constant 0 : i32
    return %c0_i32, %c0_i32_0 : i32, i32
  }
  func.func @transform_7(%arg0: i32) -> (i32, i32, i32) {
    %c0_i32 = arith.constant 0 : i32
    %c0_i32_0 = arith.constant 0 : i32
    %c0_i32_1 = arith.constant 0 : i32
    return %arg0, %c0_i32, %c0_i32_0 : i32, i32, i32
  }
}

</mosaic_0001>

<bundles_post_ra>
// kernel: _lambda_.6
= control target key start
LH: loop header
LB: loop body
LE: loop exit
PB: predicated region body
PF: predicated region fallthrough
CT: control target
= control target key end

     0   :  { %s653_s12 = smov 0   ;;  %s774_s0 = inlined_call_operand.vmem [shape: bf16[2,64,200], index: 0, kind: input, shape index: {}]   ;;  %s775_s1 = inlined_call_operand.vmem [shape: bf16[200,8], index: 1, kind: input, shape index: {}]   ;;  %s776_s2 = inlined_call_operand.vmem [shape: f32[1,8], index: 2, kind: input, shape index: {}]   ;;  %s777_s3 = inlined_call_operand.vmem [shape: bf16[2,64,8], index: 3, kind: output, shape index: {}]  }
   0x1 LB: > { %s509_s13 = sadd.s32 4294967295, %s630_s12   ;;  %p513_p0 = scmp.ge.s32.totalorder %s630_s12, 1  ;;  %s630_s12 = sphi %s653_s12, %s13_s12  }
   0x2   : > { %p137_p1 = scmp.lt.s32.totalorder %s630_s12, 3 }
   0x4   : > { %p138_p2 = pnand %p513_p0, %p137_p1 }
   0x5   : > { %v599_v0 = vld [vmem:[%s775_s1] sm:$0xff] (!%p138_p2)   ;;  %v632_v1 = vmov (!%p138_p2), 0   ;;  %v600_v2 = vld [vmem:[%s775_s1 + $0x8] sm:$0xff] (!%p138_p2)   ;;  %p161_p3 = scmp.lt.s32.totalorder (!%p138_p2), %s509_s13, 1  ;;  %v601_v3 = vld [vmem:[%s775_s1 + $0x10] sm:$0xff] (!%p138_p2)   ;;  %vm323_vm0 = vcmask (!%p138_p2), 588800  }
   0x6   : > { %141 = sbr.rel (%p138_p2) target bundleno = 287 (0x11f), region = 32  ;;  %340 = vmatprep.subr.bf16.mxu0 (!%p138_p2), %v632_v1  ;;  %564 = vmatprep.subr.bf16.mxu1 (!%p138_p2), %v632_v1  ;;  %v602_v4 = vld [vmem:[%s775_s1 + $0x18] sm:$0xff] (!%p138_p2)   ;;  %v603_v6 = vld [vmem:[%s775_s1 + $0x20] sm:$0xff] (!%p138_p2)   ;;  %v604_v8 = vld [vmem:[%s775_s1 + $0x28] sm:$0xff] (!%p138_p2)   ;;  %vm336_vm1 = vcmask (!%p138_p2), 1043456   ;;  %vm445_vm2 = vcmask (!%p138_p2), 60416  }
   0x7   : > { %341 = vmatpush1.bf16.msra.mxu0 (!%p138_p2), %v599_v0  ;;  %577 = vmatpush1.bf16.msra.mxu1 (!%p138_p2), %v599_v0  ;;  %v605_v9 = vld [vmem:[%s775_s1 + $0x30] sm:$0xff] (!%p138_p2)   ;;  %v606_v10 = vld [vmem:[%s775_s1 + $0x38] sm:$0xff] (!%p138_p2)   ;;  %v607_v11 = vld [vmem:[%s775_s1 + $0x40] sm:$0xff] (!%p138_p2)  }
   0x8   : > { %342 = vmatprep.subr.bf16.mxu0 (!%p138_p2), %v632_v1  ;;  %565 = vmatprep.subr.bf16.mxu1 (!%p138_p2), %v632_v1  ;;  %v608_v12 = vld [vmem:[%s775_s1 + $0x48] sm:$0xff] (!%p138_p2)   ;;  %v609_v13 = vld [vmem:[%s775_s1 + $0x50] sm:$0xff] (!%p138_p2)   ;;  %v610_v14 = vld [vmem:[%s775_s1 + $0x58] sm:$0xff] (!%p138_p2)  }
   0x9   : > { %v611_v15 = vld [vmem:[%s775_s1 + $0x60] ss:$0 sps:$4 sm:$0xff] (!%p138_p2)  }
   0xa   : > { %v338_v16 = vsel (!%p138_p2), %vm336_vm1, %v611_v15, 0  ;;  %v518_v23 = vld [vmem:[%s776_s2] ss:$0 sm:$0xff] (!%p138_p2) }
   0xb   : > { %343 = vmatpush1.bf16.msra.mxu0 (!%p138_p2), %v600_v2  ;;  %578 = vmatpush1.bf16.msra.mxu1 (!%p138_p2), %v600_v2 }
   0xc   : > { %344 = vmatprep.subr.bf16.mxu0 (!%p138_p2), %v632_v1  ;;  %566 = vmatprep.subr.bf16.mxu1 (!%p138_p2), %v632_v1 }
   0xd   : > { %s779_s13 = smov (!%p161_p3, %s509_s13), 1 }
   0xe   : > { %s554_s20 = sshll.u32 %s779_s13, 6  ;;  %s555_s21 = sshll.u32 %s779_s13, 5 }
   0xf   : > { %345 = vmatpush1.bf16.msra.mxu0 %v601_v3  ;;  %579 = vmatpush1.bf16.msra.mxu1 %v601_v3  ;;  %s685_s25 = scalar_lea.vmem %s774_s0, %s554_s20  ;;  %s753_s24 = scalar_lea.vmem %s777_s3, %s555_s21 }
  0x10   : > { %346 = vmatprep.subr.bf16.mxu0 %v632_v1  ;;  %567 = vmatprep.subr.bf16.mxu1 %v632_v1  ;;  %v614_v5 = vld [vmem:[%s685_s25 + $0x4] ss:$8 sps:$4 sm:$0xff]   ;;  %v612_v17 = vld [vmem:[%s685_s25] ss:$8 sps:$4 sm:$0xff]   ;;  %v618_v19 = vld [vmem:[%s685_s25 + $0x14] ss:$8 sps:$4 sm:$0xff]  }
  0x11   : > { %v617_v7 = vld [vmem:[%s685_s25 + $0x24] ss:$8 sps:$4 sm:$0xff]   ;;  %540 = vmatprep.mubr.msk.bf16.mxu0 %vm323_vm0, %v614_v5  ;;  %v615_v18 = vld [vmem:[%s685_s25 + $0x20] ss:$8 sps:$4 sm:$0xff]   ;;  %v620_v20 = vld [vmem:[%s685_s25 + $0x34] ss:$8 sps:$4 sm:$0xff]  }
  0x12   : > { %542 = vmatprep.mubr.msk.bf16.mxu1 %vm323_vm0, %v617_v7  ;;  %v622_v21 = vld [vmem:[%s685_s25 + $0x10] ss:$8 sps:$4 sm:$0xff]  }
  0x13   : > { %347 = vmatpush1.bf16.msra.mxu0 %v602_v4  ;;  %580 = vmatpush1.bf16.msra.mxu1 %v602_v4  ;;  %v623_v22 = vld [vmem:[%s685_s25 + $0x30] ss:$8 sps:$4 sm:$0xff]  }
  0x14   : > { %348 = vmatprep.subr.bf16.mxu0 %v632_v1  ;;  %568 = vmatprep.subr.bf16.mxu1 %v632_v1 }
  0x17   : > { %349 = vmatpush1.bf16.msra.mxu0 %v603_v6  ;;  %581 = vmatpush1.bf16.msra.mxu1 %v603_v6 }
  0x18   : > { %350 = vmatprep.subr.bf16.mxu0 %v632_v1  ;;  %569 = vmatprep.subr.bf16.mxu1 %v632_v1 }
  0x1b   : > { %351 = vmatpush1.bf16.msra.mxu0 %v604_v8  ;;  %582 = vmatpush1.bf16.msra.mxu1 %v604_v8 }
  0x1c   : > { %352 = vmatprep.subr.bf16.mxu0 %v632_v1  ;;  %570 = vmatprep.subr.bf16.mxu1 %v632_v1 }
  0x1f   : > { %353 = vmatpush1.bf16.msra.mxu0 %v605_v9  ;;  %583 = vmatpush1.bf16.msra.mxu1 %v605_v9 }
  0x20   : > { %354 = vmatprep.subr.bf16.mxu0 %v632_v1  ;;  %571 = vmatprep.subr.bf16.mxu1 %v632_v1 }
  0x23   : > { %355 = vmatpush1.bf16.msra.mxu0 %v606_v10  ;;  %584 = vmatpush1.bf16.msra.mxu1 %v606_v10 }
  0x24   : > { %356 = vmatprep.subr.bf16.mxu0 %v632_v1  ;;  %572 = vmatprep.subr.bf16.mxu1 %v632_v1 }
  0x27   : > { %357 = vmatpush1.bf16.msra.mxu0 %v607_v11  ;;  %585 = vmatpush1.bf16.msra.mxu1 %v607_v11 }
  0x28   : > { %358 = vmatprep.subr.bf16.mxu0 %v632_v1  ;;  %573 = vmatprep.subr.bf16.mxu1 %v632_v1 }
  0x2b   : > { %359 = vmatpush1.bf16.msra.mxu0 %v608_v12  ;;  %586 = vmatpush1.bf16.msra.mxu1 %v608_v12 }
  0x2c   : > { %360 = vmatprep.subr.bf16.mxu0 %v632_v1  ;;  %574 = vmatprep.subr.bf16.mxu1 %v632_v1 }
  0x2f   : > { %361 = vmatpush1.bf16.msra.mxu0 %v609_v13  ;;  %587 = vmatpush1.bf16.msra.mxu1 %v609_v13 }
  0x30   : > { %362 = vmatprep.subr.bf16.mxu0 %v632_v1  ;;  %575 = vmatprep.subr.bf16.mxu1 %v632_v1 }
  0x33   : > { %363 = vmatpush1.bf16.msra.mxu0 %v610_v14  ;;  %588 = vmatpush1.bf16.msra.mxu1 %v610_v14 }
  0x34   : > { %364 = vmatprep.subr.bf16.mxu0 %v632_v1  ;;  %576 = vmatprep.subr.bf16.mxu1 %v632_v1 }
  0x37   : > { %365 = vmatpush1.bf16.msra.mxu0 %v338_v16  ;;  %589 = vmatpush1.bf16.msra.mxu1 %v338_v16 }
  0x3a   : > { %373 = vmatmul.mubr.bf16.vlgmr.msra.gmra.mrb[0].mxu0 %v612_v17  ;;  %389 = vmatmul.mubr.bf16.vlgmr.msra.gmra.mrb[0].mxu1 %v615_v18 }
  0x3b   : > { %541 = vmatprep.mubr.msk.bf16.mxu0 %vm323_vm0, %v618_v19  ;;  %543 = vmatprep.mubr.msk.bf16.mxu1 %vm323_vm0, %v620_v20 }
  0x42   : > { %381 = vmatmul.mubr.bf16.gmra.mrb[4].mxu0 %v622_v21  ;;  %397 = vmatmul.mubr.bf16.gmra.mrb[4].mxu1 %v623_v22 }
 0x10d   : > { %v374_v24 = vpop.f32.mrb[0].mxu0  ;;  %v390_v25 = vpop.f32.mrb[0].mxu1 }
 0x10e   : > { %v375_v26 = vadd.f32 %v518_v23, %v374_v24  ;;  %v391_v27 = vadd.f32 %v518_v23, %v390_v25  ;;  %v376_v28 = vpop.f32.mrb[1].mxu0  ;;  %v392_v29 = vpop.f32.mrb[1].mxu1 }
 0x10f   : > { %v377_v30 = vpop.f32.mrb[2].mxu0  ;;  %v393_v31 = vpop.f32.mrb[2].mxu1 }
 0x110   : > { %v405_v32 = vmax.f32 %v375_v26, 0.0  ;;  %v409_v33 = vmax.f32 %v391_v27, 0.0  ;;  %v378_v34 = vadd.f32 %v518_v23, %v377_v30  ;;  %v394_v35 = vadd.f32 %v518_v23, %v393_v31  ;;  %v379_v36 = vpop.f32.mrb[3].mxu0  ;;  %v395_v37 = vpop.f32.mrb[3].mxu1 }
 0x112   : > { %v556_v38 = vpack.c.bf16 %v405_v32, %v405_v32  ;;  %v560_v39 = vpack.c.bf16 %v409_v33, %v409_v33  ;;  %v406_v40 = vmax.f32 %v378_v34, 0.0  ;;  %v410_v41 = vmax.f32 %v394_v35, 0.0 }
 0x114   : > { %446 = vst.msk [vmem:[%s753_s24] sm:$0xf] %vm445_vm2, %v556_v38  ;;  %450 = vst.msk [vmem:[%s753_s24 + $0x10] sm:$0xf] %vm445_vm2, %v560_v39  ;;  %v557_v42 = vpack.c.bf16 %v406_v40, %v406_v40  ;;  %v561_v43 = vpack.c.bf16 %v410_v41, %v410_v41 }
 0x115   : > { %v382_v44 = vpop.f32.mrb[4].mxu0  ;;  %v398_v45 = vpop.f32.mrb[4].mxu1 }
 0x116   : > { %447 = vst.msk [vmem:[%s753_s24 + $0x4] sm:$0xf] %vm445_vm2, %v557_v42  ;;  %451 = vst.msk [vmem:[%s753_s24 + $0x14] sm:$0xf] %vm445_vm2, %v561_v43  ;;  %v383_v46 = vadd.f32 %v518_v23, %v382_v44  ;;  %v399_v47 = vadd.f32 %v518_v23, %v398_v45  ;;  %v384_v48 = vpop.f32.mrb[5].mxu0  ;;  %v400_v49 = vpop.f32.mrb[5].mxu1 }
 0x117   : > { %v385_v50 = vpop.f32.mrb[6].mxu0  ;;  %v401_v51 = vpop.f32.mrb[6].mxu1 }
 0x118   : > { %v407_v52 = vmax.f32 %v383_v46, 0.0  ;;  %v411_v53 = vmax.f32 %v399_v47, 0.0  ;;  %v386_v54 = vadd.f32 %v518_v23, %v385_v50  ;;  %v402_v55 = vadd.f32 %v518_v23, %v401_v51  ;;  %v387_v56 = vpop.f32.mrb[7].mxu0  ;;  %v403_v57 = vpop.f32.mrb[7].mxu1 }
 0x11a   : > { %v558_v58 = vpack.c.bf16 %v407_v52, %v407_v52  ;;  %v562_v59 = vpack.c.bf16 %v411_v53, %v411_v53  ;;  %v408_v60 = vmax.f32 %v386_v54, 0.0  ;;  %v412_v61 = vmax.f32 %v402_v55, 0.0 }
 0x11c   : > { %448 = vst.msk [vmem:[%s753_s24 + $0x8] sm:$0xf] %vm445_vm2, %v558_v58  ;;  %452 = vst.msk [vmem:[%s753_s24 + $0x18] sm:$0xf] %vm445_vm2, %v562_v59  ;;  %v559_v62 = vpack.c.bf16 %v408_v60, %v408_v60  ;;  %v563_v63 = vpack.c.bf16 %v412_v61, %v412_v61 }
 0x11e   : > { %449 = vst.msk [vmem:[%s753_s24 + $0xc] sm:$0xf] %vm445_vm2, %v559_v62  ;;  %453 = vst.msk [vmem:[%s753_s24 + $0x1c] sm:$0xf] %vm445_vm2, %v563_v63 }
 0x11f PF: > { %s13_s12 = sadd.s32 1, %s630_s12  }
 0x120   : > { %p10_p4 = scmp.ge.s32.totalorder %s13_s12, 4  }
 0x122   :  { %12 = sbr.rel (!%p10_p4) target bundleno = 1 (0x1), region = 62 }

// kernel: _lambda_.7
= control target key start
LH: loop header
LB: loop body
LE: loop exit
PB: predicated region body
PF: predicated region fallthrough
CT: control target
= control target key end

     0   :  { %s422_s6 = smov 0   ;;  %s424_s7 = smov 0   ;;  %s496_s0 = inlined_call_operand.vmem [shape: bf16[9,2,16,8], index: 0, kind: input, shape index: {}]   ;;  %s497_s1 = inlined_call_operand.vmem [shape: bf16[2,16,8], index: 1, kind: output, shape index: {}]  }
   0x1   :  { %s426_s8 = smov 0  }
   0x2 LB: > { %s333_s9 = sadd.s32 4294967295, %s410_s8   ;;  %s439_s10 = sadd.s32 1, %s410_s8   ;;  %s410_s8 = sphi %s426_s8, %s500_s8   ;;  %s406_s7 = sphi %s424_s7, %s499_s7   ;;  %s402_s6 = sphi %s422_s6, %s498_s6  }
   0x3   : > { %s15_s11 = ssub.s32 %s410_s8, %s439_s10  ;;  %s18_s12 = sadd.s32 1, %s406_s7 }
   0x4   : > { %p16_p0 = scmp.eq.s32.totalorder %s15_s11, 0  ;;  %p25_p1 = scmp.ne.s32.totalorder %s406_s7, %s402_s6 }
   0x5   : > { %p26_p2 = scmp.eq.s32.totalorder %s410_s8, 0  ;;  %p336_p4 = scmp.ge.s32.totalorder %s410_s8, 2 }
   0x6   : > { %s448_s13 = scalar_select %p16_p0, %s406_s7, %s18_s12  }
   0x7   : > { %p27_p3 = por %p26_p2, %p25_p1  ;;  %77 = sbr.rel (%p336_p4) target bundleno = 23 (0x17), region = 16 }
   0xe   : > { %80 = sbr.rel (!%p27_p3) target bundleno = 23 (0x17), region = 20  ;;  %s82_s14 = sand.u32 (%p27_p3), 1, %s406_s7  }
   0xf   : > { %s360_s15 = sshll.u32 (%p27_p3), %s410_s8, 3  ;;  %s362_s16 = smul.u32 (%p27_p3), 72, %s82_s14 }
  0x10   : > { %s87_s19 = scalar_lea.vmem (%p27_p3), %s496_s0, %s360_s15 }
  0x11   : > { %v103_v0 = vld [vmem:[%s87_s19] sm:$0xff] (%p27_p3)   ;;  %v107_v1 = vld [vmem:[%s87_s19 + $0x10] sm:$0xff] (%p27_p3)   ;;  %s84_s20 = scalar_lea.vmem (%p27_p3), [#allocation2], %s362_s16 }
  0x12   : > { %v111_v2 = vld [vmem:[%s87_s19 + $0x20] sm:$0xff] (%p27_p3)   ;;  %v115_v3 = vld [vmem:[%s87_s19 + $0x30] sm:$0xff] (%p27_p3)   ;;  %104 = vst [vmem:[%s84_s20] sm:$0xff] (%p27_p3), %v103_v0   ;;  %108 = vst [vmem:[%s84_s20 + $0x8] sm:$0xff] (%p27_p3), %v107_v1  }
  0x13   : > { %v119_v4 = vld [vmem:[%s87_s19 + $0x40] sm:$0xff] (%p27_p3)   ;;  %v123_v5 = vld [vmem:[%s87_s19 + $0x50] sm:$0xff] (%p27_p3)   ;;  %112 = vst [vmem:[%s84_s20 + $0x10] sm:$0xff] (%p27_p3), %v111_v2   ;;  %116 = vst [vmem:[%s84_s20 + $0x18] sm:$0xff] (%p27_p3), %v115_v3  }
  0x14   : > { %120 = vst [vmem:[%s84_s20 + $0x20] sm:$0xff] (%p27_p3), %v119_v4   ;;  %124 = vst [vmem:[%s84_s20 + $0x28] sm:$0xff] (%p27_p3), %v123_v5   ;;  %v127_v6 = vld [vmem:[%s87_s19 + $0x60] sm:$0xff] (%p27_p3)   ;;  %v131_v7 = vld [vmem:[%s87_s19 + $0x70] sm:$0xff] (%p27_p3)  }
  0x15   : > { %v135_v8 = vld [vmem:[%s87_s19 + $0x80] sm:$0xff]   ;;  %128 = vst [vmem:[%s84_s20 + $0x30] sm:$0xff] %v127_v6   ;;  %132 = vst [vmem:[%s84_s20 + $0x38] sm:$0xff] %v131_v7  }
  0x16   : > { %136 = vst [vmem:[%s84_s20 + $0x40] sm:$0xff] %v135_v8  }
  0x17 PF: > { %p339_p5 = scmp.ge.s32.totalorder %s410_s8, 1  ;;  %p196_p6 = scmp.lt.s32.totalorder %s410_s8, 3 }
  0x19   : > { %p197_p7 = pnand %p339_p5, %p196_p6 }
  0x1a   : > { %s203_s21 = sand.u32 (!%p197_p7), 1, %s402_s6   ;;  %p222_p8 = scmp.lt.s32.totalorder (!%p197_p7), %s333_s9, 1  ;;  %vm269_vm0 = vcmask (!%p197_p7), 60416  }
  0x1b   : > { %200 = sbr.rel (%p197_p7) target bundleno = 50 (0x32), region = 61 }
  0x1c   : > { %s363_s22 = smul.u32 (!%p197_p7), 72, %s203_s21 }
  0x1e   : > { %s459_s23 = scalar_lea.vmem (!%p197_p7), [#allocation2], %s363_s22 }
  0x1f   : > { %v227_v9 = vld [vmem:[%s459_s23] sm:$0xf] (!%p197_p7)  ;;  %v342_v10 = vld [vmem:[%s459_s23 + $0x8] sm:$0xf] (!%p197_p7)  ;;  %v344_v12 = vld [vmem:[%s459_s23 + $0x10] sm:$0xf] (!%p197_p7) }
  0x20   : > { %v232_v11 = vmax.bf16 (!%p197_p7), %v342_v10, %v227_v9  ;;  %v346_v13 = vld [vmem:[%s459_s23 + $0x18] sm:$0xf] (!%p197_p7)  ;;  %v228_v15 = vld [vmem:[%s459_s23 + $0x4] sm:$0xf] (!%p197_p7)  ;;  %v343_v16 = vld [vmem:[%s459_s23 + $0xc] sm:$0xf] (!%p197_p7) }
  0x21   : > { %v348_v17 = vld [vmem:[%s459_s23 + $0x20] sm:$0xf] (!%p197_p7)  ;;  %v233_v18 = vmax.bf16 (!%p197_p7), %v343_v16, %v228_v15  ;;  %v345_v19 = vld [vmem:[%s459_s23 + $0x14] sm:$0xf] (!%p197_p7)  ;;  %v347_v21 = vld [vmem:[%s459_s23 + $0x1c] sm:$0xf] (!%p197_p7) }
  0x22   : > { %v237_v14 = vmax.bf16 %v344_v12, %v232_v11  ;;  %v350_v22 = vld [vmem:[%s459_s23 + $0x28] sm:$0xf]  ;;  %s502_s9 = smov (!%p222_p8, %s333_s9), 1  ;;  %v349_v25 = vld [vmem:[%s459_s23 + $0x24] sm:$0xf] }
  0x23   : > { %v238_v23 = vmax.bf16 %v345_v19, %v233_v18  ;;  %v352_v26 = vld [vmem:[%s459_s23 + $0x30] sm:$0xf]  ;;  %v351_v29 = vld [vmem:[%s459_s23 + $0x2c] sm:$0xf]  ;;  %v354_v30 = vld [vmem:[%s459_s23 + $0x38] sm:$0xf] }
  0x24   : > { %v242_v20 = vmax.bf16 %v346_v13, %v237_v14  ;;  %s361_s24 = sshll.u32 %s502_s9, 3  ;;  %v353_v33 = vld [vmem:[%s459_s23 + $0x34] sm:$0xf]  ;;  %v356_v34 = vld [vmem:[%s459_s23 + $0x40] sm:$0xf] }
  0x25   : > { %v243_v27 = vmax.bf16 %v347_v21, %v238_v23  ;;  %v355_v37 = vld [vmem:[%s459_s23 + $0x3c] sm:$0xf]  ;;  %s226_s27 = scalar_lea.vmem %s497_s1, %s361_s24  ;;  %v357_v40 = vld [vmem:[%s459_s23 + $0x44] sm:$0xf] }
  0x26   : > { %v247_v24 = vmax.bf16 %v348_v17, %v242_v20 }
  0x27   : > { %v248_v31 = vmax.bf16 %v349_v25, %v243_v27 }
  0x28   : > { %v252_v28 = vmax.bf16 %v350_v22, %v247_v24 }
  0x29   : > { %v253_v35 = vmax.bf16 %v351_v29, %v248_v31 }
  0x2a   : > { %v257_v32 = vmax.bf16 %v352_v26, %v252_v28 }
  0x2b   : > { %v258_v38 = vmax.bf16 %v353_v33, %v253_v35 }
  0x2c   : > { %v262_v36 = vmax.bf16 %v354_v30, %v257_v32 }
  0x2d   : > { %v263_v41 = vmax.bf16 %v355_v37, %v258_v38 }
  0x2e   : > { %v267_v39 = vmax.bf16 %v356_v34, %v262_v36 }
  0x2f   : > { %v268_v42 = vmax.bf16 %v357_v40, %v263_v41 }
  0x30   : > { %270 = vst.msk [vmem:[%s226_s27] sm:$0xf] %vm269_vm0, %v267_v39 }
  0x31   : > { %271 = vst.msk [vmem:[%s226_s27 + $0x4] sm:$0xf] %vm269_vm0, %v268_v42 }
  0x32 PF: > { %p8_p9 = scmp.ge.s32.totalorder %s439_s10, 4   ;;  %s498_s6 = smov %s406_s7 }
  0x33   : > { %s499_s7 = smov %s448_s13  ;;  %s500_s8 = smov %s439_s10 }
  0x34   :  { %10 = sbr.rel (!%p8_p9) target bundleno = 2 (0x2), region = 108 }

// kernel: _lambda_.8
= control target key start
LH: loop header
LB: loop body
LE: loop exit
PB: predicated region body
PF: predicated region fallthrough
CT: control target
= control target key end

     0   :  { %s1539_s18 = smov 0   ;;  %s1695_s0 = inlined_call_operand.vmem [shape: bf16[2,32,72], index: 0, kind: input, shape index: {}]   ;;  %s1696_s1 = inlined_call_operand.vmem [shape: bf16[72,8], index: 1, kind: input, shape index: {}]   ;;  %s1697_s2 = inlined_call_operand.vmem [shape: f32[1,8], index: 2, kind: input, shape index: {}]   ;;  %s1698_s3 = inlined_call_operand.vmem [shape: bf16[9,8,8], index: 3, kind: input, shape index: {}]   ;;  %s1699_s4 = inlined_call_operand.vmem [shape: f32[1,8], index: 4, kind: input, shape index: {}]   ;;  %s1700_s5 = inlined_call_operand.vmem [shape: bf16[2,32,8], index: 5, kind: output, shape index: {}]  }
   0x1 LB: > { %s1264_s19 = sadd.s32 4294967295, %s1505_s18   ;;  %p1268_p0 = scmp.ge.s32.totalorder %s1505_s18, 1  ;;  %s1505_s18 = sphi %s1539_s18, %s15_s18  }
   0x2   : > { %p187_p1 = scmp.lt.s32.totalorder %s1505_s18, 3 }
   0x4   : > { %p188_p2 = pnand %p1268_p0, %p187_p1 }
   0x5   : > { %v1486_v0 = vld [vmem:[%s1696_s1] sm:$0xff] (!%p188_p2)   ;;  %v1487_v1 = vld [vmem:[%s1696_s1 + $0x8] sm:$0xff] (!%p188_p2)   ;;  %p215_p3 = scmp.lt.s32.totalorder (!%p188_p2), %s1264_s19, 1  ;;  %v1488_v2 = vld [vmem:[%s1696_s1 + $0x10] sm:$0xff] (!%p188_p2)   ;;  %vm283_vm0 = vcmask (!%p188_p2), 588800   ;;  %vm290_vm1 = vcmask (!%p188_p2), 1043456   ;;  %v347_v21 = vlaneseq (!%p188_p2) }
   0x6   : > { %191 = sbr.rel (%p188_p2) target bundleno = 551 (0x227), region = 40  ;;  %1356 = vmatprep.subr.bf16.mxu0 (!%p188_p2), %v1486_v0  ;;  %v1489_v4 = vld [vmem:[%s1696_s1 + $0x18] sm:$0xff] (!%p188_p2)   ;;  %v1490_v5 = vld [vmem:[%s1696_s1 + $0x20] ss:$0 sps:$4 sm:$0xff] (!%p188_p2)   ;;  %vm416_vm2 = vcmask (!%p188_p2), 64512   ;;  %v1507_v8 = vmov (!%p188_p2), 0  }
   0x7   : > { %1357 = vmatpush3.bf16.msra.mxu0 (!%p188_p2), %v1486_v0  ;;  %v292_v7 = vsel (!%p188_p2), %vm290_vm1, %v1490_v5, 0  ;;  %417 = vst.msk [vmem:[#allocation2] sm:$0xff] (!%p188_p2), %vm416_vm2, %v1507_v8  ;;  %419 = vst.msk [vmem:[#allocation2 + $0x10] sm:$0xff] (!%p188_p2), %vm416_vm2, %v1507_v8  ;;  %v1283_v9 = vld [vmem:[%s1698_s3 + $0x4] sm:$0xf] (!%p188_p2)  ;;  %s1508_s17 = smov (!%p188_p2), 96  }
   0x8   : > { %1358 = vmatprep.subr.bf16.mxu0 (!%p188_p2), %v1487_v1  ;;  %420 = vst.msk [vmem:[#allocation2 + $0x18] sm:$0xff] (!%p188_p2), %vm416_vm2, %v1507_v8  ;;  %418 = vst.msk [vmem:[#allocation2 + $0x8] sm:$0xff] (!%p188_p2), %vm416_vm2, %v1507_v8  ;;  %v448_v10 = vsel (!%p188_p2), %vm290_vm1, %v1283_v9, 0  ;;  %v1291_v11 = vld [vmem:[%s1698_s3 + $0xc] sm:$0xf] (!%p188_p2)  ;;  %v348_v22 = vshrl.u32 (!%p188_p2), %v347_v21, 7 }
   0x9   : > { %1460 = vmatprep.subr.msk.bf16.mxu1 (!%p188_p2), %vm290_vm1, %v1291_v11  ;;  %v698_v12 = vsel (!%p188_p2), %vm290_vm1, %v1291_v11, 0  ;;  %v1589_v13 = vld [vmem:[%s1698_s3 + $0x10] sm:$0xf] (!%p188_p2)  ;;  %v1596_v14 = vld [vmem:[%s1698_s3] sm:$0xf] (!%p188_p2)  ;;  %vm1204_vm11 = vcmask (!%p188_p2), 60416  }
   0xa   : > { %1389 = vmatpush3.bf16.msra.mxu1 (!%p188_p2), %v698_v12  ;;  %v350_v23 = vadd.s32 (!%p188_p2), 16, %v348_v22  ;;  %v351_v24 = vadd.s32 (!%p188_p2), 24, %v348_v22  ;;  %v349_v25 = vadd.s32 (!%p188_p2), 8, %v348_v22  ;;  %v1273_v26 = vld [vmem:[%s1697_s2] ss:$0 sm:$0xff] (!%p188_p2)  ;;  %v356_v32 = vand.u32 (!%p188_p2), 7, %v348_v22 }
   0xb   : > { %1359 = vmatpush3.bf16.msra.mxu0 (!%p188_p2), %v1487_v1  ;;  %1461 = vmatprep.subr.msk.bf16.mxu1 (!%p188_p2), %vm290_vm1, %v1589_v13  ;;  %vm499_vm7 = vsmask.f32 (!%p188_p2), 4352  ;;  %vm675_vm8 = vsmask.f32 (!%p188_p2), 256  ;;  %vm587_vm9 = vsmask.f32 (!%p188_p2), 3328 }
   0xc   : > { %1360 = vmatprep.subr.bf16.mxu0 (!%p188_p2), %v1488_v2  ;;  %v370_v28 = vand.u32 (!%p188_p2), 7, %v350_v23  ;;  %v377_v29 = vand.u32 (!%p188_p2), 7, %v351_v24  ;;  %v363_v33 = vand.u32 (!%p188_p2), 7, %v349_v25  ;;  %vm400_vm5 = vcmp.lt.s32.totalorder (!%p188_p2), %v356_v32, 4 }
   0xd   : > { %s1702_s19 = smov (!%p215_p3, %s1264_s19), 1  ;;  %v760_v24 = vsel %vm290_vm1, %v1589_v13, 0  ;;  %vm820_vm10 = vsmask.f32 7424 }
   0xe   : > { %s1316_s26 = sshll.u32 %s1702_s19, 4  ;;  %vm402_vm3 = vcmp.lt.s32.totalorder %v370_v28, 4  ;;  %vm403_vm4 = vcmp.lt.s32.totalorder %v377_v29, 4  ;;  %vm401_vm6 = vcmp.lt.s32.totalorder %v363_v33, 4  ;;  %v425_v49 = vld [vmem:[#allocation2] sm:$0xf8] }
   0xf   : > { %s219_s29 = scalar_lea.vmem %s1695_s0, %s1316_s26  ;;  %1361 = vmatpush3.bf16.msra.mxu0 %v1488_v2  ;;  %v501_v50 = vshrl.u32 %v425_v49, 16  ;;  %v504_v51 = vshll.u32 %v425_v49, 16  ;;  %v429_v52 = vld [vmem:[#allocation2] sm:$0xf0]  ;;  %v817_v49 = vld [vmem:[#allocation2 + $0x18] sm:$0x1]  ;;  %s224_s12 = scalar_lea.vmem %s1700_s5, %s1316_s26 }
  0x10   : > { %v226_v3 = vld [vmem:[%s219_s29] sm:$0xff]   ;;  %1362 = vmatprep.subr.bf16.mxu0 %v1489_v4  ;;  %v228_v6 = vld [vmem:[%s219_s29 + $0x8] sm:$0xff]   ;;  %v436_v56 = vrot.slane %v429_v52, 4  ;;  %v589_v63 = vshrl.u32 %v429_v52, 16 }
  0x11   : > { %1366 = vmatprep.mubr.msk.bf16.mxu0 %vm283_vm0, %v226_v3  ;;  %v1160_v15 = vunpack.c.l.bf16 %v226_v3  ;;  %v1161_v16 = vunpack.c.h.bf16 %v226_v3  ;;  %v1162_v17 = vunpack.c.l.bf16 %v228_v6  ;;  %v1163_v18 = vunpack.c.h.bf16 %v228_v6  ;;  %v671_v53 = vld [vmem:[#allocation2] sm:$0x80] }
  0x12   : > { %v503_v54 = vrot.slane %v501_v50, 3  ;;  %v506_v55 = vrot.slane %v504_v51, 4  ;;  %v677_v61 = vshrl.u32 %v671_v53, 16  ;;  %v591_v22 = vrot.slane %v589_v63, 4 }
  0x13   : > { %1363 = vmatpush3.bf16.msra.mxu0 %v1489_v4  ;;  %v1476_v19 = vpack.i.bf16 %v1161_v16, %v1160_v15  ;;  %v1481_v20 = vpack.i.bf16 %v1163_v18, %v1162_v17  ;;  %v1288_v17 = vld [vmem:[%s1698_s3 + $0x8] sm:$0xf]  ;;  %v837_v53 = vshll.u32 %v817_v49, 16 }
  0x14   : > { %1456 = vmatprep.subr.msk.bf16.mxu0 %vm290_vm1, %v1490_v5  ;;  %v507_v3 = vor.u32 %v506_v55, %v503_v54  ;;  %v679_v11 = vrot.slane %v677_v61, 7 }
  0x15   : > { %1477 = vrot.lane.b32.xlu0 %v1476_v19, %s1508_s17  ;;  %v592_v19 = vshll.u32 %v429_v52, 16  ;;  %v839_v61 = vrot.slane %v837_v53, 1 }
  0x17   : > { %1365 = vmatpush3.bf16.msra.mxu0 %v292_v7  ;;  %v594_v28 = vrot.slane %v592_v19, 5 }
  0x18   : > { %1457 = vmatprep.subr.msk.bf16.mxu0 %vm290_vm1, %v1283_v9 }
  0x19   : > { %1482 = vrot.lane.b32.xlu0 %v1481_v20, %s1508_s17  ;;  %v595_v13 = vor.u32 %v594_v28, %v591_v22  ;;  %v1063_v28 = vld [vmem:[#allocation2 + $0x18] sm:$0x1f] }
  0x1a   : > { %1367 = vmatmul.mubr.msk.bf16.vlgmr.msra.gmra.mrb[0].mxu0 %vm283_vm0, %v228_v6  ;;  %v533_v6 = vsel %vm290_vm1, %v1596_v14, 0 }
  0x1b   : > { %1371 = vmatpush3.bf16.msra.mxu0 %v448_v10 }
  0x1c   : > { %1458 = vmatprep.subr.msk.bf16.mxu0 %vm290_vm1, %v1596_v14 }
  0xed   : > { %v1368_v27 = vpop.f32.mrb[0].mxu0 }
  0xee   : > { %v337_v30 = vadd.f32 %v1368_v27, %v1273_v26  ;;  %v328_v31 = vpop.f32.mrb[1].mxu0 }
  0xef   : > { %v329_v34 = vadd.f32 %v1273_v26, %v328_v31  ;;  %v1369_v35 = vpop.f32.mrb[2].mxu0  ;;  %v1297_v31 = vld [vmem:[%s1698_s3 + $0x14] sm:$0xf] }
  0xf0   : > { %v345_v36 = vmax.f32 %v337_v30, 0.0  ;;  %v340_v37 = vadd.f32 %v1369_v35, %v1273_v26  ;;  %v331_v38 = vpop.f32.mrb[3].mxu0 }
  0xf1   : > { %v343_v39 = vmax.f32 %v329_v34, 0.0  ;;  %v332_v40 = vadd.f32 %v1273_v26, %v331_v38 }
  0xf2   : > { %v346_v41 = vmax.f32 %v340_v37, 0.0  ;;  %v414_v43 = vsel %vm402_vm3, %v345_v36, 0.0  ;;  %v616_v36 = vsel %vm290_vm1, %v1288_v17, 0 }
  0xf3   : > { %v344_v42 = vmax.f32 %v332_v40, 0.0  ;;  %v412_v45 = vsel %vm400_vm5, %v343_v39, 0.0 }
  0xf4   : > { %v415_v44 = vsel %vm403_vm4, %v346_v41, 0.0 }
  0xf5   : > { %v422_v46 = vpack.c.bf16 %v415_v44, %v414_v43  ;;  %v413_v47 = vsel %vm401_vm6, %v344_v42, 0.0  ;;  %v848_v43 = vsel %vm290_vm1, %v1297_v31, 0 }
  0xf6   : > { %v421_v48 = vpack.c.bf16 %v413_v47, %v412_v45  ;;  %v1300_v47 = vld [vmem:[%s1698_s3 + $0x18] sm:$0xf] }
  0xf7   : > { %424 = vst.msk [vmem:[#allocation2 + $0x10] sm:$0xff] %vm416_vm2, %v422_v46 }
  0xf8   : > { %423 = vst.msk [vmem:[#allocation2 + $0x8] sm:$0xff] %vm416_vm2, %v421_v48 }
  0xfe   : > { %v427_v57 = vld [vmem:[#allocation2 + $0x10] sm:$0xf] }
  0xff   : > { %v1605_v58 = vld [vmem:[#allocation2 + $0x10] sm:$0xff]  ;;  %v426_v59 = vld [vmem:[#allocation2 + $0x8] sm:$0xff]  ;;  %v439_v60 = vrot.slane %v427_v57, 4  ;;  %v518_v15 = vshrl.u32 %v427_v57, 16  ;;  %v521_v16 = vshll.u32 %v427_v57, 16 }
 0x100   : > { %v1608_v62 = vshrl.u32 %v1605_v58, 16  ;;  %v437_v0 = vrot.slane %v426_v59, 4  ;;  %v509_v1 = vshrl.u32 %v426_v59, 16  ;;  %v512_v2 = vshll.u32 %v426_v59, 16  ;;  %v584_v34 = vld [vmem:[#allocation2 + $0x10] sm:$0x1f] }
 0x101   : > { %v1612_v5 = vshll.u32 %v1605_v58, 16  ;;  %v520_v25 = vrot.slane %v518_v15, 3  ;;  %v523_v26 = vrot.slane %v521_v16, 4  ;;  %v601_v38 = vshrl.u32 %v584_v34, 16  ;;  %v903_v42 = vld [vmem:[#allocation2 + $0x8] sm:$0xf8] }
 0x102   : > { %v686_v4 = vrot.slane %v1608_v62, 7  ;;  %v438_v7 = vsel %vm290_vm1, %v436_v56, %v437_v0  ;;  %v440_v8 = vsel %vm290_vm1, %v437_v0, %v439_v60  ;;  %v511_v9 = vrot.slane %v509_v1, 3 }
 0x103   : > { %v514_v10 = vrot.slane %v512_v2, 4  ;;  %1372 = vmatprep.mubr.msk.bf16.mxu0 %vm416_vm2, %v438_v7  ;;  %v680_v12 = vrot.slane %v509_v1, 7  ;;  %v596_v29 = vrot.slane %v509_v1, 4  ;;  %v597_v30 = vrot.slane %v512_v2, 5 }
 0x104   : > { %1373 = vmatmul.mubr.msk.bf16.vlgmr.msra.gmra.mrb[4].mxu0 %vm416_vm2, %v440_v8  ;;  %v689_v14 = vor.u32 %v1612_v5, %v686_v4  ;;  %v524_v32 = vor.u32 %v523_v26, %v520_v25  ;;  %v826_v35 = vrot.slane %v512_v2, 1  ;;  %v604_v39 = vshll.u32 %v584_v34, 16  ;;  %v1303_v4 = vld [vmem:[%s1698_s3 + $0x1c] sm:$0xf] }
 0x105   : > { %v515_v18 = vor.u32 %v514_v10, %v511_v9  ;;  %v681_v20 = vor.u32 %v680_v12, %v512_v2  ;;  %1377 = vmatpush3.bf16.msra.mxu0 %v533_v6  ;;  %v598_v33 = vor.u32 %v597_v30, %v596_v29  ;;  %v831_v44 = vrot.slane %v1612_v5, 1 }
 0x106   : > { %1459 = vmatprep.subr.msk.bf16.mxu0 %vm290_vm1, %v1288_v17  ;;  %v690_v27 = vsel %vm675_vm8, %v680_v12, %v689_v14  ;;  %v827_v41 = vor.u32 %v826_v35, %v509_v1  ;;  %v603_v45 = vrot.slane %v601_v38, 4  ;;  %v606_v46 = vrot.slane %v604_v39, 5  ;;  %v904_v1 = vld [vmem:[#allocation2 + $0x18] sm:$0xf]  ;;  %v1306_v14 = vld [vmem:[%s1698_s3 + $0x20] sm:$0xf]  ;;  %v1478_v39 = vpop.permute.xlu0 %1477 }
 0x107   : > { %v516_v21 = vsel %vm499_vm7, %v507_v3, %v515_v18  ;;  %v682_v23 = vsel %vm675_vm8, %v679_v11, %v681_v20  ;;  %v525_v37 = vsel %vm499_vm7, %v515_v18, %v524_v32  ;;  %v599_v40 = vsel %vm587_vm9, %v595_v13, %v598_v33  ;;  %v990_v11 = vld [vmem:[#allocation2 + $0x8] sm:$0xf0] }
 0x108   : > { %1378 = vmatprep.mubr.msk.bf16.mxu0 %vm416_vm2, %v516_v21  ;;  %1390 = vmatprep.mubr.msk.bf16.mxu1 %vm416_vm2, %v682_v23  ;;  %v832_v48 = vsel %vm820_vm10, %v827_v41, %v831_v44  ;;  %v908_v50 = vshrl.u32 %v903_v42, 16  ;;  %v911_v51 = vshll.u32 %v903_v42, 16  ;;  %v607_v52 = vor.u32 %v606_v46, %v603_v45  ;;  %v1309_v42 = vld [vmem:[%s1699_s4] ss:$0 sm:$0xff] }
 0x109   : > { %1391 = vmatmul.mubr.msk.bf16.vlgmr.msra.gmra.mrb[0].mxu1 %vm416_vm2, %v690_v27  ;;  %v915_v56 = vrot.slane %v1608_v62, 3  ;;  %v916_v57 = vrot.slane %v1612_v5, 4  ;;  %v835_v60 = vor.u32 %v831_v44, %v1608_v62  ;;  %v935_v2 = vsel %vm290_vm1, %v1300_v47, 0 }
 0x10a   : > { %1395 = vmatpush3.bf16.msra.mxu1 %v760_v24  ;;  %1396 = vmatprep.mubr.msk.bf16.mxu1 %vm416_vm2, %v426_v59  ;;  %v910_v54 = vrot.slane %v908_v50, 3  ;;  %v913_v55 = vrot.slane %v911_v51, 4  ;;  %v608_v59 = vsel %vm587_vm9, %v598_v33, %v607_v52  ;;  %v920_v6 = vshrl.u32 %v904_v1, 16 }
 0x10b   : > { %1462 = vmatprep.subr.msk.bf16.mxu1 %vm290_vm1, %v1297_v31  ;;  %v917_v0 = vor.u32 %v916_v57, %v915_v56  ;;  %v840_v3 = vsel %vm820_vm10, %v835_v60, %v839_v61  ;;  %v923_v7 = vshll.u32 %v904_v1, 16  ;;  %v996_v15 = vrot.slane %v990_v11, 4 }
 0x10c   : > { %v914_v63 = vor.u32 %v913_v55, %v910_v54  ;;  %v922_v9 = vrot.slane %v920_v6, 3  ;;  %v997_v16 = vrot.slane %v1605_v58, 4  ;;  %v1008_v17 = vsel %vm290_vm1, %v1303_v4, 0 }
 0x10d   : > { %v925_v10 = vrot.slane %v923_v7, 4  ;;  %v1067_v20 = vshrl.u32 %v990_v11, 16  ;;  %v1070_v21 = vshll.u32 %v990_v11, 16  ;;  %v1074_v23 = vrot.slane %v1608_v62, 4 }
 0x10e   : > { %v918_v8 = vsel %vm499_vm7, %v914_v63, %v917_v0  ;;  %v998_v19 = vsel %vm290_vm1, %v996_v15, %v997_v16  ;;  %v1075_v24 = vrot.slane %v1612_v5, 5  ;;  %v999_v25 = vrot.slane %v904_v1, 4 }
 0x10f   : > { %v926_v12 = vor.u32 %v925_v10, %v922_v9  ;;  %v1072_v22 = vrot.slane %v1070_v21, 5  ;;  %v1094_v29 = vsel %vm290_vm1, %v1306_v14, 0  ;;  %v1079_v31 = vshrl.u32 %v1063_v28, 16 }
 0x110   : > { %1379 = vmatmul.mubr.msk.bf16.vlgmr.msra.gmra.mrb[4].mxu0 %vm416_vm2, %v525_v37  ;;  %v1076_v27 = vor.u32 %v1075_v24, %v1074_v23  ;;  %v1000_v30 = vsel %vm290_vm1, %v997_v16, %v999_v25  ;;  %v1082_v32 = vshll.u32 %v1063_v28, 16 }
 0x111   : > { %1384 = vmatprep.mubr.msk.bf16.mxu0 %vm416_vm2, %v599_v40  ;;  %1383 = vmatpush3.bf16.msra.mxu0 %v616_v36  ;;  %v927_v18 = vsel %vm499_vm7, %v917_v0, %v926_v12  ;;  %v1081_v62 = vrot.slane %v1079_v31, 4  ;;  %v1483_v40 = vpop.permute.xlu0 %1482 }
 0x112   : > { %v1084_v33 = vrot.slane %v1082_v32, 5 }
 0x114   : > { %v1085_v5 = vor.u32 %v1084_v33, %v1081_v62 }
 0x115   : > { %1397 = vmatmul.mubr.msk.bf16.vlgmr.msra.gmra.mrb[0].mxu1 %vm416_vm2, %v1605_v58  ;;  %v1069_v58 = vrot.slane %v1067_v20, 4 }
 0x116   : > { %1401 = vmatpush3.bf16.msra.mxu1 %v848_v43  ;;  %1402 = vmatprep.mubr.msk.bf16.mxu1 %vm416_vm2, %v832_v48  ;;  %v1086_v34 = vsel %vm587_vm9, %v1076_v27, %v1085_v5 }
 0x117   : > { %1463 = vmatprep.subr.msk.bf16.mxu1 %vm290_vm1, %v1300_v47  ;;  %v1073_v26 = vor.u32 %v1072_v22, %v1069_v58 }
 0x119   : > { %v1077_v13 = vsel %vm587_vm9, %v1073_v26, %v1076_v27 }
 0x11c   : > { %1385 = vmatmul.mubr.msk.bf16.vlgmr.msra.gmra.mrb[4].mxu0 %vm416_vm2, %v608_v59 }
 0x121   : > { %1403 = vmatmul.mubr.msk.bf16.vlgmr.msra.gmra.mrb[0].mxu1 %vm416_vm2, %v840_v3 }
 0x122   : > { %1407 = vmatpush3.bf16.msra.mxu1 %v935_v2  ;;  %1408 = vmatprep.mubr.msk.bf16.mxu1 %vm416_vm2, %v918_v8 }
 0x123   : > { %1464 = vmatprep.subr.msk.bf16.mxu1 %vm290_vm1, %v1303_v4 }
 0x12d   : > { %1409 = vmatmul.mubr.msk.bf16.vlgmr.msra.gmra.mrb[0].mxu1 %vm416_vm2, %v927_v18 }
 0x12e   : > { %1413 = vmatpush3.bf16.msra.mxu1 %v1008_v17  ;;  %1414 = vmatprep.mubr.msk.bf16.mxu1 %vm416_vm2, %v998_v19 }
 0x12f   : > { %1465 = vmatprep.subr.msk.bf16.mxu1 %vm290_vm1, %v1306_v14 }
 0x139   : > { %1415 = vmatmul.mubr.msk.bf16.vlgmr.msra.gmra.mrb[0].mxu1 %vm416_vm2, %v1000_v30 }
 0x13a   : > { %1419 = vmatpush3.bf16.msra.mxu1 %v1094_v29  ;;  %1420 = vmatprep.mubr.msk.bf16.mxu1 %vm416_vm2, %v1077_v13 }
 0x145   : > { %1421 = vmatmul.mubr.msk.bf16.vlgmr.msra.gmra.mrb[0].mxu1 %vm416_vm2, %v1086_v34 }
 0x1ef   : > { %v1386_v35 = vpop.f32.mrb[4].mxu0 }
 0x1f0   : > { %v652_v36 = vpop.f32.mrb[5].mxu0 }
 0x1f1   : > { %v1387_v37 = vpop.f32.mrb[6].mxu0 }
 0x1f2   : > { %v655_v38 = vpop.f32.mrb[7].mxu0 }
 0x218   : > { %v1422_v41 = vpop.f32.mrb[0].mxu1 }
 0x219   : > { %v1424_v43 = vadd.f32 %v1422_v41, %v1386_v35  ;;  %v1130_v44 = vpop.f32.mrb[1].mxu1 }
 0x21a   : > { %v1425_v45 = vadd.f32 %v1130_v44, %v652_v36  ;;  %v1423_v46 = vpop.f32.mrb[2].mxu1 }
 0x21b   : > { %v1158_v47 = vadd.f32 %v1424_v43, %v1309_v42  ;;  %v1426_v48 = vadd.f32 %v1423_v46, %v1387_v37  ;;  %v1133_v49 = vpop.f32.mrb[3].mxu1 }
 0x21c   : > { %v1156_v50 = vadd.f32 %v1425_v45, %v1309_v42  ;;  %v1427_v51 = vadd.f32 %v1133_v49, %v655_v38 }
 0x21d   : > { %v1495_v52 = vadd.low.f32.bf16 %v1158_v47, %v1483_v40  ;;  %v1159_v53 = vadd.f32 %v1426_v48, %v1309_v42 }
 0x21e   : > { %v1496_v54 = vadd.low.f32.bf16 %v1156_v50, %v1478_v39  ;;  %v1157_v55 = vadd.f32 %v1427_v51, %v1309_v42 }
 0x21f   : > { %v1186_v56 = vmax.f32 %v1495_v52, 0.0  ;;  %v1497_v57 = vadd.high.f32.bf16 %v1159_v53, %v1483_v40 }
 0x220   : > { %v1184_v59 = vmax.f32 %v1496_v54, 0.0  ;;  %v1498_v60 = vadd.high.f32.bf16 %v1157_v55, %v1478_v39 }
 0x221   : > { %v1320_v61 = vpack.c.bf16 %v1186_v56, %v1186_v56  ;;  %v1187_v63 = vmax.f32 %v1497_v57, 0.0 }
 0x222   : > { %v1318_v0 = vpack.c.bf16 %v1184_v59, %v1184_v59  ;;  %v1185_v1 = vmax.f32 %v1498_v60, 0.0 }
 0x223   : > { %1207 = vst.msk [vmem:[%s224_s12 + $0x8] sm:$0xf] %vm1204_vm11, %v1320_v61  ;;  %v1321_v2 = vpack.c.bf16 %v1187_v63, %v1187_v63 }
 0x224   : > { %1205 = vst.msk [vmem:[%s224_s12] sm:$0xf] %vm1204_vm11, %v1318_v0  ;;  %v1319_v3 = vpack.c.bf16 %v1185_v1, %v1185_v1 }
 0x225   : > { %1208 = vst.msk [vmem:[%s224_s12 + $0xc] sm:$0xf] %vm1204_vm11, %v1321_v2 }
 0x226   : > { %1206 = vst.msk [vmem:[%s224_s12 + $0x4] sm:$0xf] %vm1204_vm11, %v1319_v3 }
 0x227 PF: > { %s15_s18 = sadd.s32 1, %s1505_s18  }
 0x228   : > { %p12_p4 = scmp.ge.s32.totalorder %s15_s18, 4  }
 0x22a   :  { %14 = sbr.rel (!%p12_p4) target bundleno = 1 (0x1), region = 78 }

// kernel: _lambda_.9
= control target key start
LH: loop header
LB: loop body
LE: loop exit
PB: predicated region body
PF: predicated region fallthrough
CT: control target
= control target key end

     0   :  { %s1446_s24 = smov 0   ;;  %s1582_s0 = inlined_call_operand.vmem [shape: bf16[2,16,72], index: 0, kind: input, shape index: {}]   ;;  %s1583_s1 = inlined_call_operand.vmem [shape: bf16[72,16], index: 1, kind: input, shape index: {}]   ;;  %s1584_s2 = inlined_call_operand.vmem [shape: f32[1,16], index: 2, kind: input, shape index: {}]   ;;  %s1585_s3 = inlined_call_operand.vmem [shape: bf16[9,16,16], index: 3, kind: input, shape index: {}]   ;;  %s1586_s4 = inlined_call_operand.vmem [shape: f32[1,16], index: 4, kind: input, shape index: {}]   ;;  %s1587_s5 = inlined_call_operand.vmem [shape: bf16[8,16], index: 5, kind: input, shape index: {}]   ;;  %s1588_s6 = inlined_call_operand.vmem [shape: f32[1,16], index: 6, kind: input, shape index: {}]   ;;  %s1589_s7 = inlined_call_operand.vmem [shape: bf16[2,16,16], index: 7, kind: output, shape index: {}]  }
   0x1 LB: > { %s1167_s25 = sadd.s32 4294967295, %s1400_s24   ;;  %p1171_p0 = scmp.ge.s32.totalorder %s1400_s24, 1  ;;  %s1400_s24 = sphi %s1446_s24, %s17_s24  }
   0x2   : > { %p237_p1 = scmp.lt.s32.totalorder %s1400_s24, 3 }
   0x4   : > { %p238_p2 = pnand %p1171_p0, %p237_p1 }
   0x5   : > { %v1379_v0 = vld [vmem:[%s1583_s1] sm:$0xff] (!%p238_p2)   ;;  %v1402_v1 = vmov (!%p238_p2), 0.0   ;;  %v1380_v2 = vld [vmem:[%s1583_s1 + $0x8] sm:$0xff] (!%p238_p2)   ;;  %vm1403_vm0 = vmmov (!%p238_p2), 0   ;;  %p269_p3 = scmp.lt.s32.totalorder (!%p238_p2), %s1167_s25, 1  ;;  %v1381_v3 = vld [vmem:[%s1583_s1 + $0x10] sm:$0xff] (!%p238_p2)   ;;  %v381_v11 = vlaneseq (!%p238_p2) }
   0x6   : > { %241 = sbr.rel (%p238_p2) target bundleno = 556 (0x22c), region = 48  ;;  %1255 = vmatprep.subr.bf16.mxu0 (!%p238_p2), %v1402_v1  ;;  %1287 = vmatprep.subr.bf16.mxu1 (!%p238_p2), %v1402_v1  ;;  %v1382_v4 = vld [vmem:[%s1583_s1 + $0x18] sm:$0xff] (!%p238_p2)   ;;  %v1383_v5 = vld [vmem:[%s1583_s1 + $0x20] ss:$0 sps:$4 sm:$0xff] (!%p238_p2)   ;;  %vm334_vm1 = vcmask (!%p238_p2), 1043456   ;;  %s1404_s17 = smov (!%p238_p2), 96  }
   0x7   : > { %1256 = vmatpush3.bf16.msra.mxu0 (!%p238_p2), %v1379_v0  ;;  %1265 = vmatprep.mubr.msk.bf16.mxu0 (!%p238_p2), %vm1403_vm0, %v1402_v1  ;;  %v336_v7 = vsel (!%p238_p2), %vm334_vm1, %v1383_v5, 0  ;;  %vm330_vm2 = vcmask (!%p238_p2), 588800   ;;  %vm416_vm3 = vcmask (!%p238_p2), 130048   ;;  %v1405_v8 = vmov (!%p238_p2), 0   ;;  %v1385_v9 = vld [vmem:[%s1585_s3 + $0x8] sm:$0xff] (!%p238_p2)   ;;  %v1386_v10 = vld [vmem:[%s1585_s3 + $0x18] sm:$0xff] (!%p238_p2)  }
   0x8   : > { %1257 = vmatprep.subr.bf16.mxu0 (!%p238_p2), %v1402_v1  ;;  %1289 = vmatprep.mubr.msk.bf16.mxu1 (!%p238_p2), %vm1403_vm0, %v1402_v1  ;;  %417 = vst.msk [vmem:[#allocation2] sm:$0xff] (!%p238_p2), %vm416_vm3, %v1405_v8  ;;  %418 = vst.msk [vmem:[#allocation2 + $0x8] sm:$0xff] (!%p238_p2), %vm416_vm3, %v1405_v8  ;;  %v382_v12 = vshrl.u32 (!%p238_p2), %v381_v11, 7  ;;  %v1176_v14 = vld [vmem:[%s1584_s2] ss:$0 sm:$0xff] (!%p238_p2)  ;;  %v1390_v56 = vld [vmem:[%s1585_s3 + $0x10] sm:$0xff] (!%p238_p2)  }
   0x9   : > { %419 = vst.msk [vmem:[#allocation2 + $0x10] sm:$0xff] (!%p238_p2), %vm416_vm3, %v1405_v8  ;;  %1288 = vmatpush3.bf16.msra.mxu1 (!%p238_p2), %v1386_v10  ;;  %v1388_v37 = vld [vmem:[%s1585_s3] sm:$0xff] (!%p238_p2)   ;;  %vm633_vm6 = vsmask.f32 (!%p238_p2), 256  ;;  %vm486_vm7 = vsmask.f32 (!%p238_p2), 4352 }
   0xa   : > { %1293 = vmatprep.subr.bf16.mxu1 (!%p238_p2), %v1402_v1  ;;  %v383_v13 = vadd.s32 (!%p238_p2), 8, %v382_v12  ;;  %v388_v16 = vand.u32 (!%p238_p2), 7, %v382_v12  ;;  %v1387_v47 = vld [vmem:[%s1585_s3 + $0x20] sm:$0xff] (!%p238_p2)   ;;  %v1389_v62 = vld [vmem:[%s1585_s3 + $0x28] sm:$0xff] (!%p238_p2)   ;;  %vm558_vm8 = vsmask.f32 (!%p238_p2), 3328 }
   0xb   : > { %1258 = vmatpush3.bf16.msra.mxu0 (!%p238_p2), %v1380_v2  ;;  %vm757_vm9 = vsmask.f32 (!%p238_p2), 7424  ;;  %vm1049_vm10 = vcmask (!%p238_p2), 64512   ;;  %vm1109_vm11 = vcmask (!%p238_p2), 125952  }
   0xc   : > { %1259 = vmatprep.subr.bf16.mxu0 (!%p238_p2), %v1402_v1  ;;  %v395_v17 = vand.u32 (!%p238_p2), 7, %v383_v13  ;;  %vm408_vm4 = vcmp.lt.s32.totalorder (!%p238_p2), %v388_v16, 2 }
   0xd   : > { %s1591_s25 = smov (!%p269_p3, %s1167_s25), 1 }
   0xe   : > { %s1225_s9 = sshll.u32 %s1591_s25, 3  ;;  %vm409_vm5 = vcmp.lt.s32.totalorder %v395_v17, 2 }
   0xf   : > { %s273_s14 = scalar_lea.vmem %s1582_s0, %s1225_s9  ;;  %1260 = vmatpush3.bf16.msra.mxu0 %v1381_v3  ;;  %v628_v28 = vld [vmem:[#allocation2] sm:$0x80]  ;;  %s278_s28 = scalar_lea.vmem %s1589_s7, %s1225_s9 }
  0x10   : > { %v1384_v6 = vld [vmem:[%s273_s14] sm:$0xff]   ;;  %1261 = vmatprep.subr.bf16.mxu0 %v1402_v1  ;;  %v635_v30 = vshrl.u32 %v628_v28, 16  ;;  %v823_v12 = vld [vmem:[#allocation2 + $0x10] sm:$0xf] }
  0x11   : > { %1047 = vrot.lane.b32.xlu0 %v1384_v6, %s1404_s17  ;;  %v426_v29 = vld [vmem:[#allocation2] sm:$0xf0] }
  0x12   : > { %v433_v31 = vrot.slane %v426_v29, 4  ;;  %v422_v32 = vld [vmem:[#allocation2] sm:$0xf8]  ;;  %v637_v38 = vrot.slane %v635_v30, 7  ;;  %v560_v57 = vshrl.u32 %v426_v29, 16  ;;  %v563_v59 = vshll.u32 %v426_v29, 16 }
  0x13   : > { %1262 = vmatpush3.bf16.msra.mxu0 %v1382_v4  ;;  %v488_v40 = vshrl.u32 %v422_v32, 16  ;;  %v491_v41 = vshll.u32 %v422_v32, 16  ;;  %v753_v4 = vld [vmem:[#allocation2 + $0x10] sm:$0x1]  ;;  %v903_v30 = vrot.slane %v823_v12, 4  ;;  %v1393_v32 = vld [vmem:[%s1585_s3 + $0x40] sm:$0xff]  }
  0x14   : > { %1263 = vmatprep.subr.bf16.mxu0 %v1402_v1  ;;  %v562_v63 = vrot.slane %v560_v57, 4  ;;  %v565_v0 = vrot.slane %v563_v59, 5  ;;  %v766_v8 = vshll.u32 %v753_v4, 16 }
  0x15   : > { %v490_v48 = vrot.slane %v488_v40, 3  ;;  %v493_v50 = vrot.slane %v491_v41, 4 }
  0x16   : > { %v566_v5 = vor.u32 %v565_v0, %v562_v63  ;;  %v768_v11 = vrot.slane %v766_v8, 1 }
  0x17   : > { %1264 = vmatpush3.bf16.msra.mxu0 %v336_v7  ;;  %v494_v53 = vor.u32 %v493_v50, %v490_v48 }
  0x18   : > { %1269 = vmatprep.subr.bf16.mxu0 %v1402_v1 }
  0x1a   : > { %1266 = vmatmul.mubr.msk.bf16.vlgmr.msra.gmra.mrb[0].mxu0 %vm330_vm2, %v1384_v6 }
  0x1b   : > { %1271 = vmatprep.mubr.msk.bf16.mxu0 %vm1403_vm0, %v1402_v1  ;;  %1270 = vmatpush3.bf16.msra.mxu0 %v1385_v9 }
  0x1c   : > { %1275 = vmatprep.subr.bf16.mxu0 %v1402_v1 }
  0xed   : > { %v372_v15 = vpop.f32.mrb[0].mxu0 }
  0xee   : > { %v373_v18 = vadd.f32 %v1176_v14, %v372_v15  ;;  %v1267_v19 = vpop.f32.mrb[1].mxu0  ;;  %v836_v15 = vshrl.u32 %v823_v12, 16 }
  0xef   : > { %v375_v20 = vpop.f32.mrb[2].mxu0  ;;  %v839_v19 = vshll.u32 %v823_v12, 16 }
  0xf0   : > { %v379_v21 = vmax.f32 %v373_v18, 0.0  ;;  %v376_v22 = vadd.f32 %v1176_v14, %v375_v20  ;;  %v1268_v23 = vpop.f32.mrb[3].mxu0  ;;  %v1391_v14 = vld [vmem:[%s1585_s3 + $0x30] sm:$0xff]  }
  0xf1   : > { %v841_v23 = vrot.slane %v839_v19, 4 }
  0xf2   : > { %v380_v24 = vmax.f32 %v376_v22, 0.0  ;;  %v414_v25 = vsel %vm408_vm4, %v379_v21, 0.0  ;;  %v838_v22 = vrot.slane %v836_v15, 3 }
  0xf4   : > { %v415_v26 = vsel %vm409_vm5, %v380_v24, 0.0 }
  0xf5   : > { %v420_v27 = vpack.c.bf16 %v415_v26, %v414_v25  ;;  %v842_v25 = vor.u32 %v841_v23, %v838_v22  ;;  %v1392_v26 = vld [vmem:[%s1585_s3 + $0x38] sm:$0xff]  }
  0xf7   : > { %421 = vst.msk [vmem:[#allocation2 + $0x8] sm:$0xff] %vm416_vm3, %v420_v27 }
  0xfe   : > { %v423_v33 = vld [vmem:[#allocation2 + $0x8] sm:$0xf]  ;;  %v896_v28 = vld [vmem:[#allocation2 + $0x8] sm:$0xf0] }
  0xff   : > { %v629_v34 = vld [vmem:[#allocation2 + $0x8] sm:$0xff]  ;;  %v434_v35 = vrot.slane %v423_v33, 4  ;;  %v496_v44 = vshrl.u32 %v423_v33, 16  ;;  %v499_v45 = vshll.u32 %v423_v33, 16  ;;  %v902_v29 = vrot.slane %v896_v28, 4 }
 0x100   : > { %v639_v36 = vshrl.u32 %v629_v34, 16  ;;  %v642_v39 = vshll.u32 %v629_v34, 16  ;;  %v554_v55 = vld [vmem:[#allocation2 + $0x8] sm:$0x1f] }
 0x101   : > { %v435_v42 = vsel %vm334_vm1, %v433_v31, %v434_v35  ;;  %v498_v51 = vrot.slane %v496_v44, 3  ;;  %v501_v52 = vrot.slane %v499_v45, 4  ;;  %v568_v60 = vshrl.u32 %v554_v55, 16  ;;  %v822_v13 = vld [vmem:[#allocation2 + $0x8] sm:$0xf8] }
 0x102   : > { %v641_v43 = vrot.slane %v639_v36, 7  ;;  %1272 = vmatmul.mubr.msk.bf16.vlgmr.msra.gmra.mrb[4].mxu0 %vm416_vm3, %v435_v42  ;;  %v571_v61 = vshll.u32 %v554_v55, 16  ;;  %v763_v7 = vrot.slane %v642_v39, 1  ;;  %v828_v17 = vshrl.u32 %v822_v13, 16  ;;  %v957_v31 = vld [vmem:[#allocation2 + $0x10] sm:$0x1f] }
 0x103   : > { %1276 = vmatpush3.bf16.msra.mxu0 %v1388_v37  ;;  %1277 = vmatprep.mubr.msk.bf16.mxu0 %vm1403_vm0, %v1402_v1  ;;  %v502_v54 = vor.u32 %v501_v52, %v498_v51  ;;  %v570_v2 = vrot.slane %v568_v60, 4  ;;  %v831_v18 = vshll.u32 %v822_v13, 16  ;;  %v970_v33 = vshrl.u32 %v957_v31, 16  ;;  %v1039_v44 = vld [vmem:[%s1587_s5] sm:$0xf] }
 0x104   : > { %v644_v46 = vor.u32 %v642_v39, %v641_v43  ;;  %1281 = vmatprep.subr.bf16.mxu0 %v1402_v1  ;;  %v573_v3 = vrot.slane %v571_v61, 5  ;;  %v764_v10 = vor.u32 %v763_v7, %v639_v36  ;;  %v830_v20 = vrot.slane %v828_v17, 3  ;;  %v1218_v52 = vld [vmem:[%s1586_s4] ss:$0 sm:$0xff] }
 0x105   : > { %v503_v58 = vsel %vm486_vm7, %v494_v53, %v502_v54  ;;  %v833_v21 = vrot.slane %v831_v18, 4  ;;  %v962_v35 = vshrl.u32 %v896_v28, 16  ;;  %v965_v36 = vshll.u32 %v896_v28, 16  ;;  %v1219_v54 = vld [vmem:[%s1588_s6] ss:$0 sm:$0xff] }
 0x106   : > { %v645_v49 = vsel %vm633_vm6, %v637_v38, %v644_v46  ;;  %v574_v6 = vor.u32 %v573_v3, %v570_v2  ;;  %v769_v16 = vsel %vm757_vm9, %v764_v10, %v768_v11  ;;  %v973_v37 = vshll.u32 %v957_v31, 16 }
 0x107   : > { %1290 = vmatmul.mubr.msk.bf16.vlgmr.msra.gmra.mrb[0].mxu1 %vm416_vm3, %v645_v49  ;;  %v834_v24 = vor.u32 %v833_v21, %v830_v20  ;;  %v964_v38 = vrot.slane %v962_v35, 4  ;;  %v967_v39 = vrot.slane %v965_v36, 5  ;;  %v972_v40 = vrot.slane %v970_v33, 4 }
 0x108   : > { %1294 = vmatpush3.bf16.msra.mxu1 %v1387_v47  ;;  %1295 = vmatprep.mubr.msk.bf16.mxu1 %vm1403_vm0, %v1402_v1  ;;  %v575_v9 = vsel %vm558_vm8, %v566_v5, %v574_v6  ;;  %v975_v41 = vrot.slane %v973_v37, 5  ;;  %v1054_v45 = vsel %vm334_vm1, %v1039_v44, 0  ;;  %v1048_v47 = vpop.permute.xlu0 %1047 }
 0x109   : > { %1299 = vmatprep.subr.bf16.mxu1 %v1402_v1  ;;  %v843_v27 = vsel %vm486_vm7, %v834_v24, %v842_v25  ;;  %v968_v42 = vor.u32 %v967_v39, %v964_v38 }
 0x10a   : > { %v976_v43 = vor.u32 %v975_v41, %v972_v40 }
 0x10c   : > { %v977_v46 = vsel %vm558_vm8, %v968_v42, %v976_v43 }
 0x10e   : > { %1278 = vmatmul.mubr.msk.bf16.vlgmr.msra.gmra.mrb[4].mxu0 %vm416_vm3, %v503_v58 }
 0x10f   : > { %1282 = vmatpush3.bf16.msra.mxu0 %v1390_v56  ;;  %1283 = vmatprep.mubr.msk.bf16.mxu0 %vm1403_vm0, %v1402_v1 }
 0x113   : > { %1296 = vmatmul.mubr.msk.bf16.vlgmr.msra.gmra.mrb[0].mxu1 %vm416_vm3, %v629_v34  ;;  %v904_v34 = vsel %vm334_vm1, %v902_v29, %v903_v30 }
 0x114   : > { %1300 = vmatpush3.bf16.msra.mxu1 %v1389_v62  ;;  %1301 = vmatprep.mubr.msk.bf16.mxu1 %vm1403_vm0, %v1402_v1 }
 0x115   : > { %1305 = vmatprep.subr.bf16.mxu1 %v1402_v1 }
 0x11a   : > { %1284 = vmatmul.mubr.msk.bf16.vlgmr.msra.gmra.mrb[4].mxu0 %vm416_vm3, %v575_v9 }
 0x11f   : > { %1302 = vmatmul.mubr.msk.bf16.vlgmr.msra.gmra.mrb[0].mxu1 %vm416_vm3, %v769_v16 }
 0x120   : > { %1306 = vmatpush3.bf16.msra.mxu1 %v1391_v14  ;;  %1307 = vmatprep.mubr.msk.bf16.mxu1 %vm1403_vm0, %v1402_v1 }
 0x121   : > { %1311 = vmatprep.subr.bf16.mxu1 %v1402_v1 }
 0x12b   : > { %1308 = vmatmul.mubr.msk.bf16.vlgmr.msra.gmra.mrb[0].mxu1 %vm416_vm3, %v843_v27 }
 0x12c   : > { %1312 = vmatpush3.bf16.msra.mxu1 %v1392_v26  ;;  %1313 = vmatprep.mubr.msk.bf16.mxu1 %vm1403_vm0, %v1402_v1 }
 0x12d   : > { %1317 = vmatprep.subr.bf16.mxu1 %v1402_v1 }
 0x137   : > { %1314 = vmatmul.mubr.msk.bf16.vlgmr.msra.gmra.mrb[0].mxu1 %vm416_vm3, %v904_v34 }
 0x138   : > { %1318 = vmatpush3.bf16.msra.mxu1 %v1393_v32  ;;  %1319 = vmatprep.mubr.msk.bf16.mxu1 %vm1403_vm0, %v1402_v1 }
 0x139   : > { %1323 = vmatprep.subr.bf16.mxu1 %v1402_v1 }
 0x143   : > { %1320 = vmatmul.mubr.msk.bf16.vlgmr.msra.gmra.mrb[0].mxu1 %vm416_vm3, %v977_v46 }
 0x144   : > { %1324 = vmatpush3.bf16.msra.mxu1 %v1054_v45  ;;  %1325 = vmatprep.mubr.msk.bf16.mxu1 %vm1403_vm0, %v1402_v1 }
 0x14f   : > { %1326 = vmatmul.mubr.msk.bf16.vlgmr.msra.gmra.mrb[0].mxu1 %vm1049_vm10, %v1048_v47 }
 0x1ed   : > { %v619_v48 = vpop.f32.mrb[4].mxu0 }
 0x1ee   : > { %v1285_v49 = vpop.f32.mrb[5].mxu0  ;;  %v1329_v53 = vadd.f32 %v1218_v52, %v619_v48 }
 0x1ef   : > { %v622_v50 = vpop.f32.mrb[6].mxu0 }
 0x1f0   : > { %v1286_v51 = vpop.f32.mrb[7].mxu0  ;;  %v1332_v55 = vadd.f32 %v1218_v52, %v622_v50  ;;  %v1330_v56 = vadd.f32 %v1329_v53, %v1219_v54 }
 0x1f2   : > { %v1333_v59 = vadd.f32 %v1332_v55, %v1219_v54 }
 0x222   : > { %v1090_v1 = vpop.f32.mrb[0].mxu1 }
 0x223   : > { %v1331_v57 = vadd.f32 %v1330_v56, %v1090_v1  ;;  %v1327_v58 = vpop.f32.mrb[1].mxu1 }
 0x224   : > { %v1093_v60 = vpop.f32.mrb[2].mxu1 }
 0x225   : > { %v1099_v61 = vmax.f32 %v1331_v57, 0.0  ;;  %v1334_v62 = vadd.f32 %v1333_v59, %v1093_v60  ;;  %v1328_v63 = vpop.f32.mrb[3].mxu1 }
 0x227   : > { %v1227_v0 = vpack.c.bf16 %v1099_v61, %v1099_v61  ;;  %v1100_v2 = vmax.f32 %v1334_v62, 0.0 }
 0x229   : > { %1110 = vst.msk [vmem:[%s278_s28] sm:$0xf] %vm1109_vm11, %v1227_v0  ;;  %v1228_v3 = vpack.c.bf16 %v1100_v2, %v1100_v2 }
 0x22b   : > { %1111 = vst.msk [vmem:[%s278_s28 + $0x4] sm:$0xf] %vm1109_vm11, %v1228_v3 }
 0x22c PF: > { %s17_s24 = sadd.s32 1, %s1400_s24  }
 0x22d   : > { %p14_p4 = scmp.ge.s32.totalorder %s17_s24, 4  }
 0x22f   :  { %16 = sbr.rel (!%p14_p4) target bundleno = 1 (0x1), region = 86 }

// kernel: _lambda_.10
= control target key start
LH: loop header
LB: loop body
LE: loop exit
PB: predicated region body
PF: predicated region fallthrough
CT: control target
= control target key end

     0   :  { %s1529_s24 = smov 0   ;;  %s1700_s0 = inlined_call_operand.vmem [shape: bf16[2,8,144], index: 0, kind: input, shape index: {}]   ;;  %s1701_s1 = inlined_call_operand.vmem [shape: bf16[144,32], index: 1, kind: input, shape index: {}]   ;;  %s1702_s2 = inlined_call_operand.vmem [shape: f32[1,32], index: 2, kind: input, shape index: {}]   ;;  %s1703_s3 = inlined_call_operand.vmem [shape: bf16[9,32,32], index: 3, kind: input, shape index: {}]   ;;  %s1704_s4 = inlined_call_operand.vmem [shape: f32[1,32], index: 4, kind: input, shape index: {}]   ;;  %s1705_s5 = inlined_call_operand.vmem [shape: bf16[16,32], index: 5, kind: input, shape index: {}]   ;;  %s1706_s6 = inlined_call_operand.vmem [shape: f32[1,32], index: 6, kind: input, shape index: {}]   ;;  %s1707_s7 = inlined_call_operand.vmem [shape: bf16[2,8,32], index: 7, kind: output, shape index: {}]  }
   0x1 LB: > { %s1194_s25 = sadd.s32 4294967295, %s1483_s24   ;;  %p1198_p0 = scmp.ge.s32.totalorder %s1483_s24, 1  ;;  %s1483_s24 = sphi %s1529_s24, %s17_s24  }
   0x2   : > { %p237_p1 = scmp.lt.s32.totalorder %s1483_s24, 3 }
   0x4   : > { %p238_p2 = pnand %p1198_p0, %p237_p1 }
   0x5   : > { %v1441_v0 = vld [vmem:[%s1701_s1] sm:$0xff] (!%p238_p2)   ;;  %v1485_v1 = vmov (!%p238_p2), 0   ;;  %p268_p3 = scmp.lt.s32.totalorder (!%p238_p2), %s1194_s25, 1  ;;  %v1442_v2 = vld [vmem:[%s1701_s1 + $0x8] sm:$0xff] (!%p238_p2)   ;;  %v1443_v3 = vld [vmem:[%s1701_s1 + $0x10] sm:$0xff] (!%p238_p2)   ;;  %vm364_vm0 = vcmask (!%p238_p2), 130048   ;;  %v409_v30 = vlaneseq (!%p238_p2) }
   0x6   : > { %241 = sbr.rel (%p238_p2) target bundleno = 570 (0x23a), region = 48  ;;  %368 = vmatprep.subr.bf16.mxu0 (!%p238_p2), %v1485_v1  ;;  %v1486_v4 = vmov (!%p238_p2), 0.0   ;;  %vm1487_vm1 = vmmov (!%p238_p2), 0   ;;  %v1444_v6 = vld [vmem:[%s1701_s1 + $0x18] sm:$0xff] (!%p238_p2)   ;;  %v1445_v9 = vld [vmem:[%s1701_s1 + $0x20] sm:$0xff] (!%p238_p2)   ;;  %s1488_s17 = smov (!%p238_p2), 64  }
   0x7   : > { %369 = vmatpush1.bf16.msra.mxu0 (!%p238_p2), %v1441_v0  ;;  %1340 = vmatprep.subr.bf16.mxu1 (!%p238_p2), %v1486_v4  ;;  %v1446_v10 = vld [vmem:[%s1701_s1 + $0x28] sm:$0xff] (!%p238_p2)   ;;  %v1447_v11 = vld [vmem:[%s1701_s1 + $0x30] sm:$0xff] (!%p238_p2)   ;;  %v1448_v12 = vld [vmem:[%s1701_s1 + $0x38] sm:$0xff] (!%p238_p2)   ;;  %vm427_vm2 = vcmask (!%p238_p2), 257024   ;;  %vm458_vm3 = vcmask (!%p238_p2), 261120   ;;  %v410_v31 = vshrl.u32 (!%p238_p2), %v409_v30, 7 }
   0x8   : > { %370 = vmatprep.subr.bf16.mxu0 (!%p238_p2), %v1485_v1  ;;  %1344 = vmatprep.mubr.msk.bf16.mxu1 (!%p238_p2), %vm1487_vm1, %v1486_v4  ;;  %v1449_v13 = vld [vmem:[%s1701_s1 + $0x40] sm:$0xff] (!%p238_p2)   ;;  %v1452_v14 = vld [vmem:[%s1703_s3 + $0x10] sm:$0xff] (!%p238_p2)   ;;  %v1453_v15 = vld [vmem:[%s1703_s3 + $0x18] sm:$0xff] (!%p238_p2)   ;;  %428 = vst.msk [vmem:[#allocation2] sm:$0xf] (!%p238_p2), %vm427_vm2, %v1485_v1 }
   0x9   : > { %429 = vst.msk [vmem:[#allocation2 + $0x4] sm:$0xf] (!%p238_p2), %vm427_vm2, %v1485_v1  ;;  %430 = vst.msk [vmem:[#allocation2 + $0x8] sm:$0xf] (!%p238_p2), %vm427_vm2, %v1485_v1  ;;  %v1455_v18 = vld [vmem:[%s1703_s3] sm:$0xff] (!%p238_p2)   ;;  %v1456_v22 = vld [vmem:[%s1703_s3 + $0x8] sm:$0xff] (!%p238_p2)  }
   0xa   : > { %431 = vst.msk [vmem:[#allocation2 + $0xc] sm:$0xf] (!%p238_p2), %vm427_vm2, %v1485_v1  ;;  %432 = vst.msk [vmem:[#allocation2 + $0x10] sm:$0xf] (!%p238_p2), %vm427_vm2, %v1485_v1  ;;  %v1457_v25 = vld [vmem:[%s1703_s3 + $0x30] sm:$0xff] (!%p238_p2)   ;;  %v1458_v26 = vld [vmem:[%s1703_s3 + $0x20] sm:$0xff] (!%p238_p2)  }
   0xb   : > { %371 = vmatpush1.bf16.msra.mxu0 (!%p238_p2), %v1442_v2  ;;  %1341 = vmatpush3.bf16.msra.mxu1 (!%p238_p2), %v1457_v25  ;;  %v1459_v28 = vld [vmem:[%s1703_s3 + $0x38] sm:$0xff] (!%p238_p2)   ;;  %v1460_v29 = vld [vmem:[%s1703_s3 + $0x28] sm:$0xff] (!%p238_p2)   ;;  %v1202_v32 = vld [vmem:[%s1702_s2] ss:$0 sm:$0xff] (!%p238_p2)  ;;  %v415_v33 = vand.u32 (!%p238_p2), 7, %v410_v31 }
   0xc   : > { %372 = vmatprep.subr.bf16.mxu0 (!%p238_p2), %v1485_v1  ;;  %1342 = vmatprep.subr.bf16.mxu1 (!%p238_p2), %v1486_v4  ;;  %v1463_v54 = vld [vmem:[%s1703_s3 + $0x40] sm:$0xff] (!%p238_p2)   ;;  %v1464_v56 = vld [vmem:[%s1703_s3 + $0x48] sm:$0xff] (!%p238_p2)   ;;  %v1465_v57 = vld [vmem:[%s1703_s3 + $0x50] sm:$0xff] (!%p238_p2)  }
   0xd   : > { %s1709_s25 = smov (!%p268_p3, %s1194_s25), 1  ;;  %vm423_vm4 = vcmp.lt.s32.totalorder %v415_v33, 1  ;;  %v1466_v59 = vld [vmem:[%s1703_s3 + $0x58] sm:$0xff]  }
   0xe   : > { %s1286_s30 = sshll.u32 %s1709_s25, 3 }
   0xf   : > { %s272_s12 = scalar_lea.vmem %s1700_s0, %s1286_s30  ;;  %373 = vmatpush1.bf16.msra.mxu0 %v1443_v3  ;;  %v435_v17 = vld [vmem:[#allocation2] sm:$0x8]  ;;  %1343 = vmatpush3.bf16.msra.mxu1 %v1459_v28  ;;  %v1281_v28 = vld [vmem:[%s1706_s6] ss:$0 sm:$0xff]  ;;  %s1201_s30 = sshll.u32 %s1709_s25, 2 }
  0x10   : > { %v278_v5 = vld [vmem:[%s272_s12] sm:$0xff]  ;;  %374 = vmatprep.subr.bf16.mxu0 %v1485_v1  ;;  %1348 = vmatprep.subr.bf16.mxu1 %v1486_v4  ;;  %s276_s10 = scalar_lea.vmem %s1707_s7, %s1201_s30 }
  0x11   : > { %v1203_v7 = vcombine.low %v278_v5, %v278_v5  ;;  %v1204_v8 = vcombine.high %v278_v5, %v278_v5  ;;  %v436_v16 = vld [vmem:[#allocation2 + $0x4] sm:$0xf]  ;;  %v858_v63 = vld [vmem:[#allocation2 + $0xc] sm:$0xf] }
  0x12   : > { %v1222_v19 = vcombine.low %v435_v17, %v436_v16  ;;  %v645_v42 = vld [vmem:[#allocation2 + $0x4] sm:$0x8]  ;;  %v1469_v5 = vld [vmem:[%s1703_s3 + $0x68] sm:$0xff]  }
  0x13   : > { %1214 = vmatprep.mubr.msk.bf16.mxu0 %vm364_vm0, %v1204_v8  ;;  %1086 = vrot.lane.b32.xlu0 %v1203_v7, %s1488_s17 }
  0x14   : > { %375 = vmatpush1.bf16.msra.mxu0 %v1444_v6  ;;  %v508_v20 = vshrl.u32 %v1222_v19, 16  ;;  %v511_v21 = vshll.u32 %v1222_v19, 16 }
  0x15   : > { %376 = vmatprep.subr.bf16.mxu0 %v1485_v1 }
  0x16   : > { %v510_v23 = vrot.slane %v508_v20, 3  ;;  %v513_v24 = vrot.slane %v511_v21, 4  ;;  %v1476_v20 = vld [vmem:[%s1705_s5] sm:$0xff]  }
  0x18   : > { %377 = vmatpush1.bf16.msra.mxu0 %v1445_v9  ;;  %v514_v27 = vor.u32 %v513_v24, %v510_v23 }
  0x19   : > { %378 = vmatprep.subr.bf16.mxu0 %v1485_v1 }
  0x1c   : > { %379 = vmatpush1.bf16.msra.mxu0 %v1446_v10  ;;  %v1471_v10 = vld [vmem:[%s1703_s3 + $0x70] sm:$0xff]  }
  0x1d   : > { %380 = vmatprep.subr.bf16.mxu0 %v1485_v1 }
  0x20   : > { %381 = vmatpush1.bf16.msra.mxu0 %v1447_v11 }
  0x21   : > { %382 = vmatprep.subr.bf16.mxu0 %v1485_v1 }
  0x24   : > { %383 = vmatpush1.bf16.msra.mxu0 %v1448_v12  ;;  %v1472_v12 = vld [vmem:[%s1703_s3 + $0x78] sm:$0xff]  }
  0x25   : > { %384 = vmatprep.subr.bf16.mxu0 %v1485_v1  ;;  %v1468_v1 = vld [vmem:[%s1703_s3 + $0x60] sm:$0xff]  }
  0x28   : > { %385 = vmatpush1.bf16.msra.mxu0 %v1449_v13  ;;  %v1475_v13 = vld [vmem:[#allocation2 + $0xc] sm:$0x1f]  }
  0x29   : > { %1316 = vmatprep.subr.bf16.mxu0 %v1486_v4  ;;  %v1007_v17 = vshrl.u32 %v1475_v13, 16 }
  0x2b   : > { %401 = vmatmul.mubr.bf16.vlgmr.msra.gmra.mrb[0].mxu0 %v1203_v7 }
  0x2c   : > { %1317 = vmatpush3.bf16.msra.mxu0 %v1452_v14  ;;  %1320 = vmatprep.mubr.msk.bf16.mxu0 %vm1487_vm1, %v1486_v4  ;;  %v1473_v14 = vld [vmem:[%s1703_s3 + $0x80] sm:$0xff]  }
  0x2d   : > { %1318 = vmatprep.subr.bf16.mxu0 %v1486_v4 }
  0x30   : > { %1319 = vmatpush3.bf16.msra.mxu0 %v1453_v15  ;;  %v1009_v15 = vshll.u32 %v1475_v13, 16 }
  0x31   : > { %1324 = vmatprep.subr.bf16.mxu0 %v1486_v4 }
  0x33   : > { %1321 = vmatmul.mubr.msk.bf16.vlgmr.msra.gmra.mrb[4].mxu0 %vm458_vm3, %v436_v16  ;;  %v1474_v16 = vld [vmem:[%s1703_s3 + $0x88] sm:$0xff]  }
  0x34   : > { %1328 = vmatprep.mubr.msk.bf16.mxu0 %vm1487_vm1, %v1486_v4  ;;  %1325 = vmatpush3.bf16.msra.mxu0 %v1455_v18  ;;  %v1011_v18 = vrot.slane %v1009_v15, 1 }
  0x35   : > { %1326 = vmatprep.subr.bf16.mxu0 %v1486_v4 }
  0x36   : > { %v1012_v19 = vor.u32 %v1011_v18, %v1007_v17 }
  0x38   : > { %1327 = vmatpush3.bf16.msra.mxu0 %v1456_v22 }
  0x39   : > { %1332 = vmatprep.subr.bf16.mxu0 %v1486_v4 }
  0x3f   : > { %1329 = vmatmul.mubr.msk.bf16.vlgmr.msra.gmra.mrb[4].mxu0 %vm458_vm3, %v514_v27 }
  0x40   : > { %1333 = vmatpush3.bf16.msra.mxu0 %v1458_v26  ;;  %1336 = vmatprep.mubr.msk.bf16.mxu0 %vm1487_vm1, %v1486_v4  ;;  %v1280_v26 = vld [vmem:[%s1704_s4] ss:$0 sm:$0xff] }
  0x41   : > { %1334 = vmatprep.subr.bf16.mxu0 %v1486_v4 }
  0x44   : > { %1335 = vmatpush3.bf16.msra.mxu0 %v1460_v29 }
  0x85   : > { %v1087_v21 = vpop.permute.xlu0 %1086 }
  0xfe   : > { %v402_v34 = vpop.f32.mrb[0].mxu0 }
  0xff   : > { %v403_v35 = vadd.f32 %v1202_v32, %v402_v34  ;;  %v404_v36 = vpop.f32.mrb[1].mxu0 }
 0x100   : > { %v405_v37 = vpop.f32.mrb[2].mxu0 }
 0x101   : > { %v408_v38 = vmax.f32 %v403_v35, 0.0  ;;  %v406_v39 = vpop.f32.mrb[3].mxu0 }
 0x103   : > { %v426_v40 = vsel %vm423_vm4, %v408_v38, 0.0 }
 0x104   : > { %v433_v41 = vpack.c.bf16 %v426_v40, %v426_v40 }
 0x106   : > { %434 = vst.msk [vmem:[#allocation2 + $0x8] sm:$0xf] %vm427_vm2, %v433_v41 }
 0x10d   : > { %v1461_v43 = vld [vmem:[#allocation2 + $0x4] sm:$0x1f]   ;;  %v857_v62 = vld [vmem:[#allocation2 + $0x8] sm:$0x8] }
 0x10e   : > { %v646_v44 = vld [vmem:[#allocation2 + $0x8] sm:$0xf]  ;;  %v585_v46 = vshll.u32 %v1461_v43, 16  ;;  %v583_v49 = vshrl.u32 %v1461_v43, 16  ;;  %v1261_v3 = vcombine.low %v857_v62, %v858_v63 }
 0x10f   : > { %v1238_v45 = vcombine.low %v645_v42, %v646_v44  ;;  %v1467_v58 = vld [vmem:[#allocation2 + $0x8] sm:$0x1f]  }
 0x110   : > { %v587_v50 = vrot.slane %v585_v46, 1  ;;  %v797_v60 = vshll.u32 %v1467_v58, 16  ;;  %v795_v0 = vshrl.u32 %v1467_v58, 16  ;;  %v870_v6 = vshrl.u32 %v1261_v3, 16 }
 0x111   : > { %v658_v47 = vshrl.u32 %v1238_v45, 16  ;;  %v661_v48 = vshll.u32 %v1238_v45, 16  ;;  %v873_v7 = vshll.u32 %v1261_v3, 16 }
 0x112   : > { %v588_v53 = vor.u32 %v587_v50, %v583_v49  ;;  %v799_v61 = vrot.slane %v797_v60, 1  ;;  %v872_v8 = vrot.slane %v870_v6, 3 }
 0x113   : > { %v660_v51 = vrot.slane %v658_v47, 3  ;;  %v663_v52 = vrot.slane %v661_v48, 4  ;;  %v875_v9 = vrot.slane %v873_v7, 4 }
 0x114   : > { %1337 = vmatmul.mubr.msk.bf16.vlgmr.msra.gmra.mrb[4].mxu0 %vm458_vm3, %v588_v53  ;;  %v800_v2 = vor.u32 %v799_v61, %v795_v0 }
 0x115   : > { %v664_v55 = vor.u32 %v663_v52, %v660_v51  ;;  %v876_v11 = vor.u32 %v875_v9, %v872_v8 }
 0x117   : > { %1345 = vmatmul.mubr.msk.bf16.vlgmr.msra.gmra.mrb[0].mxu1 %vm458_vm3, %v664_v55 }
 0x118   : > { %1349 = vmatpush3.bf16.msra.mxu1 %v1463_v54  ;;  %1352 = vmatprep.mubr.msk.bf16.mxu1 %vm1487_vm1, %v1486_v4 }
 0x119   : > { %1350 = vmatprep.subr.bf16.mxu1 %v1486_v4 }
 0x11c   : > { %1351 = vmatpush3.bf16.msra.mxu1 %v1464_v56 }
 0x11d   : > { %1356 = vmatprep.subr.bf16.mxu1 %v1486_v4 }
 0x123   : > { %1353 = vmatmul.mubr.msk.bf16.vlgmr.msra.gmra.mrb[0].mxu1 %vm458_vm3, %v646_v44 }
 0x124   : > { %1357 = vmatpush3.bf16.msra.mxu1 %v1465_v57  ;;  %1360 = vmatprep.mubr.msk.bf16.mxu1 %vm1487_vm1, %v1486_v4 }
 0x125   : > { %1358 = vmatprep.subr.bf16.mxu1 %v1486_v4 }
 0x128   : > { %1359 = vmatpush3.bf16.msra.mxu1 %v1466_v59 }
 0x129   : > { %1364 = vmatprep.subr.bf16.mxu1 %v1486_v4 }
 0x12f   : > { %1361 = vmatmul.mubr.msk.bf16.vlgmr.msra.gmra.mrb[0].mxu1 %vm458_vm3, %v800_v2 }
 0x130   : > { %1365 = vmatpush3.bf16.msra.mxu1 %v1468_v1  ;;  %1368 = vmatprep.mubr.msk.bf16.mxu1 %vm1487_vm1, %v1486_v4 }
 0x131   : > { %1366 = vmatprep.subr.bf16.mxu1 %v1486_v4 }
 0x134   : > { %1367 = vmatpush3.bf16.msra.mxu1 %v1469_v5 }
 0x135   : > { %1372 = vmatprep.subr.bf16.mxu1 %v1486_v4 }
 0x13b   : > { %1369 = vmatmul.mubr.msk.bf16.vlgmr.msra.gmra.mrb[0].mxu1 %vm458_vm3, %v876_v11 }
 0x13c   : > { %1373 = vmatpush3.bf16.msra.mxu1 %v1471_v10  ;;  %1376 = vmatprep.mubr.msk.bf16.mxu1 %vm1487_vm1, %v1486_v4 }
 0x13d   : > { %1374 = vmatprep.subr.bf16.mxu1 %v1486_v4 }
 0x140   : > { %1375 = vmatpush3.bf16.msra.mxu1 %v1472_v12 }
 0x141   : > { %1380 = vmatprep.subr.bf16.mxu1 %v1486_v4 }
 0x147   : > { %1377 = vmatmul.mubr.msk.bf16.vlgmr.msra.gmra.mrb[0].mxu1 %vm458_vm3, %v858_v63 }
 0x148   : > { %1381 = vmatpush3.bf16.msra.mxu1 %v1473_v14  ;;  %1384 = vmatprep.mubr.msk.bf16.mxu1 %vm1487_vm1, %v1486_v4 }
 0x149   : > { %1382 = vmatprep.subr.bf16.mxu1 %v1486_v4 }
 0x14c   : > { %1383 = vmatpush3.bf16.msra.mxu1 %v1474_v16 }
 0x14d   : > { %1388 = vmatprep.subr.bf16.mxu1 %v1486_v4 }
 0x153   : > { %1385 = vmatmul.mubr.msk.bf16.vlgmr.msra.gmra.mrb[0].mxu1 %vm458_vm3, %v1012_v19 }
 0x154   : > { %1389 = vmatpush3.bf16.msra.mxu1 %v1476_v20  ;;  %1390 = vmatprep.mubr.msk.bf16.mxu1 %vm1487_vm1, %v1486_v4 }
 0x15f   : > { %1391 = vmatmul.mubr.msk.bf16.vlgmr.msra.gmra.mrb[0].mxu1 %vm364_vm0, %v1087_v21 }
 0x1e7   : > { %v638_v22 = vpop.f32.mrb[4].mxu0 }
 0x1e8   : > { %v1338_v23 = vpop.f32.mrb[5].mxu0  ;;  %v1394_v27 = vadd.f32 %v1280_v26, %v638_v22 }
 0x1e9   : > { %v641_v24 = vpop.f32.mrb[6].mxu0 }
 0x1ea   : > { %v1339_v25 = vpop.f32.mrb[7].mxu0  ;;  %v1395_v29 = vadd.f32 %v1394_v27, %v1281_v28 }
 0x232   : > { %v1131_v30 = vpop.f32.mrb[0].mxu1 }
 0x233   : > { %v1396_v4 = vadd.f32 %v1395_v29, %v1131_v30  ;;  %v1392_v31 = vpop.f32.mrb[1].mxu1 }
 0x234   : > { %v1134_v32 = vpop.f32.mrb[2].mxu1 }
 0x235   : > { %v1138_v33 = vmax.f32 %v1396_v4, 0.0  ;;  %v1393_v34 = vpop.f32.mrb[3].mxu1 }
 0x237   : > { %v1139_v35 = vpack.c.bf16 %v1138_v33, %v1138_v33 }
 0x239   : > { %1140 = vst.msk [vmem:[%s276_s10] sm:$0xf] %vm427_vm2, %v1139_v35 }
 0x23a PF: > { %s17_s24 = sadd.s32 1, %s1483_s24  }
 0x23b   : > { %p14_p4 = scmp.ge.s32.totalorder %s17_s24, 4  }
 0x23d   :  { %16 = sbr.rel (!%p14_p4) target bundleno = 1 (0x1), region = 86 }

// kernel: _lambda_.11
= control target key start
LH: loop header
LB: loop body
LE: loop exit
PB: predicated region body
PF: predicated region fallthrough
CT: control target
= control target key end

     0   :  { %12 = vsyncpa [#allocation4], 0  ;;  %s2451_s0 = inlined_call_operand.vmem [shape: bf16[2,8,288], index: 0, kind: input, shape index: {}]   ;;  %s2452_s1 = inlined_call_operand.vmem [shape: bf16[288,64], index: 1, kind: input, shape index: {}]   ;;  %s2453_s2 = inlined_call_operand.vmem [shape: f32[1,64], index: 2, kind: input, shape index: {}]   ;;  %s2454_s3 = inlined_call_operand.vmem [shape: bf16[9,64,64], index: 3, kind: input, shape index: {}]   ;;  %s2455_s4 = inlined_call_operand.vmem [shape: f32[1,64], index: 4, kind: input, shape index: {}]   ;;  %s2456_s5 = inlined_call_operand.vmem [shape: bf16[32,64], index: 5, kind: input, shape index: {}]   ;;  %s2457_s6 = inlined_call_operand.vmem [shape: f32[1,64], index: 6, kind: input, shape index: {}]   ;;  %s2458_s7 = inlined_call_operand.hbm [shape: f32[2,1,64], index: 7, kind: output, shape index: {}]  }
   0x1   :  { %14 = vsyncpa [#allocation4 + $0x1], 0  ;;  %s2082_s24 = smov 0   ;;  %s2084_s25 = smov 0  }
   0x2   :  { %s2086_s26 = smov 0   ;;  %s2088_s27 = smov 0  }
   0x3 LB: > { %s2103_s28 = sadd.s32 4294967295, %s2036_s27   ;;  %s1483_s29 = sadd.s32 4294967294, %s2036_s27   ;;  %s2036_s27 = sphi %s2088_s27, %s2466_s27   ;;  %s2032_s26 = sphi %s2086_s26, %s2465_s26   ;;  %s2028_s25 = sphi %s2084_s25, %s2464_s25   ;;  %s2024_s24 = sphi %s2082_s24, %s2463_s24  }
   0x4   : > { %s2107_s30 = sadd.s32 1, %s2036_s27   ;;  %s179_s8 = sadd.s32 1, %s2032_s26 }
   0x5   : > { %s176_s9 = ssub.s32 %s2036_s27, %s2107_s30  ;;  %p189_p0 = scmp.ne.s32.totalorder %s2032_s26, %s2028_s25 }
   0x6   : > { %p177_p1 = scmp.eq.s32.totalorder %s176_s9, 0  ;;  %p190_p2 = scmp.eq.s32.totalorder %s2103_s28, 1 }
   0x7   : > { %p195_p3 = scmp.ne.s32.totalorder %s2028_s25, %s2024_s24  ;;  %p196_p4 = scmp.eq.s32.totalorder %s1483_s29, 1 }
   0x8   : > { %s2118_s10 = scalar_select %p177_p1, %s2032_s26, %s179_s8  }
   0x9   : > { %p2120_p5 = por %p190_p2, %p189_p0  ;;  %p2124_p6 = por %p196_p4, %p195_p3 }
   0xa   : > { %p1486_p7 = scmp.ge.s32.totalorder %s2036_s27, 1  ;;  %p240_p8 = scmp.lt.s32.totalorder %s2036_s27, 3 }
   0xc   : > { %p241_p9 = pnand %p1486_p7, %p240_p8 }
   0xd   : > { %v1909_v0 = vld [vmem:[%s2452_s1 + $0x40] sm:$0xff] (!%p241_p9)   ;;  %v2038_v2 = vmov (!%p241_p9), 0.0   ;;  %p271_p10 = scmp.lt.s32.totalorder (!%p241_p9), %s2103_s28, 1  ;;  %v1911_v3 = vld [vmem:[%s2452_s1 + $0x48] sm:$0xff] (!%p241_p9)   ;;  %vm2039_vm0 = vmmov (!%p241_p9), 0   ;;  %v1913_v5 = vld [vmem:[%s2452_s1 + $0x50] sm:$0xff] (!%p241_p9)   ;;  %v525_v52 = vlaneseq (!%p241_p9) }
   0xe   : > { %244 = sbr.rel (%p241_p9) target bundleno = 598 (0x256), region = 48  ;;  %v1910_v1 = vld [vmem:[%s2452_s1] sm:$0xff] (!%p241_p9)   ;;  %1707 = vmatprep.subr.bf16.mxu1 (!%p241_p9), %v2038_v2  ;;  %1634 = vmatprep.subr.bf16.mxu0 (!%p241_p9), %v1909_v0  ;;  %v1912_v4 = vld [vmem:[%s2452_s1 + $0x8] sm:$0xff] (!%p241_p9)   ;;  %vm543_vm1 = vcmask (!%p241_p9), 519168   ;;  %v1914_v6 = vld [vmem:[%s2452_s1 + $0x10] sm:$0xff] (!%p241_p9)   ;;  %v2040_v8 = vmov (!%p241_p9), 0  }
   0xf   : > { %1635 = vmatpush3.bf16.msra.mxu0 (!%p241_p9), %v1910_v1  ;;  %1711 = vmatprep.mubr.msk.bf16.mxu1 (!%p241_p9), %vm2039_vm0, %v2038_v2  ;;  %v1915_v7 = vld [vmem:[%s2452_s1 + $0x58] sm:$0xff] (!%p241_p9)   ;;  %544 = vst.msk [vmem:[#allocation2] sm:$0xf] (!%p241_p9), %vm543_vm1, %v2040_v8  ;;  %545 = vst.msk [vmem:[#allocation2 + $0x4] sm:$0xf] (!%p241_p9), %vm543_vm1, %v2040_v8  ;;  %v1917_v10 = vld [vmem:[%s2452_s1 + $0x60] sm:$0xff] (!%p241_p9)  }
  0x10   : > { %1636 = vmatprep.subr.bf16.mxu0 (!%p241_p9), %v1911_v3  ;;  %546 = vst.msk [vmem:[#allocation2 + $0x8] sm:$0xf] (!%p241_p9), %vm543_vm1, %v2040_v8  ;;  %547 = vst.msk [vmem:[#allocation2 + $0xc] sm:$0xf] (!%p241_p9), %vm543_vm1, %v2040_v8  ;;  %v1916_v9 = vld [vmem:[%s2452_s1 + $0x18] sm:$0xff] (!%p241_p9)   ;;  %v1923_v11 = vld [vmem:[%s2452_s1 + $0x80] sm:$0xff] (!%p241_p9)  }
  0x11   : > { %548 = vst.msk [vmem:[#allocation2 + $0x10] sm:$0xf] (!%p241_p9), %vm543_vm1, %v2040_v8  ;;  %v1918_v12 = vld [vmem:[%s2452_s1 + $0x20] sm:$0xff] (!%p241_p9)   ;;  %v1919_v13 = vld [vmem:[%s2452_s1 + $0x68] sm:$0xff] (!%p241_p9)   ;;  %1708 = vmatpush3.bf16.msra.mxu1 (!%p241_p9), %v1923_v11  ;;  %v1921_v18 = vld [vmem:[%s2452_s1 + $0x70] sm:$0xff] (!%p241_p9)   ;;  %vm440_vm2 = vcmask (!%p241_p9), 261120  }
  0x12   : > { %v1920_v14 = vld [vmem:[%s2452_s1 + $0x28] sm:$0xff] (!%p241_p9)   ;;  %1709 = vmatprep.subr.bf16.mxu1 (!%p241_p9), %v2038_v2  ;;  %v1922_v20 = vld [vmem:[%s2452_s1 + $0x30] sm:$0xff] (!%p241_p9)   ;;  %v1924_v21 = vld [vmem:[%s2452_s1 + $0x78] sm:$0xff] (!%p241_p9)   ;;  %vm594_vm3 = vcmask (!%p241_p9), 523264   ;;  %v526_v53 = vshrl.u32 (!%p241_p9), %v525_v52, 7  ;;  %s1631_s8 = sshll.u32 (!%p241_p9), %s2103_s28, 4 }
  0x13   : > { %1637 = vmatpush3.bf16.msra.mxu0 (!%p241_p9), %v1912_v4  ;;  %v1929_v17 = vld [vmem:[%s2452_s1 + $0x88] sm:$0xff] (!%p241_p9)   ;;  %v1925_v22 = vld [vmem:[%s2452_s1 + $0x38] sm:$0xff] (!%p241_p9)   ;;  %v1930_v23 = vld [vmem:[%s2454_s3 + $0x20] sm:$0xff] (!%p241_p9)   ;;  %vm1413_vm5 = vcmask (!%p241_p9), 516096  }
  0x14   : > { %1638 = vmatprep.subr.bf16.mxu0 (!%p241_p9), %v1913_v5  ;;  %v1931_v25 = vld [vmem:[%s2454_s3 + $0x28] sm:$0xff] (!%p241_p9)   ;;  %v1932_v26 = vld [vmem:[%s2454_s3 + $0x30] sm:$0xff] (!%p241_p9)   ;;  %v1933_v27 = vld [vmem:[%s2454_s3 + $0x38] sm:$0xff] (!%p241_p9)   ;;  %v531_v59 = vand.u32 (!%p241_p9), 7, %v526_v53 }
  0x15   : > { %s272_s23 = scalar_select %p271_p10, %s2103_s28, 1  ;;  %1710 = vmatpush3.bf16.msra.mxu1 %v1929_v17  ;;  %v1935_v29 = vld [vmem:[%s2454_s3] sm:$0xff]   ;;  %v1936_v32 = vld [vmem:[%s2454_s3 + $0x8] sm:$0xff]   ;;  %v1937_v35 = vld [vmem:[%s2454_s3 + $0x10] sm:$0xff]  }
  0x16   : > { %1763 = vmatprep.subr.bf16.mxu1 %v2038_v2  ;;  %v552_v28 = vld [vmem:[#allocation2 + $0x4] sm:$0xf]  ;;  %v551_v30 = vld [vmem:[#allocation2] sm:$0x8]  ;;  %v1939_v39 = vld [vmem:[%s2454_s3 + $0x18] sm:$0xff]   ;;  %vm2281_vm4 = vcmp.lt.s32.totalorder %v531_v59, 1 }
  0x17   : > { %s1866_s14 = smul.u32 12, %s272_s23  ;;  %1639 = vmatpush3.bf16.msra.mxu0 %v1914_v6  ;;  %v1524_v31 = vcombine.low %v551_v30, %v552_v28  ;;  %v1938_v38 = vld [vmem:[%s2454_s3 + $0x80] sm:$0xff]   ;;  %v1940_v41 = vld [vmem:[%s2454_s3 + $0x88] sm:$0xff]   ;;  %v1942_v43 = vld [vmem:[%s2454_s3 + $0x90] sm:$0xff]   ;;  %s2041_s28 = smov [#allocation3]  }
  0x18   : > { %1640 = vmatprep.subr.bf16.mxu0 %v1915_v7  ;;  %v1941_v42 = vld [vmem:[%s2454_s3 + $0x40] sm:$0xff]   ;;  %v1943_v44 = vld [vmem:[%s2454_s3 + $0x48] sm:$0xff]   ;;  %v1944_v45 = vld [vmem:[%s2454_s3 + $0x98] sm:$0xff]   ;;  %s1978_s19 = sshll.u32 %s2041_s28, 4  ;;  %s1979_s19 = int_to_ptr.vmem [resolvable:$false] %s1978_s19 }
  0x19   : > { %s275_s29 = scalar_lea.vmem %s2451_s0, %s1866_s14  ;;  %v644_v33 = vshrl.u32 %v1524_v31, 16  ;;  %v647_v34 = vshll.u32 %v1524_v31, 16  ;;  %v1945_v46 = vld [vmem:[%s2454_s3 + $0x50] sm:$0xff]   ;;  %v1948_v47 = vld [vmem:[%s2454_s3 + $0x58] sm:$0xff]   ;;  %v1488_v56 = vld [vmem:[%s2453_s2] ss:$0 sm:$0xff]  ;;  %s2409_s14 = scalar_lea.hbm %s2458_s7, %s1631_s8 }
  0x1a   : > { %v277_v15 = vld [vmem:[%s275_s29] sm:$0xff]  ;;  %v1928_v19 = vld [vmem:[%s275_s29 + $0x8] ss:$0 sps:$4 sm:$0xff]   ;;  %v1958_v30 = vld [vmem:[%s2454_s3 + $0x78] sm:$0xff]   ;;  %s269_s29 = sand.u32 1, %s2028_s25   ;;  %s1980_s20 = scalar_lea.vmem %s1979_s19, 32 }
  0x1b   : > { %1641 = vmatpush3.bf16.msra.mxu0 %v1916_v9  ;;  %v2183_v16 = vcombine.high %v277_v15, %v277_v15  ;;  %1712 = vmatmul.mubr.msk.bf16.vlgmr.msra.gmra.mrb[0].mxu1 %vm440_vm2, %v1928_v19  ;;  %v1489_v24 = vcombine.low %v277_v15, %v277_v15  ;;  %v646_v36 = vrot.slane %v644_v33, 3  ;;  %v649_v37 = vrot.slane %v647_v34, 4  ;;  %v1947_v4 = vld [vmem:[%s2454_s3 + $0xa0] sm:$0xff]   ;;  %v1949_v7 = vld [vmem:[%s2454_s3 + $0xa8] sm:$0xff]   ;;  %s270_s9 = scalar_lea.vmem [#allocation3], %s269_s29  ;;  %s1416_s17 = scalar_lea.sflag [#allocation4], %s269_s29 }
  0x1c   : > { %1642 = vmatprep.subr.bf16.mxu0 %v1917_v10  ;;  %1771 = vmatprep.mubr.msk.bf16.mxu1 %vm2039_vm0, %v2038_v2  ;;  %v809_v15 = vld [vmem:[#allocation2 + $0x4] sm:$0x8]  ;;  %v1959_v33 = vld [vmem:[%s2454_s3 + $0xc8] sm:$0xff]   ;;  %s1428_s13 = sshll.u32 %s270_s9, 4  ;;  %s2411_s13 = int_to_ptr.vmem [resolvable:$true] %s1428_s13 }
  0x1d   : > { %476 = vmatprep.mubr.bf16.mxu0 %v2183_v16  ;;  %1764 = vmatpush3.bf16.msra.mxu1 %v1938_v38  ;;  %v650_v40 = vor.u32 %v649_v37, %v646_v36  ;;  %v1960_v36 = vld [vmem:[%s2454_s3 + $0xd0] sm:$0xff]   ;;  %s1974_s18 = scalar_lea.vmem %s2411_s13, 16  ;;  %p1981_p0 = scmp.lt.s32.totalorder %s2411_s13, %s1979_s19 }
  0x1e   : > { %1765 = vmatprep.subr.bf16.mxu1 %v2038_v2  ;;  %p1975_p11 = scmp.ne.s32.totalorder %s2411_s13, %s1974_s18  ;;  %p1982_p1 = scmp.lt.s32.totalorder %s1980_s20, %s1974_s18 }
  0x1f   : > { %1643 = vmatpush3.bf16.msra.mxu0 %v1918_v12  ;;  %v1951_v12 = vld [vmem:[%s2454_s3 + $0x60] sm:$0xff]  }
  0x20   : > { %1644 = vmatprep.subr.bf16.mxu0 %v1919_v13  ;;  %p1976_p12 = pnand %p1975_p11, %p2120_p5  ;;  %p1983_p2 = por %p1982_p1, %p1981_p0 }
  0x21   : > { %1766 = vmatpush3.bf16.msra.mxu1 %v1940_v41 }
  0x22   : > { %1767 = vmatprep.subr.bf16.mxu1 %v2038_v2  ;;  %p1977_p13 = pneg %p1976_p12 }
  0x23   : > { %1645 = vmatpush3.bf16.msra.mxu0 %v1920_v14  ;;  %v1952_v14 = vld [vmem:[%s2454_s3 + $0xb0] sm:$0xff]  }
  0x24   : > { %1646 = vmatprep.subr.bf16.mxu0 %v1921_v18  ;;  %v1953_v18 = vld [vmem:[%s2454_s3 + $0x68] sm:$0xff]   ;;  %p1984_p3 = pnand %p1983_p2, %p1977_p13 }
  0x25   : > { %1768 = vmatpush3.bf16.msra.mxu1 %v1942_v43 }
  0x26   : > { %1769 = vmatprep.subr.bf16.mxu1 %v2038_v2 }
  0x27   : > { %1647 = vmatpush3.bf16.msra.mxu0 %v1922_v20  ;;  %v1954_v20 = vld [vmem:[%s2454_s3 + $0xb8] sm:$0xff]  }
  0x28   : > { %1648 = vmatprep.subr.bf16.mxu0 %v1924_v21 }
  0x29   : > { %1770 = vmatpush3.bf16.msra.mxu1 %v1944_v45  ;;  %v1965_v45 = vld [vmem:[%s2454_s3 + $0xf0] sm:$0xff]  }
  0x2a   : > { %1775 = vmatprep.subr.bf16.mxu1 %v2038_v2 }
  0x2b   : > { %1649 = vmatpush3.bf16.msra.mxu0 %v1925_v22 }
  0x2c   : > { %1715 = vmatprep.subr.bf16.mxu0 %v2038_v2 }
  0x2e   : > { %477 = vmatmul.mubr.bf16.vlgmr.msra.gmra.mrb[0].mxu0 %v1489_v24 }
  0x2f   : > { %1716 = vmatpush3.bf16.msra.mxu0 %v1930_v23  ;;  %1723 = vmatprep.mubr.msk.bf16.mxu0 %vm2039_vm0, %v2038_v2  ;;  %v1956_v23 = vld [vmem:[%s2454_s3 + $0x70] sm:$0xff]  }
  0x30   : > { %1717 = vmatprep.subr.bf16.mxu0 %v2038_v2 }
  0x33   : > { %1718 = vmatpush3.bf16.msra.mxu0 %v1931_v25 }
  0x34   : > { %1719 = vmatprep.subr.bf16.mxu0 %v2038_v2 }
  0x37   : > { %1720 = vmatpush3.bf16.msra.mxu0 %v1932_v26  ;;  %v1957_v26 = vld [vmem:[%s2454_s3 + $0xc0] sm:$0xff]  }
  0x38   : > { %1721 = vmatprep.subr.bf16.mxu0 %v2038_v2 }
  0x3b   : > { %1722 = vmatpush3.bf16.msra.mxu0 %v1933_v27 }
  0x3c   : > { %1727 = vmatprep.subr.bf16.mxu0 %v2038_v2 }
  0x3e   : > { %1724 = vmatmul.mubr.msk.bf16.vlgmr.msra.gmra.mrb[4].mxu0 %vm594_vm3, %v552_v28 }
  0x3f   : > { %1728 = vmatpush3.bf16.msra.mxu0 %v1935_v29  ;;  %1735 = vmatprep.mubr.msk.bf16.mxu0 %vm2039_vm0, %v2038_v2  ;;  %v1070_v29 = vld [vmem:[#allocation2 + $0xc] sm:$0xf] }
  0x40   : > { %1729 = vmatprep.subr.bf16.mxu0 %v2038_v2 }
  0x43   : > { %1730 = vmatpush3.bf16.msra.mxu0 %v1936_v32 }
  0x44   : > { %1731 = vmatprep.subr.bf16.mxu0 %v2038_v2 }
  0x47   : > { %1732 = vmatpush3.bf16.msra.mxu0 %v1937_v35 }
  0x48   : > { %1733 = vmatprep.subr.bf16.mxu0 %v2038_v2 }
  0x4b   : > { %1734 = vmatpush3.bf16.msra.mxu0 %v1939_v39  ;;  %v1961_v39 = vld [vmem:[%s2454_s3 + $0xd8] sm:$0xff]  }
  0x4c   : > { %1739 = vmatprep.subr.bf16.mxu0 %v2038_v2 }
  0x4e   : > { %1736 = vmatmul.mubr.msk.bf16.vlgmr.msra.gmra.mrb[4].mxu0 %vm594_vm3, %v650_v40 }
  0x4f   : > { %1740 = vmatpush3.bf16.msra.mxu0 %v1941_v42  ;;  %1747 = vmatprep.mubr.msk.bf16.mxu0 %vm2039_vm0, %v2038_v2  ;;  %v1963_v42 = vld [vmem:[%s2454_s3 + $0xe0] sm:$0xff]  }
  0x50   : > { %1741 = vmatprep.subr.bf16.mxu0 %v2038_v2 }
  0x53   : > { %1742 = vmatpush3.bf16.msra.mxu0 %v1943_v44  ;;  %v1964_v44 = vld [vmem:[%s2454_s3 + $0xe8] sm:$0xff]  }
  0x54   : > { %1743 = vmatprep.subr.bf16.mxu0 %v2038_v2 }
  0x57   : > { %1744 = vmatpush3.bf16.msra.mxu0 %v1945_v46  ;;  %v1966_v46 = vld [vmem:[%s2454_s3 + $0xf8] sm:$0xff]  }
  0x58   : > { %1745 = vmatprep.subr.bf16.mxu0 %v2038_v2 }
  0x5b   : > { %1746 = vmatpush3.bf16.msra.mxu0 %v1948_v47  ;;  %v1967_v47 = vld [vmem:[%s2454_s3 + $0x100] sm:$0xff]  }
  0x5c   : > { %1751 = vmatprep.subr.bf16.mxu0 %v2038_v2 }
  0xee   : > { %v518_v48 = vpop.f32.mrb[0].mxu1 }
  0xef   : > { %v1713_v49 = vpop.f32.mrb[1].mxu1 }
  0xf0   : > { %v521_v50 = vpop.f32.mrb[2].mxu1  ;;  %v1968_v49 = vld [vmem:[%s2454_s3 + $0x108] sm:$0xff]  }
  0xf1   : > { %v1714_v51 = vpop.f32.mrb[3].mxu1 }
  0xf2   : > { %v1969_v51 = vld [vmem:[%s2454_s3 + $0x110] sm:$0xff]  }
 0x101   : > { %v1650_v54 = vpop.f32.mrb[0].mxu0 }
 0x102   : > { %v1651_v55 = vpop.f32.mrb[1].mxu0 }
 0x103   : > { %v1652_v57 = vadd.f32 %v1651_v55, %v1650_v54  ;;  %v1653_v58 = vpop.f32.mrb[2].mxu0  ;;  %v1970_v54 = vld [vmem:[%s2454_s3 + $0x118] sm:$0xff]  }
 0x104   : > { %v1654_v60 = vpop.f32.mrb[3].mxu0 }
 0x105   : > { %v479_v61 = vadd.f32 %v1652_v57, %v1488_v56  ;;  %v1972_v56 = vld [vmem:[%s2456_s5] sm:$0xff]   ;;  %v1973_v57 = vld [vmem:[%s2456_s5 + $0x8] sm:$0xff]  }
 0x107   : > { %v519_v62 = vadd.f32 %v518_v48, %v479_v61  ;;  %v1971_v48 = vld [vmem:[#allocation2 + $0xc] sm:$0x1f]  }
 0x108   : > { %v1257_v50 = vshll.u32 %v1971_v48, 16  ;;  %v1255_v52 = vshrl.u32 %v1971_v48, 16 }
 0x109   : > { %v524_v0 = vmax.f32 %v519_v62, 0.0  ;;  %v1626_v62 = vld [vmem:[%s2455_s4] ss:$0 sm:$0xff] }
 0x10a   : > { %v1259_v53 = vrot.slane %v1257_v50, 1 }
 0x10b   : > { %v542_v1 = vsel %vm2281_vm4, %v524_v0, 0.0 }
 0x10c   : > { %v549_v3 = vpack.c.bf16 %v542_v1, %v542_v1  ;;  %v1260_v55 = vor.u32 %v1259_v53, %v1255_v52  ;;  %v1627_v1 = vld [vmem:[%s2457_s6] ss:$0 sm:$0xff] }
 0x10e   : > { %550 = vst.msk [vmem:[#allocation2 + $0x8] sm:$0xf] %vm543_vm1, %v549_v3 }
 0x115   : > { %v810_v5 = vld [vmem:[#allocation2 + $0x8] sm:$0xf] }
 0x116   : > { %v1950_v6 = vld [vmem:[#allocation2 + $0x4] sm:$0x1f]   ;;  %1772 = vmatmul.mubr.msk.bf16.vlgmr.msra.gmra.mrb[4].mxu1 %vm594_vm3, %v810_v5  ;;  %v1552_v19 = vcombine.low %v809_v15, %v810_v5  ;;  %v1069_v28 = vld [vmem:[#allocation2 + $0x8] sm:$0x8] }
 0x117   : > { %1776 = vmatpush3.bf16.msra.mxu1 %v1947_v4  ;;  %v737_v8 = vshll.u32 %v1950_v6, 16  ;;  %1783 = vmatprep.mubr.msk.bf16.mxu1 %vm2039_vm0, %v2038_v2  ;;  %v1955_v9 = vld [vmem:[#allocation2 + $0x8] sm:$0x1f]   ;;  %v735_v10 = vshrl.u32 %v1950_v6, 16  ;;  %v1593_v34 = vcombine.low %v1069_v28, %v1070_v29 }
 0x118   : > { %1777 = vmatprep.subr.bf16.mxu1 %v2038_v2  ;;  %v997_v17 = vshll.u32 %v1955_v9, 16  ;;  %v995_v22 = vshrl.u32 %v1955_v9, 16  ;;  %v826_v24 = vshrl.u32 %v1552_v19, 16  ;;  %v829_v25 = vshll.u32 %v1552_v19, 16 }
 0x119   : > { %v739_v11 = vrot.slane %v737_v8, 1  ;;  %v1086_v37 = vshrl.u32 %v1593_v34, 16  ;;  %v1089_v38 = vshll.u32 %v1593_v34, 16 }
 0x11a   : > { %v999_v21 = vrot.slane %v997_v17, 1  ;;  %v828_v31 = vrot.slane %v826_v24, 3  ;;  %v831_v32 = vrot.slane %v829_v25, 4 }
 0x11b   : > { %1778 = vmatpush3.bf16.msra.mxu1 %v1949_v7  ;;  %v740_v13 = vor.u32 %v739_v11, %v735_v10  ;;  %v1088_v40 = vrot.slane %v1086_v37, 3  ;;  %v1091_v41 = vrot.slane %v1089_v38, 4 }
 0x11c   : > { %1779 = vmatprep.subr.bf16.mxu1 %v2038_v2  ;;  %v1000_v27 = vor.u32 %v999_v21, %v995_v22  ;;  %v832_v35 = vor.u32 %v831_v32, %v828_v31 }
 0x11d   : > { %1748 = vmatmul.mubr.msk.bf16.vlgmr.msra.gmra.mrb[4].mxu0 %vm594_vm3, %v740_v13  ;;  %v1092_v43 = vor.u32 %v1091_v41, %v1088_v40 }
 0x11e   : > { %1752 = vmatpush3.bf16.msra.mxu0 %v1951_v12  ;;  %1759 = vmatprep.mubr.msk.bf16.mxu0 %vm2039_vm0, %v2038_v2 }
 0x11f   : > { %1780 = vmatpush3.bf16.msra.mxu1 %v1952_v14  ;;  %1753 = vmatprep.subr.bf16.mxu0 %v2038_v2 }
 0x120   : > { %1781 = vmatprep.subr.bf16.mxu1 %v2038_v2 }
 0x122   : > { %1754 = vmatpush3.bf16.msra.mxu0 %v1953_v18 }
 0x123   : > { %1782 = vmatpush3.bf16.msra.mxu1 %v1954_v20  ;;  %1755 = vmatprep.subr.bf16.mxu0 %v2038_v2 }
 0x124   : > { %1787 = vmatprep.subr.bf16.mxu1 %v2038_v2 }
 0x126   : > { %1784 = vmatmul.mubr.msk.bf16.vlgmr.msra.gmra.mrb[4].mxu1 %vm594_vm3, %v1000_v27  ;;  %1756 = vmatpush3.bf16.msra.mxu0 %v1956_v23 }
 0x127   : > { %1788 = vmatpush3.bf16.msra.mxu1 %v1957_v26  ;;  %1757 = vmatprep.subr.bf16.mxu0 %v2038_v2 }
 0x128   : > { %1789 = vmatprep.subr.bf16.mxu1 %v2038_v2  ;;  %1795 = vmatprep.mubr.msk.bf16.mxu1 %vm2039_vm0, %v2038_v2 }
 0x12a   : > { %1758 = vmatpush3.bf16.msra.mxu0 %v1958_v30 }
 0x12b   : > { %1790 = vmatpush3.bf16.msra.mxu1 %v1959_v33 }
 0x12c   : > { %1791 = vmatprep.subr.bf16.mxu1 %v2038_v2 }
 0x12d   : > { %1760 = vmatmul.mubr.msk.bf16.vlgmr.msra.gmra.mrb[4].mxu0 %vm594_vm3, %v832_v35 }
 0x12f   : > { %1792 = vmatpush3.bf16.msra.mxu1 %v1960_v36 }
 0x130   : > { %1793 = vmatprep.subr.bf16.mxu1 %v2038_v2 }
 0x133   : > { %1794 = vmatpush3.bf16.msra.mxu1 %v1961_v39 }
 0x134   : > { %1799 = vmatprep.subr.bf16.mxu1 %v2038_v2 }
 0x136   : > { %1796 = vmatmul.mubr.msk.bf16.vlgmr.msra.gmra.mrb[4].mxu1 %vm594_vm3, %v1092_v43 }
 0x137   : > { %1800 = vmatpush3.bf16.msra.mxu1 %v1963_v42  ;;  %1807 = vmatprep.mubr.msk.bf16.mxu1 %vm2039_vm0, %v2038_v2 }
 0x138   : > { %1801 = vmatprep.subr.bf16.mxu1 %v2038_v2 }
 0x13b   : > { %1802 = vmatpush3.bf16.msra.mxu1 %v1964_v44 }
 0x13c   : > { %1803 = vmatprep.subr.bf16.mxu1 %v2038_v2 }
 0x13f   : > { %1804 = vmatpush3.bf16.msra.mxu1 %v1965_v45 }
 0x140   : > { %1805 = vmatprep.subr.bf16.mxu1 %v2038_v2 }
 0x143   : > { %1806 = vmatpush3.bf16.msra.mxu1 %v1966_v46 }
 0x144   : > { %1811 = vmatprep.subr.bf16.mxu1 %v2038_v2 }
 0x146   : > { %1808 = vmatmul.mubr.msk.bf16.vlgmr.msra.gmra.mrb[4].mxu1 %vm594_vm3, %v1070_v29 }
 0x147   : > { %1812 = vmatpush3.bf16.msra.mxu1 %v1967_v47  ;;  %1819 = vmatprep.mubr.msk.bf16.mxu1 %vm2039_vm0, %v2038_v2 }
 0x148   : > { %1813 = vmatprep.subr.bf16.mxu1 %v2038_v2 }
 0x14b   : > { %1814 = vmatpush3.bf16.msra.mxu1 %v1968_v49 }
 0x14c   : > { %1815 = vmatprep.subr.bf16.mxu1 %v2038_v2 }
 0x14f   : > { %1816 = vmatpush3.bf16.msra.mxu1 %v1969_v51 }
 0x150   : > { %1817 = vmatprep.subr.bf16.mxu1 %v2038_v2 }
 0x153   : > { %1818 = vmatpush3.bf16.msra.mxu1 %v1970_v54 }
 0x154   : > { %1823 = vmatprep.subr.bf16.mxu1 %v2038_v2 }
 0x156   : > { %1820 = vmatmul.mubr.msk.bf16.vlgmr.msra.gmra.mrb[4].mxu1 %vm594_vm3, %v1260_v55 }
 0x157   : > { %1824 = vmatpush3.bf16.msra.mxu1 %v1972_v56  ;;  %1827 = vmatprep.mubr.msk.bf16.mxu1 %vm2039_vm0, %v2038_v2 }
 0x158   : > { %1825 = vmatprep.subr.bf16.mxu1 %v2038_v2 }
 0x15b   : > { %1826 = vmatpush3.bf16.msra.mxu1 %v1973_v57 }
 0x162   : > { %1828 = vmatmul.mubr.msk.bf16.vlgmr.msra.gmra.mrb[4].mxu1 %vm440_vm2, %v2183_v16 }
 0x200   : > { %v894_v58 = vpop.f32.mrb[4].mxu0 }
 0x201   : > { %v1761_v59 = vpop.f32.mrb[5].mxu0  ;;  %v1831_v0 = vadd.f32 %v1626_v62, %v894_v58 }
 0x202   : > { %v897_v60 = vpop.f32.mrb[6].mxu0 }
 0x203   : > { %v1762_v61 = vpop.f32.mrb[7].mxu0  ;;  %v1832_v2 = vadd.f32 %v1831_v0, %v1627_v1 }
 0x235   : > { %v1397_v3 = vpop.f32.mrb[4].mxu1 }
 0x236   : > { %v1833_v4 = vadd.f32 %v1832_v2, %v1397_v3  ;;  %v1829_v5 = vpop.f32.mrb[5].mxu1 }
 0x237   : > { %v1400_v16 = vpop.f32.mrb[6].mxu1 }
 0x238   : > { %v1404_v6 = vmax.f32 %v1833_v4, 0.0  ;;  %v1830_v7 = vpop.f32.mrb[7].mxu1 }
 0x23a   : > { %v1405_v8 = vsel %vm2281_vm4, %v1404_v6, 0.0 }
 0x23b   : > { %v1406_v9 = vsel %vm594_vm3, %v1405_v8, 0.0 }
 0x23c   : > { %v1407_v10 = vrot.slane %v1406_v9, 4 }
 0x23e   : > { %v1408_v11 = vadd.f32 %v1407_v10, %v1406_v9 }
 0x240   : > { %v1409_v12 = vrot.slane %v1408_v11, 2 }
 0x242   : > { %v1410_v13 = vadd.f32 %v1409_v12, %v1408_v11 }
 0x244   : > { %v1411_v14 = vrot.slane %v1410_v13, 1 }
 0x246   : > { %v1412_v15 = vadd.f32 %v1411_v14, %v1410_v13 }
 0x248   : > { %1414 = vst.msk [vmem:[%s270_s9] sm:$0x1] %vm1413_vm5, %v1412_v15 }
 0x249   : > { %1987 = shalt.err (!%p1984_p3)
}
 0x24a   : > { %s1988_s21 = scalar_lea.hbm %s2409_s14, 16  ;;  %s1992_s29 = scalar_lea.hbm %s2458_s7, 32 }
 0x24b   : > { %p1989_p4 = scmp.ne.s32.totalorder %s2409_s14, %s1988_s21  ;;  %p1993_p9 = scmp.lt.u32.totalorder %s2409_s14, %s2458_s7 }
 0x24c   : > { %p1994_p10 = scmp.lt.u32.totalorder %s1992_s29, %s1988_s21  ;;  %p1996_p12 = scmp.lt.u32.totalorder %s1988_s21, %s2409_s14 }
 0x24d   : > { %p1990_p7 = pnand %p1989_p4, %p2120_p5 }
 0x24e   : > { %p1995_p11 = por %p1994_p10, %p1993_p9 }
 0x24f   : > { %p1991_p8 = pneg %p1990_p7 }
 0x250   : > { %p1997_p13 = por %p1996_p12, %p1995_p11 }
 0x252   : > { %p1998_p0 = pnand %p1997_p13, %p1991_p8 }
 0x254   : > { %2001 = shalt.err (!%p1998_p0)
}
 0x255   : > { %1867 = dma.vmem_to_hbm [thread:$0]  (%p2120_p5), %s2411_s13, 16, %s2409_s14, %s1416_s17  }
 0x256 PF: > { %p1873_p1 = scmp.ge.s32.totalorder %s2036_s27, 2  ;;  %s1440_s15 = sand.u32 1, %s2024_s24  }
 0x257   : > { %s1441_s16 = scalar_lea.sflag [#allocation4], %s1440_s15 }
 0x258   : > { %p1870_p2 = pnand %p1873_p1, %p2124_p6 }
 0x25a   : > { %2019 = dma.done.wait (!%p1870_p2), %s1441_s16, 16  }
 0x25b   : > { %2021 = vsyncadd (!%p1870_p2), %s1441_s16, 4294967280  ;;  %p17_p3 = scmp.ge.s32.totalorder %s2107_s30, 4   ;;  %s2463_s24 = smov %s2028_s25 }
 0x25c   : > { %s2464_s25 = smov %s2032_s26  ;;  %s2465_s26 = smov %s2118_s10 }
 0x25d   : > { %s2466_s27 = smov %s2107_s30  ;;  %19 = sbr.rel (!%p17_p3) target bundleno = 3 (0x3), region = 91 }
 0x264   :  { %1445 = vsyncpa [#allocation4], 1 }
 0x265   :  { %1447 = vsyncpa [#allocation4 + $0x1], 1 }

</bundles_post_ra>
